<compile_context>
chip_gen: v7x
topology: tpu7x:2x2x1
jax: 0.10.0
libtpu: 0.0.40
codegen_flags: <defaults>
</compile_context>

<pallas_src>
import functools

import jax
import jax.numpy as jnp
from jax.experimental import pallas as pl
from jax.experimental.pallas import tpu as pltpu

LANE = 128
STAGE_STRIDES = (1, 2, 2, 2)
VMEM_LIMIT = 32 * 1024 * 1024  # explicit scoped-VMEM budget (safe on v5e/v6e/v7x)


def _round_up(x, m):
    return ((x + m - 1) // m) * m


def _row_tile(M, max_tile=256):
    """Row-tile size: 256 for large M (pipelined grid), else a 16-aligned full block."""
    if M >= max_tile:
        return max_tile
    return _round_up(max(M, 8), 16)


def _compiler_params():
    return pltpu.CompilerParams(dimension_semantics=("parallel",),
                                vmem_limit_bytes=VMEM_LIMIT)


# ------------------------- Pallas kernels -------------------------

def _mm_bn_kernel(x_ref, w_ref, s_ref, b_ref, o_ref, *, relu):
    """out = relu?(x @ w * scale + shift)   (MXU matmul + fused BN epilogue)."""
    acc = jnp.dot(x_ref[...], w_ref[...], preferred_element_type=jnp.float32)
    y = acc * s_ref[...] + b_ref[...]
    if relu:
        y = jnp.maximum(y, 0.0)
    o_ref[...] = y


def _mm_bn_res_kernel(x_ref, w_ref, s_ref, b_ref, r_ref, o_ref):
    """out = relu(x @ w * scale + shift + residual)  (basic-block tail)."""
    acc = jnp.dot(x_ref[...], w_ref[...], preferred_element_type=jnp.float32)
    o_ref[...] = jnp.maximum(acc * s_ref[...] + b_ref[...] + r_ref[...], 0.0)


def fused_matmul_bn(x, w, scale, shift, *, relu, residual=None):
    """x:(M,K) float, w:(K,Np) bf16, scale/shift:(1,Np) f32, residual:(M,Np) f32|None.

    Returns (M, Np) f32 where Np is a multiple of 128 (lane-dense stores).
    Grid is tiled over M so input DMA is pipelined behind the MXU.
    """
    M, K = x.shape
    K2, Np = w.shape
    assert K == K2 and Np % LANE == 0
    tm = _row_tile(M)
    Mp = _round_up(M, tm)

    xp = x.astype(jnp.bfloat16)
    if Mp != M:
        xp = jnp.pad(xp, ((0, Mp - M), (0, 0)))

    in_specs = [
        pl.BlockSpec((tm, K), lambda i: (i, 0)),
        pl.BlockSpec((K, Np), lambda i: (0, 0)),
        pl.BlockSpec((1, Np), lambda i: (0, 0)),
        pl.BlockSpec((1, Np), lambda i: (0, 0)),
    ]
    args = [xp, w, scale, shift]

    if residual is None:
        kernel = functools.partial(_mm_bn_kernel, relu=relu)
    else:
        rp = residual.astype(jnp.float32)
        if Mp != M:
            rp = jnp.pad(rp, ((0, Mp - M), (0, 0)))
        in_specs.append(pl.BlockSpec((tm, Np), lambda i: (i, 0)))
        args.append(rp)
        kernel = _mm_bn_res_kernel  # always ReLU after the residual add

    out = pl.pallas_call(
        kernel,
        out_shape=jax.ShapeDtypeStruct((Mp, Np), jnp.float32),
        grid=(Mp // tm,),
        in_specs=in_specs,
        out_specs=pl.BlockSpec((tm, Np), lambda i: (i, 0)),
        compiler_params=_compiler_params(),
    )(*args)
    return out[:M] if Mp != M else out


def _max_reduce_kernel(x_ref, o_ref):
    o_ref[...] = jnp.max(x_ref[...], axis=0)


def pallas_max_reduce(x):  # (KK, M, C) -> (M, C)
    KK, M, C = x.shape
    tm = _row_tile(M)
    Mp = _round_up(M, tm)
    if Mp != M:
        x = jnp.pad(x, ((0, 0), (0, Mp - M), (0, 0)))
    out = pl.pallas_call(
        _max_reduce_kernel,
        out_shape=jax.ShapeDtypeStruct((Mp, C), jnp.float32),
        grid=(Mp // tm,),
        in_specs=[pl.BlockSpec((KK, tm, C), lambda i: (0, i, 0))],
        out_specs=pl.BlockSpec((tm, C), lambda i: (i, 0)),
        compiler_params=_compiler_params(),
    )(x)
    return out[:M] if Mp != M else out


def _gap_kernel(x_ref, o_ref):
    o_ref[...] = jnp.mean(x_ref[...], axis=1)


def pallas_global_avg_pool(x):  # (N, HW, C) -> (N, C)
    N, HW, C = x.shape
    return pl.pallas_call(
        _gap_kernel,
        out_shape=jax.ShapeDtypeStruct((N, C), jnp.float32),
        grid=(1,),
        in_specs=[pl.BlockSpec((N, HW, C), lambda i: (0, 0, 0))],
        out_specs=pl.BlockSpec((N, C), lambda i: (0, 0)),
        compiler_params=_compiler_params(),
    )(x)


# ------------------------- JAX glue (layout plumbing only) -------------------------

def _im2col(x, kh, kw, stride, pad, cin_valid):
    """x:(N,H,W,Cpad) -> (N*Ho*Wo, kh*kw*cin_valid) patch matrix (pure data movement).

    Only the valid channel slice is gathered so the matmul K dim stays small even
    though activations are stored with 128-padded lanes.
    """
    N, H, W, C = x.shape
    if cin_valid != C:
        x = x[..., :cin_valid]
    if pad > 0:
        x = jnp.pad(x, ((0, 0), (pad, pad), (pad, pad), (0, 0)))
    Ho = (H + 2 * pad - kh) // stride + 1
    Wo = (W + 2 * pad - kw) // stride + 1
    cols = []
    for i in range(kh):
        for j in range(kw):
            cols.append(x[:, i:i + stride * (Ho - 1) + 1:stride,
                            j:j + stride * (Wo - 1) + 1:stride, :])
    patches = jnp.concatenate(cols, axis=-1)  # (N, Ho, Wo, kh*kw*cin_valid)
    return patches.reshape(N * Ho * Wo, kh * kw * cin_valid), (N, Ho, Wo)


def conv_bn(x, arch, arr, *, relu, residual=None):
    """Conv + folded-BN (+residual) (+ReLU) as a single fused Pallas matmul."""
    cols, (N, Ho, Wo) = _im2col(x, arch['kh'], arch['kw'], arch['stride'],
                                arch['pad'], arch['cin'])
    res2d = None
    if residual is not None:
        res2d = residual.reshape(N * Ho * Wo, arch['cpad'])
    y = fused_matmul_bn(cols, arr['w'], arr['scale'], arr['shift'],
                        relu=relu, residual=res2d)
    return y.reshape(N, Ho, Wo, arch['cpad'])


def basic_block(x, barch, barr):
    out = conv_bn(x, barch['conv1'], barr['conv1'], relu=True)
    if barch['downsample'] is not None:
        identity = conv_bn(x, barch['downsample'], barr['downsample'], relu=False)
    else:
        identity = x
    # conv2 + BN + residual add + ReLU fused in one kernel.
    return conv_bn(out, barch['conv2'], barr['conv2'], relu=True, residual=identity)


def max_pool(x, k=3, stride=2, pad=1):
    N, H, W, C = x.shape
    x_pad = jnp.pad(x, ((0, 0), (pad, pad), (pad, pad), (0, 0)),
                    constant_values=-jnp.inf)
    Ho = (H + 2 * pad - k) // stride + 1
    Wo = (W + 2 * pad - k) // stride + 1
    slices = []
    for i in range(k):
        for j in range(k):
            slices.append(x_pad[:, i:i + stride * (Ho - 1) + 1:stride,
                                  j:j + stride * (Wo - 1) + 1:stride, :]
                          .reshape(N * Ho * Wo, C))
    stacked = jnp.stack(slices, axis=0)  # (k*k, M, C)
    return pallas_max_reduce(stacked).reshape(N, Ho, Wo, C)


def resnet_forward(arch, arr, x_nhwc):
    x = conv_bn(x_nhwc, arch['stem'], arr['stem'], relu=True)
    x = max_pool(x, 3, 2, 1)
    for sarch, sarr in zip(arch['stages'], arr['stages']):
        for barch, barr in zip(sarch, sarr):
            x = basic_block(x, barch, barr)
    N, H, W, C = x.shape
    feat = pallas_global_avg_pool(x.reshape(N, H * W, C))
    logits = fused_matmul_bn(feat, arr['fc_w'], arr['fc_scale'], arr['fc_shift'],
                             relu=False)
    return logits[:, :arch['num_classes']]


# ------------------------- deterministic raw parameter init -------------------------

def _conv_bn_params(key, kh, kw, cin, cout):
    kw_, kg, kb, km = jax.random.split(key, 4)
    fan_in = kh * kw * cin
    return {
        'w': jax.random.normal(kw_, (kh, kw, cin, cout), jnp.float32)
             * (2.0 / fan_in) ** 0.5,
        'gamma': 1.0 + 0.1 * jax.random.normal(kg, (cout,), jnp.float32),
        'beta': 0.05 * jax.random.normal(kb, (cout,), jnp.float32),
        'mean': 0.05 * jax.random.normal(km, (cout,), jnp.float32),
        'var': jnp.ones((cout,), jnp.float32),
    }


def _basic_block_params(key, cin, cout, stride):
    k1, k2, k3 = jax.random.split(key, 3)
    p = {'conv1': _conv_bn_params(k1, 3, 3, cin, cout),
         'conv2': _conv_bn_params(k2, 3, 3, cout, cout)}
    if stride != 1 or cin != cout:
        p['downsample'] = _conv_bn_params(k3, 1, 1, cin, cout)
    return p


def make_resnet_params(key, layers, base_width, num_classes, in_chans=3):
    keys = jax.random.split(key, 2 + sum(layers) + 1)
    params = {'stem': _conv_bn_params(keys[0], 7, 7, in_chans, base_width)}
    widths = [base_width, base_width * 2, base_width * 4, base_width * 8]
    stages, cin, ki = [], base_width, 1
    for n_blocks, cout, stride in zip(layers, widths, STAGE_STRIDES):
        blocks = []
        for bi in range(n_blocks):
            s = stride if bi == 0 else 1
            blocks.append(_basic_block_params(keys[ki], cin, cout, s))
            ki += 1
            cin = cout
        stages.append(blocks)
    params['stages'] = stages
    params['fc_w'] = (jax.random.normal(keys[ki], (widths[-1], num_classes),
                                        jnp.float32)
                      * (1.0 / widths[-1]) ** 0.5)
    params['fc_b'] = jnp.zeros((1, num_classes), jnp.float32)
    return params


# ------------------------- inference-ready parameter preparation -------------------------
# (BN folding, channel padding to 128 lanes, bf16 weight cast -- done ONCE at init,
#  outside the jitted forward.)

def _prepare_conv_bn(p, stride, pad, eps=1e-5):
    kh, kw, cin, cout = p['w'].shape
    cpad = _round_up(cout, LANE)
    w = p['w'].reshape(kh * kw * cin, cout)
    w = jnp.pad(w, ((0, 0), (0, cpad - cout))).astype(jnp.bfloat16)
    scale = p['gamma'] / jnp.sqrt(p['var'] + eps)
    shift = p['beta'] - p['mean'] * scale
    scale = jnp.pad(scale, (0, cpad - cout)).reshape(1, cpad).astype(jnp.float32)
    shift = jnp.pad(shift, (0, cpad - cout)).reshape(1, cpad).astype(jnp.float32)
    arch = {'kh': kh, 'kw': kw, 'cin': cin, 'cout': cout, 'cpad': cpad,
            'stride': stride, 'pad': pad}
    arr = {'w': w, 'scale': scale, 'shift': shift}
    return arch, arr


def _prepare_block(p, stride):
    a1, r1 = _prepare_conv_bn(p['conv1'], stride, 1)
    a2, r2 = _prepare_conv_bn(p['conv2'], 1, 1)
    arch = {'conv1': a1, 'conv2': a2, 'downsample': None}
    arr = {'conv1': r1, 'conv2': r2}
    if 'downsample' in p:
        ad, rd = _prepare_conv_bn(p['downsample'], stride, 0)
        arch['downsample'] = ad
        arr['downsample'] = rd
    return arch, arr


def prepare_resnet(raw, num_classes):
    arch = {'stages': [], 'num_classes': num_classes}
    arr = {'stages': []}
    arch['stem'], arr['stem'] = _prepare_conv_bn(raw['stem'], stride=2, pad=3)
    for stage_blocks, stride in zip(raw['stages'], STAGE_STRIDES):
        sa, sr = [], []
        for bi, bp in enumerate(stage_blocks):
            a, r = _prepare_block(bp, stride if bi == 0 else 1)
            sa.append(a)
            sr.append(r)
        arch['stages'].append(sa)
        arr['stages'].append(sr)
    feat = raw['fc_w'].shape[0]
    feat_pad = _round_up(feat, LANE)
    nc_pad = _round_up(num_classes, LANE)
    arr['fc_w'] = jnp.pad(raw['fc_w'],
                          ((0, feat_pad - feat), (0, nc_pad - num_classes))
                          ).astype(jnp.bfloat16)
    arr['fc_scale'] = jnp.ones((1, nc_pad), jnp.float32)
    arr['fc_shift'] = jnp.pad(raw['fc_b'],
                              ((0, 0), (0, nc_pad - num_classes))).astype(jnp.float32)
    return arch, arr


# ------------------------- KDModel -------------------------

class KDModelPallas:
    """teacher=ResNet34-style ([3,4,6,3]), student=ResNet18-style ([2,2,2,2]).

    forward(x) -> (tea_out, stu_out); teacher params are frozen in PyTorch
    (requires_grad=False), which does not change the forward computation.
    """

    def __init__(self, key, num_classes=10, base_width=8):
        kt, ks = jax.random.split(key)
        raw_t = make_resnet_params(kt, (3, 4, 6, 3), base_width, num_classes)
        raw_s = make_resnet_params(ks, (2, 2, 2, 2), base_width, num_classes)
        t_arch, self.t_arr = prepare_resnet(raw_t, num_classes)
        s_arch, self.s_arr = prepare_resnet(raw_s, num_classes)
        self.t_arch, self.s_arch = t_arch, s_arch

        def _forward(t_arr, s_arr, x_nchw):
            x = jnp.transpose(x_nchw, (0, 2, 3, 1))  # NCHW -> NHWC
            tea_out = resnet_forward(t_arch, t_arr, x)
            stu_out = resnet_forward(s_arch, s_arr, x)
            return tea_out, stu_out

        self._fwd = jax.jit(_forward)

    def __call__(self, x_nchw):
        return self._fwd(self.t_arr, self.s_arr, x_nchw)


if __name__ == "__main__":
    key = jax.random.PRNGKey(0)
    pkey, xkey = jax.random.split(key)

    num_classes = 10
    model = KDModelPallas(pkey, num_classes=num_classes, base_width=8)

    # PyTorch-style NCHW input, small shapes.
    x = jax.random.normal(xkey, (2, 3, 32, 32), jnp.float32)

    tea_out, stu_out = model(x)
    jax.block_until_ready((tea_out, stu_out))

    assert tea_out.shape == (2, num_classes), tea_out.shape
    assert stu_out.shape == (2, num_classes), stu_out.shape
    assert bool(jnp.all(jnp.isfinite(tea_out))) and bool(jnp.all(jnp.isfinite(stu_out)))
    print("KERNEL_OK")
</pallas_src>

<mosaic_0001>
module attributes {stable_mosaic.version = 11 : i64} {
  func.func @_mm_bn_kernel(%arg0: i32, %arg1: memref<256x147xbf16, #tpu.memory_space<vmem>>, %arg2: memref<147x128xbf16, #tpu.memory_space<vmem>>, %arg3: memref<1x128xf32, #tpu.memory_space<vmem>>, %arg4: memref<1x128xf32, #tpu.memory_space<vmem>>, %arg5: memref<256x128xf32, #tpu.memory_space<vmem>>) attributes {dimension_semantics = [#tpu.dimension_semantics<parallel>], iteration_bounds = array<i64: 2>, scalar_prefetch = 0 : i64, scratch_operands = 0 : i64, tpu.core_type = #tpu.core_type<tc>, window_params = [{transform_indices = @transform_0, window_bounds = array<i64: 256, 147>}, {pipeline_mode = #tpu.pipeline_mode<synchronous>, transform_indices = @transform_1, window_bounds = array<i64: 147, 128>}, {pipeline_mode = #tpu.pipeline_mode<synchronous>, transform_indices = @transform_2, window_bounds = array<i64: 1, 128>}, {pipeline_mode = #tpu.pipeline_mode<synchronous>, transform_indices = @transform_3, window_bounds = array<i64: 1, 128>}, {transform_indices = @transform_4, window_bounds = array<i64: 256, 128>}]} {
    %c0 = arith.constant 0 : index
    %c0_0 = arith.constant 0 : index
    %0 = vector.load %arg1[%c0, %c0_0] : memref<256x147xbf16, #tpu.memory_space<vmem>>, vector<256x147xbf16>
    %c0_1 = arith.constant 0 : index
    %c0_2 = arith.constant 0 : index
    %1 = vector.load %arg2[%c0_1, %c0_2] : memref<147x128xbf16, #tpu.memory_space<vmem>>, vector<147x128xbf16>
    %cst = arith.constant dense<0.000000e+00> : vector<256x128xf32>
    %2 = tpu.matmul %0, %1, %cst {dimension_numbers = #tpu.dot_dimension_numbers<[1], [0], [0], [1], [0, 0, 1, 1], [], []>} : vector<256x147xbf16>, vector<147x128xbf16>, vector<256x128xf32> -> vector<256x128xf32>
    %c0_3 = arith.constant 0 : index
    %c0_4 = arith.constant 0 : index
    %3 = vector.load %arg3[%c0_3, %c0_4] : memref<1x128xf32, #tpu.memory_space<vmem>>, vector<1x128xf32>
    %4 = vector.broadcast %3 : vector<1x128xf32> to vector<256x128xf32>
    %5 = arith.mulf %2, %4 : vector<256x128xf32>
    %c0_5 = arith.constant 0 : index
    %c0_6 = arith.constant 0 : index
    %6 = vector.load %arg4[%c0_5, %c0_6] : memref<1x128xf32, #tpu.memory_space<vmem>>, vector<1x128xf32>
    %7 = vector.broadcast %6 : vector<1x128xf32> to vector<256x128xf32>
    %8 = arith.addf %5, %7 : vector<256x128xf32>
    %cst_7 = arith.constant 0.000000e+00 : f32
    %9 = vector.broadcast %cst_7 : f32 to vector<256x128xf32>
    %10 = arith.maximumf %8, %9 : vector<256x128xf32>
    %c0_8 = arith.constant 0 : index
    %c0_9 = arith.constant 0 : index
    %11 = vector.load %arg5[%c0_8, %c0_9] : memref<256x128xf32, #tpu.memory_space<vmem>>, vector<256x128xf32>
    tpu.vector_store %arg5[%c0_8, %c0_9], %10 {strides = array<i32>} : memref<256x128xf32, #tpu.memory_space<vmem>>, vector<256x128xf32>,
    return
  }
  func.func @transform_0(%arg0: i32) -> (i32, i32) {
    %c0_i32 = arith.constant 0 : i32
    %c0_i32_0 = arith.constant 0 : i32
    return %arg0, %c0_i32 : i32, i32
  }
  func.func @transform_1(%arg0: i32) -> (i32, i32) {
    %c0_i32 = arith.constant 0 : i32
    %c0_i32_0 = arith.constant 0 : i32
    %c0_i32_1 = arith.constant 0 : i32
    return %c0_i32, %c0_i32_0 : i32, i32
  }
  func.func @transform_2(%arg0: i32) -> (i32, i32) {
    %c0_i32 = arith.constant 0 : i32
    %c0_i32_0 = arith.constant 0 : i32
    %c0_i32_1 = arith.constant 0 : i32
    return %c0_i32, %c0_i32_0 : i32, i32
  }
  func.func @transform_3(%arg0: i32) -> (i32, i32) {
    %c0_i32 = arith.constant 0 : i32
    %c0_i32_0 = arith.constant 0 : i32
    %c0_i32_1 = arith.constant 0 : i32
    return %c0_i32, %c0_i32_0 : i32, i32
  }
  func.func @transform_4(%arg0: i32) -> (i32, i32) {
    %c0_i32 = arith.constant 0 : i32
    %c0_i32_0 = arith.constant 0 : i32
    return %arg0, %c0_i32 : i32, i32
  }
}

module attributes {stable_mosaic.version = 11 : i64} {
  func.func @_max_reduce_kernel(%arg0: i32, %arg1: memref<9x128x128xf32, #tpu.memory_space<vmem>>, %arg2: memref<128x128xf32, #tpu.memory_space<vmem>>) attributes {dimension_semantics = [#tpu.dimension_semantics<parallel>], iteration_bounds = array<i64: 1>, scalar_prefetch = 0 : i64, scratch_operands = 0 : i64, tpu.core_type = #tpu.core_type<tc>, window_params = [{transform_indices = @transform_0, window_bounds = array<i64: 9, 128, 128>}, {transform_indices = @transform_1, window_bounds = array<i64: 128, 128>}]} {
    %c0 = arith.constant 0 : index
    %c0_0 = arith.constant 0 : index
    %c0_1 = arith.constant 0 : index
    %0 = vector.load %arg1[%c0, %c0_0, %c0_1] : memref<9x128x128xf32, #tpu.memory_space<vmem>>, vector<9x128x128xf32>
    %cst = arith.constant dense<0xFF800000> : vector<128x128xf32>
    %1 = vector.multi_reduction <maximumf>, %0, %cst [0] : vector<9x128x128xf32> to vector<128x128xf32>
    %c0_2 = arith.constant 0 : index
    %c0_3 = arith.constant 0 : index
    %2 = vector.load %arg2[%c0_2, %c0_3] : memref<128x128xf32, #tpu.memory_space<vmem>>, vector<128x128xf32>
    tpu.vector_store %arg2[%c0_2, %c0_3], %1 {strides = array<i32>} : memref<128x128xf32, #tpu.memory_space<vmem>>, vector<128x128xf32>,
    return
  }
  func.func @transform_0(%arg0: i32) -> (i32, i32, i32) {
    %c0_i32 = arith.constant 0 : i32
    %c0_i32_0 = arith.constant 0 : i32
    %c0_i32_1 = arith.constant 0 : i32
    return %c0_i32, %arg0, %c0_i32_0 : i32, i32, i32
  }
  func.func @transform_1(%arg0: i32) -> (i32, i32) {
    %c0_i32 = arith.constant 0 : i32
    %c0_i32_0 = arith.constant 0 : i32
    return %arg0, %c0_i32 : i32, i32
  }
}

module attributes {stable_mosaic.version = 11 : i64} {
  func.func @_mm_bn_kernel(%arg0: i32, %arg1: memref<128x72xbf16, #tpu.memory_space<vmem>>, %arg2: memref<72x128xbf16, #tpu.memory_space<vmem>>, %arg3: memref<1x128xf32, #tpu.memory_space<vmem>>, %arg4: memref<1x128xf32, #tpu.memory_space<vmem>>, %arg5: memref<128x128xf32, #tpu.memory_space<vmem>>) attributes {dimension_semantics = [#tpu.dimension_semantics<parallel>], iteration_bounds = array<i64: 1>, scalar_prefetch = 0 : i64, scratch_operands = 0 : i64, tpu.core_type = #tpu.core_type<tc>, window_params = [{transform_indices = @transform_0, window_bounds = array<i64: 128, 72>}, {pipeline_mode = #tpu.pipeline_mode<synchronous>, transform_indices = @transform_1, window_bounds = array<i64: 72, 128>}, {pipeline_mode = #tpu.pipeline_mode<synchronous>, transform_indices = @transform_2, window_bounds = array<i64: 1, 128>}, {pipeline_mode = #tpu.pipeline_mode<synchronous>, transform_indices = @transform_3, window_bounds = array<i64: 1, 128>}, {transform_indices = @transform_4, window_bounds = array<i64: 128, 128>}]} {
    %c0 = arith.constant 0 : index
    %c0_0 = arith.constant 0 : index
    %0 = vector.load %arg1[%c0, %c0_0] : memref<128x72xbf16, #tpu.memory_space<vmem>>, vector<128x72xbf16>
    %c0_1 = arith.constant 0 : index
    %c0_2 = arith.constant 0 : index
    %1 = vector.load %arg2[%c0_1, %c0_2] : memref<72x128xbf16, #tpu.memory_space<vmem>>, vector<72x128xbf16>
    %cst = arith.constant dense<0.000000e+00> : vector<128x128xf32>
    %2 = tpu.matmul %0, %1, %cst {dimension_numbers = #tpu.dot_dimension_numbers<[1], [0], [0], [1], [0, 0, 1, 1], [], []>} : vector<128x72xbf16>, vector<72x128xbf16>, vector<128x128xf32> -> vector<128x128xf32>
    %c0_3 = arith.constant 0 : index
    %c0_4 = arith.constant 0 : index
    %3 = vector.load %arg3[%c0_3, %c0_4] : memref<1x128xf32, #tpu.memory_space<vmem>>, vector<1x128xf32>
    %4 = vector.broadcast %3 : vector<1x128xf32> to vector<128x128xf32>
    %5 = arith.mulf %2, %4 : vector<128x128xf32>
    %c0_5 = arith.constant 0 : index
    %c0_6 = arith.constant 0 : index
    %6 = vector.load %arg4[%c0_5, %c0_6] : memref<1x128xf32, #tpu.memory_space<vmem>>, vector<1x128xf32>
    %7 = vector.broadcast %6 : vector<1x128xf32> to vector<128x128xf32>
    %8 = arith.addf %5, %7 : vector<128x128xf32>
    %cst_7 = arith.constant 0.000000e+00 : f32
    %9 = vector.broadcast %cst_7 : f32 to vector<128x128xf32>
    %10 = arith.maximumf %8, %9 : vector<128x128xf32>
    %c0_8 = arith.constant 0 : index
    %c0_9 = arith.constant 0 : index
    %11 = vector.load %arg5[%c0_8, %c0_9] : memref<128x128xf32, #tpu.memory_space<vmem>>, vector<128x128xf32>
    tpu.vector_store %arg5[%c0_8, %c0_9], %10 {strides = array<i32>} : memref<128x128xf32, #tpu.memory_space<vmem>>, vector<128x128xf32>,
    return
  }
  func.func @transform_0(%arg0: i32) -> (i32, i32) {
    %c0_i32 = arith.constant 0 : i32
    %c0_i32_0 = arith.constant 0 : i32
    return %arg0, %c0_i32 : i32, i32
  }
  func.func @transform_1(%arg0: i32) -> (i32, i32) {
    %c0_i32 = arith.constant 0 : i32
    %c0_i32_0 = arith.constant 0 : i32
    %c0_i32_1 = arith.constant 0 : i32
    return %c0_i32, %c0_i32_0 : i32, i32
  }
  func.func @transform_2(%arg0: i32) -> (i32, i32) {
    %c0_i32 = arith.constant 0 : i32
    %c0_i32_0 = arith.constant 0 : i32
    %c0_i32_1 = arith.constant 0 : i32
    return %c0_i32, %c0_i32_0 : i32, i32
  }
  func.func @transform_3(%arg0: i32) -> (i32, i32) {
    %c0_i32 = arith.constant 0 : i32
    %c0_i32_0 = arith.constant 0 : i32
    %c0_i32_1 = arith.constant 0 : i32
    return %c0_i32, %c0_i32_0 : i32, i32
  }
  func.func @transform_4(%arg0: i32) -> (i32, i32) {
    %c0_i32 = arith.constant 0 : i32
    %c0_i32_0 = arith.constant 0 : i32
    return %arg0, %c0_i32 : i32, i32
  }
}

module attributes {stable_mosaic.version = 11 : i64} {
  func.func @_mm_bn_res_kernel(%arg0: i32, %arg1: memref<128x72xbf16, #tpu.memory_space<vmem>>, %arg2: memref<72x128xbf16, #tpu.memory_space<vmem>>, %arg3: memref<1x128xf32, #tpu.memory_space<vmem>>, %arg4: memref<1x128xf32, #tpu.memory_space<vmem>>, %arg5: memref<128x128xf32, #tpu.memory_space<vmem>>, %arg6: memref<128x128xf32, #tpu.memory_space<vmem>>) attributes {dimension_semantics = [#tpu.dimension_semantics<parallel>], iteration_bounds = array<i64: 1>, scalar_prefetch = 0 : i64, scratch_operands = 0 : i64, tpu.core_type = #tpu.core_type<tc>, window_params = [{transform_indices = @transform_0, window_bounds = array<i64: 128, 72>}, {pipeline_mode = #tpu.pipeline_mode<synchronous>, transform_indices = @transform_1, window_bounds = array<i64: 72, 128>}, {pipeline_mode = #tpu.pipeline_mode<synchronous>, transform_indices = @transform_2, window_bounds = array<i64: 1, 128>}, {pipeline_mode = #tpu.pipeline_mode<synchronous>, transform_indices = @transform_3, window_bounds = array<i64: 1, 128>}, {transform_indices = @transform_4, window_bounds = array<i64: 128, 128>}, {transform_indices = @transform_5, window_bounds = array<i64: 128, 128>}]} {
    %c0 = arith.constant 0 : index
    %c0_0 = arith.constant 0 : index
    %0 = vector.load %arg1[%c0, %c0_0] : memref<128x72xbf16, #tpu.memory_space<vmem>>, vector<128x72xbf16>
    %c0_1 = arith.constant 0 : index
    %c0_2 = arith.constant 0 : index
    %1 = vector.load %arg2[%c0_1, %c0_2] : memref<72x128xbf16, #tpu.memory_space<vmem>>, vector<72x128xbf16>
    %cst = arith.constant dense<0.000000e+00> : vector<128x128xf32>
    %2 = tpu.matmul %0, %1, %cst {dimension_numbers = #tpu.dot_dimension_numbers<[1], [0], [0], [1], [0, 0, 1, 1], [], []>} : vector<128x72xbf16>, vector<72x128xbf16>, vector<128x128xf32> -> vector<128x128xf32>
    %c0_3 = arith.constant 0 : index
    %c0_4 = arith.constant 0 : index
    %3 = vector.load %arg3[%c0_3, %c0_4] : memref<1x128xf32, #tpu.memory_space<vmem>>, vector<1x128xf32>
    %4 = vector.broadcast %3 : vector<1x128xf32> to vector<128x128xf32>
    %5 = arith.mulf %2, %4 : vector<128x128xf32>
    %c0_5 = arith.constant 0 : index
    %c0_6 = arith.constant 0 : index
    %6 = vector.load %arg4[%c0_5, %c0_6] : memref<1x128xf32, #tpu.memory_space<vmem>>, vector<1x128xf32>
    %7 = vector.broadcast %6 : vector<1x128xf32> to vector<128x128xf32>
    %8 = arith.addf %5, %7 : vector<128x128xf32>
    %c0_7 = arith.constant 0 : index
    %c0_8 = arith.constant 0 : index
    %9 = vector.load %arg5[%c0_7, %c0_8] : memref<128x128xf32, #tpu.memory_space<vmem>>, vector<128x128xf32>
    %10 = arith.addf %8, %9 : vector<128x128xf32>
    %cst_9 = arith.constant 0.000000e+00 : f32
    %11 = vector.broadcast %cst_9 : f32 to vector<128x128xf32>
    %12 = arith.maximumf %10, %11 : vector<128x128xf32>
    %c0_10 = arith.constant 0 : index
    %c0_11 = arith.constant 0 : index
    %13 = vector.load %arg6[%c0_10, %c0_11] : memref<128x128xf32, #tpu.memory_space<vmem>>, vector<128x128xf32>
    tpu.vector_store %arg6[%c0_10, %c0_11], %12 {strides = array<i32>} : memref<128x128xf32, #tpu.memory_space<vmem>>, vector<128x128xf32>,
    return
  }
  func.func @transform_0(%arg0: i32) -> (i32, i32) {
    %c0_i32 = arith.constant 0 : i32
    %c0_i32_0 = arith.constant 0 : i32
    return %arg0, %c0_i32 : i32, i32
  }
  func.func @transform_1(%arg0: i32) -> (i32, i32) {
    %c0_i32 = arith.constant 0 : i32
    %c0_i32_0 = arith.constant 0 : i32
    %c0_i32_1 = arith.constant 0 : i32
    return %c0_i32, %c0_i32_0 : i32, i32
  }
  func.func @transform_2(%arg0: i32) -> (i32, i32) {
    %c0_i32 = arith.constant 0 : i32
    %c0_i32_0 = arith.constant 0 : i32
    %c0_i32_1 = arith.constant 0 : i32
    return %c0_i32, %c0_i32_0 : i32, i32
  }
  func.func @transform_3(%arg0: i32) -> (i32, i32) {
    %c0_i32 = arith.constant 0 : i32
    %c0_i32_0 = arith.constant 0 : i32
    %c0_i32_1 = arith.constant 0 : i32
    return %c0_i32, %c0_i32_0 : i32, i32
  }
  func.func @transform_4(%arg0: i32) -> (i32, i32) {
    %c0_i32 = arith.constant 0 : i32
    %c0_i32_0 = arith.constant 0 : i32
    return %arg0, %c0_i32 : i32, i32
  }
  func.func @transform_5(%arg0: i32) -> (i32, i32) {
    %c0_i32 = arith.constant 0 : i32
    %c0_i32_0 = arith.constant 0 : i32
    return %arg0, %c0_i32 : i32, i32
  }
}

module attributes {stable_mosaic.version = 11 : i64} {
  func.func @_mm_bn_kernel(%arg0: i32, %arg1: memref<32x72xbf16, #tpu.memory_space<vmem>>, %arg2: memref<72x128xbf16, #tpu.memory_space<vmem>>, %arg3: memref<1x128xf32, #tpu.memory_space<vmem>>, %arg4: memref<1x128xf32, #tpu.memory_space<vmem>>, %arg5: memref<32x128xf32, #tpu.memory_space<vmem>>) attributes {dimension_semantics = [#tpu.dimension_semantics<parallel>], iteration_bounds = array<i64: 1>, scalar_prefetch = 0 : i64, scratch_operands = 0 : i64, tpu.core_type = #tpu.core_type<tc>, window_params = [{transform_indices = @transform_0, window_bounds = array<i64: 32, 72>}, {pipeline_mode = #tpu.pipeline_mode<synchronous>, transform_indices = @transform_1, window_bounds = array<i64: 72, 128>}, {pipeline_mode = #tpu.pipeline_mode<synchronous>, transform_indices = @transform_2, window_bounds = array<i64: 1, 128>}, {pipeline_mode = #tpu.pipeline_mode<synchronous>, transform_indices = @transform_3, window_bounds = array<i64: 1, 128>}, {transform_indices = @transform_4, window_bounds = array<i64: 32, 128>}]} {
    %c0 = arith.constant 0 : index
    %c0_0 = arith.constant 0 : index
    %0 = vector.load %arg1[%c0, %c0_0] : memref<32x72xbf16, #tpu.memory_space<vmem>>, vector<32x72xbf16>
    %c0_1 = arith.constant 0 : index
    %c0_2 = arith.constant 0 : index
    %1 = vector.load %arg2[%c0_1, %c0_2] : memref<72x128xbf16, #tpu.memory_space<vmem>>, vector<72x128xbf16>
    %cst = arith.constant dense<0.000000e+00> : vector<32x128xf32>
    %2 = tpu.matmul %0, %1, %cst {dimension_numbers = #tpu.dot_dimension_numbers<[1], [0], [0], [1], [0, 0, 1, 1], [], []>} : vector<32x72xbf16>, vector<72x128xbf16>, vector<32x128xf32> -> vector<32x128xf32>
    %c0_3 = arith.constant 0 : index
    %c0_4 = arith.constant 0 : index
    %3 = vector.load %arg3[%c0_3, %c0_4] : memref<1x128xf32, #tpu.memory_space<vmem>>, vector<1x128xf32>
    %4 = vector.broadcast %3 : vector<1x128xf32> to vector<32x128xf32>
    %5 = arith.mulf %2, %4 : vector<32x128xf32>
    %c0_5 = arith.constant 0 : index
    %c0_6 = arith.constant 0 : index
    %6 = vector.load %arg4[%c0_5, %c0_6] : memref<1x128xf32, #tpu.memory_space<vmem>>, vector<1x128xf32>
    %7 = vector.broadcast %6 : vector<1x128xf32> to vector<32x128xf32>
    %8 = arith.addf %5, %7 : vector<32x128xf32>
    %cst_7 = arith.constant 0.000000e+00 : f32
    %9 = vector.broadcast %cst_7 : f32 to vector<32x128xf32>
    %10 = arith.maximumf %8, %9 : vector<32x128xf32>
    %c0_8 = arith.constant 0 : index
    %c0_9 = arith.constant 0 : index
    %11 = vector.load %arg5[%c0_8, %c0_9] : memref<32x128xf32, #tpu.memory_space<vmem>>, vector<32x128xf32>
    tpu.vector_store %arg5[%c0_8, %c0_9], %10 {strides = array<i32>} : memref<32x128xf32, #tpu.memory_space<vmem>>, vector<32x128xf32>,
    return
  }
  func.func @transform_0(%arg0: i32) -> (i32, i32) {
    %c0_i32 = arith.constant 0 : i32
    %c0_i32_0 = arith.constant 0 : i32
    return %arg0, %c0_i32 : i32, i32
  }
  func.func @transform_1(%arg0: i32) -> (i32, i32) {
    %c0_i32 = arith.constant 0 : i32
    %c0_i32_0 = arith.constant 0 : i32
    %c0_i32_1 = arith.constant 0 : i32
    return %c0_i32, %c0_i32_0 : i32, i32
  }
  func.func @transform_2(%arg0: i32) -> (i32, i32) {
    %c0_i32 = arith.constant 0 : i32
    %c0_i32_0 = arith.constant 0 : i32
    %c0_i32_1 = arith.constant 0 : i32
    return %c0_i32, %c0_i32_0 : i32, i32
  }
  func.func @transform_3(%arg0: i32) -> (i32, i32) {
    %c0_i32 = arith.constant 0 : i32
    %c0_i32_0 = arith.constant 0 : i32
    %c0_i32_1 = arith.constant 0 : i32
    return %c0_i32, %c0_i32_0 : i32, i32
  }
  func.func @transform_4(%arg0: i32) -> (i32, i32) {
    %c0_i32 = arith.constant 0 : i32
    %c0_i32_0 = arith.constant 0 : i32
    return %arg0, %c0_i32 : i32, i32
  }
}

module attributes {stable_mosaic.version = 11 : i64} {
  func.func @_mm_bn_kernel(%arg0: i32, %arg1: memref<32x8xbf16, #tpu.memory_space<vmem>>, %arg2: memref<8x128xbf16, #tpu.memory_space<vmem>>, %arg3: memref<1x128xf32, #tpu.memory_space<vmem>>, %arg4: memref<1x128xf32, #tpu.memory_space<vmem>>, %arg5: memref<32x128xf32, #tpu.memory_space<vmem>>) attributes {dimension_semantics = [#tpu.dimension_semantics<parallel>], iteration_bounds = array<i64: 1>, scalar_prefetch = 0 : i64, scratch_operands = 0 : i64, tpu.core_type = #tpu.core_type<tc>, window_params = [{transform_indices = @transform_0, window_bounds = array<i64: 32, 8>}, {pipeline_mode = #tpu.pipeline_mode<synchronous>, transform_indices = @transform_1, window_bounds = array<i64: 8, 128>}, {pipeline_mode = #tpu.pipeline_mode<synchronous>, transform_indices = @transform_2, window_bounds = array<i64: 1, 128>}, {pipeline_mode = #tpu.pipeline_mode<synchronous>, transform_indices = @transform_3, window_bounds = array<i64: 1, 128>}, {transform_indices = @transform_4, window_bounds = array<i64: 32, 128>}]} {
    %c0 = arith.constant 0 : index
    %c0_0 = arith.constant 0 : index
    %0 = vector.load %arg1[%c0, %c0_0] : memref<32x8xbf16, #tpu.memory_space<vmem>>, vector<32x8xbf16>
    %c0_1 = arith.constant 0 : index
    %c0_2 = arith.constant 0 : index
    %1 = vector.load %arg2[%c0_1, %c0_2] : memref<8x128xbf16, #tpu.memory_space<vmem>>, vector<8x128xbf16>
    %cst = arith.constant dense<0.000000e+00> : vector<32x128xf32>
    %2 = tpu.matmul %0, %1, %cst {dimension_numbers = #tpu.dot_dimension_numbers<[1], [0], [0], [1], [0, 0, 1, 1], [], []>} : vector<32x8xbf16>, vector<8x128xbf16>, vector<32x128xf32> -> vector<32x128xf32>
    %c0_3 = arith.constant 0 : index
    %c0_4 = arith.constant 0 : index
    %3 = vector.load %arg3[%c0_3, %c0_4] : memref<1x128xf32, #tpu.memory_space<vmem>>, vector<1x128xf32>
    %4 = vector.broadcast %3 : vector<1x128xf32> to vector<32x128xf32>
    %5 = arith.mulf %2, %4 : vector<32x128xf32>
    %c0_5 = arith.constant 0 : index
    %c0_6 = arith.constant 0 : index
    %6 = vector.load %arg4[%c0_5, %c0_6] : memref<1x128xf32, #tpu.memory_space<vmem>>, vector<1x128xf32>
    %7 = vector.broadcast %6 : vector<1x128xf32> to vector<32x128xf32>
    %8 = arith.addf %5, %7 : vector<32x128xf32>
    %c0_7 = arith.constant 0 : index
    %c0_8 = arith.constant 0 : index
    %9 = vector.load %arg5[%c0_7, %c0_8] : memref<32x128xf32, #tpu.memory_space<vmem>>, vector<32x128xf32>
    tpu.vector_store %arg5[%c0_7, %c0_8], %8 {strides = array<i32>} : memref<32x128xf32, #tpu.memory_space<vmem>>, vector<32x128xf32>,
    return
  }
  func.func @transform_0(%arg0: i32) -> (i32, i32) {
    %c0_i32 = arith.constant 0 : i32
    %c0_i32_0 = arith.constant 0 : i32
    return %arg0, %c0_i32 : i32, i32
  }
  func.func @transform_1(%arg0: i32) -> (i32, i32) {
    %c0_i32 = arith.constant 0 : i32
    %c0_i32_0 = arith.constant 0 : i32
    %c0_i32_1 = arith.constant 0 : i32
    return %c0_i32, %c0_i32_0 : i32, i32
  }
  func.func @transform_2(%arg0: i32) -> (i32, i32) {
    %c0_i32 = arith.constant 0 : i32
    %c0_i32_0 = arith.constant 0 : i32
    %c0_i32_1 = arith.constant 0 : i32
    return %c0_i32, %c0_i32_0 : i32, i32
  }
  func.func @transform_3(%arg0: i32) -> (i32, i32) {
    %c0_i32 = arith.constant 0 : i32
    %c0_i32_0 = arith.constant 0 : i32
    %c0_i32_1 = arith.constant 0 : i32
    return %c0_i32, %c0_i32_0 : i32, i32
  }
  func.func @transform_4(%arg0: i32) -> (i32, i32) {
    %c0_i32 = arith.constant 0 : i32
    %c0_i32_0 = arith.constant 0 : i32
    return %arg0, %c0_i32 : i32, i32
  }
}

module attributes {stable_mosaic.version = 11 : i64} {
  func.func @_mm_bn_res_kernel(%arg0: i32, %arg1: memref<32x144xbf16, #tpu.memory_space<vmem>>, %arg2: memref<144x128xbf16, #tpu.memory_space<vmem>>, %arg3: memref<1x128xf32, #tpu.memory_space<vmem>>, %arg4: memref<1x128xf32, #tpu.memory_space<vmem>>, %arg5: memref<32x128xf32, #tpu.memory_space<vmem>>, %arg6: memref<32x128xf32, #tpu.memory_space<vmem>>) attributes {dimension_semantics = [#tpu.dimension_semantics<parallel>], iteration_bounds = array<i64: 1>, scalar_prefetch = 0 : i64, scratch_operands = 0 : i64, tpu.core_type = #tpu.core_type<tc>, window_params = [{transform_indices = @transform_0, window_bounds = array<i64: 32, 144>}, {pipeline_mode = #tpu.pipeline_mode<synchronous>, transform_indices = @transform_1, window_bounds = array<i64: 144, 128>}, {pipeline_mode = #tpu.pipeline_mode<synchronous>, transform_indices = @transform_2, window_bounds = array<i64: 1, 128>}, {pipeline_mode = #tpu.pipeline_mode<synchronous>, transform_indices = @transform_3, window_bounds = array<i64: 1, 128>}, {transform_indices = @transform_4, window_bounds = array<i64: 32, 128>}, {transform_indices = @transform_5, window_bounds = array<i64: 32, 128>}]} {
    %c0 = arith.constant 0 : index
    %c0_0 = arith.constant 0 : index
    %0 = vector.load %arg1[%c0, %c0_0] : memref<32x144xbf16, #tpu.memory_space<vmem>>, vector<32x144xbf16>
    %c0_1 = arith.constant 0 : index
    %c0_2 = arith.constant 0 : index
    %1 = vector.load %arg2[%c0_1, %c0_2] : memref<144x128xbf16, #tpu.memory_space<vmem>>, vector<144x128xbf16>
    %cst = arith.constant dense<0.000000e+00> : vector<32x128xf32>
    %2 = tpu.matmul %0, %1, %cst {dimension_numbers = #tpu.dot_dimension_numbers<[1], [0], [0], [1], [0, 0, 1, 1], [], []>} : vector<32x144xbf16>, vector<144x128xbf16>, vector<32x128xf32> -> vector<32x128xf32>
    %c0_3 = arith.constant 0 : index
    %c0_4 = arith.constant 0 : index
    %3 = vector.load %arg3[%c0_3, %c0_4] : memref<1x128xf32, #tpu.memory_space<vmem>>, vector<1x128xf32>
    %4 = vector.broadcast %3 : vector<1x128xf32> to vector<32x128xf32>
    %5 = arith.mulf %2, %4 : vector<32x128xf32>
    %c0_5 = arith.constant 0 : index
    %c0_6 = arith.constant 0 : index
    %6 = vector.load %arg4[%c0_5, %c0_6] : memref<1x128xf32, #tpu.memory_space<vmem>>, vector<1x128xf32>
    %7 = vector.broadcast %6 : vector<1x128xf32> to vector<32x128xf32>
    %8 = arith.addf %5, %7 : vector<32x128xf32>
    %c0_7 = arith.constant 0 : index
    %c0_8 = arith.constant 0 : index
    %9 = vector.load %arg5[%c0_7, %c0_8] : memref<32x128xf32, #tpu.memory_space<vmem>>, vector<32x128xf32>
    %10 = arith.addf %8, %9 : vector<32x128xf32>
    %cst_9 = arith.constant 0.000000e+00 : f32
    %11 = vector.broadcast %cst_9 : f32 to vector<32x128xf32>
    %12 = arith.maximumf %10, %11 : vector<32x128xf32>
    %c0_10 = arith.constant 0 : index
    %c0_11 = arith.constant 0 : index
    %13 = vector.load %arg6[%c0_10, %c0_11] : memref<32x128xf32, #tpu.memory_space<vmem>>, vector<32x128xf32>
    tpu.vector_store %arg6[%c0_10, %c0_11], %12 {strides = array<i32>} : memref<32x128xf32, #tpu.memory_space<vmem>>, vector<32x128xf32>,
    return
  }
  func.func @transform_0(%arg0: i32) -> (i32, i32) {
    %c0_i32 = arith.constant 0 : i32
    %c0_i32_0 = arith.constant 0 : i32
    return %arg0, %c0_i32 : i32, i32
  }
  func.func @transform_1(%arg0: i32) -> (i32, i32) {
    %c0_i32 = arith.constant 0 : i32
    %c0_i32_0 = arith.constant 0 : i32
    %c0_i32_1 = arith.constant 0 : i32
    return %c0_i32, %c0_i32_0 : i32, i32
  }
  func.func @transform_2(%arg0: i32) -> (i32, i32) {
    %c0_i32 = arith.constant 0 : i32
    %c0_i32_0 = arith.constant 0 : i32
    %c0_i32_1 = arith.constant 0 : i32
    return %c0_i32, %c0_i32_0 : i32, i32
  }
  func.func @transform_3(%arg0: i32) -> (i32, i32) {
    %c0_i32 = arith.constant 0 : i32
    %c0_i32_0 = arith.constant 0 : i32
    %c0_i32_1 = arith.constant 0 : i32
    return %c0_i32, %c0_i32_0 : i32, i32
  }
  func.func @transform_4(%arg0: i32) -> (i32, i32) {
    %c0_i32 = arith.constant 0 : i32
    %c0_i32_0 = arith.constant 0 : i32
    return %arg0, %c0_i32 : i32, i32
  }
  func.func @transform_5(%arg0: i32) -> (i32, i32) {
    %c0_i32 = arith.constant 0 : i32
    %c0_i32_0 = arith.constant 0 : i32
    return %arg0, %c0_i32 : i32, i32
  }
}

module attributes {stable_mosaic.version = 11 : i64} {
  func.func @_mm_bn_kernel(%arg0: i32, %arg1: memref<32x144xbf16, #tpu.memory_space<vmem>>, %arg2: memref<144x128xbf16, #tpu.memory_space<vmem>>, %arg3: memref<1x128xf32, #tpu.memory_space<vmem>>, %arg4: memref<1x128xf32, #tpu.memory_space<vmem>>, %arg5: memref<32x128xf32, #tpu.memory_space<vmem>>) attributes {dimension_semantics = [#tpu.dimension_semantics<parallel>], iteration_bounds = array<i64: 1>, scalar_prefetch = 0 : i64, scratch_operands = 0 : i64, tpu.core_type = #tpu.core_type<tc>, window_params = [{transform_indices = @transform_0, window_bounds = array<i64: 32, 144>}, {pipeline_mode = #tpu.pipeline_mode<synchronous>, transform_indices = @transform_1, window_bounds = array<i64: 144, 128>}, {pipeline_mode = #tpu.pipeline_mode<synchronous>, transform_indices = @transform_2, window_bounds = array<i64: 1, 128>}, {pipeline_mode = #tpu.pipeline_mode<synchronous>, transform_indices = @transform_3, window_bounds = array<i64: 1, 128>}, {transform_indices = @transform_4, window_bounds = array<i64: 32, 128>}]} {
    %c0 = arith.constant 0 : index
    %c0_0 = arith.constant 0 : index
    %0 = vector.load %arg1[%c0, %c0_0] : memref<32x144xbf16, #tpu.memory_space<vmem>>, vector<32x144xbf16>
    %c0_1 = arith.constant 0 : index
    %c0_2 = arith.constant 0 : index
    %1 = vector.load %arg2[%c0_1, %c0_2] : memref<144x128xbf16, #tpu.memory_space<vmem>>, vector<144x128xbf16>
    %cst = arith.constant dense<0.000000e+00> : vector<32x128xf32>
    %2 = tpu.matmul %0, %1, %cst {dimension_numbers = #tpu.dot_dimension_numbers<[1], [0], [0], [1], [0, 0, 1, 1], [], []>} : vector<32x144xbf16>, vector<144x128xbf16>, vector<32x128xf32> -> vector<32x128xf32>
    %c0_3 = arith.constant 0 : index
    %c0_4 = arith.constant 0 : index
    %3 = vector.load %arg3[%c0_3, %c0_4] : memref<1x128xf32, #tpu.memory_space<vmem>>, vector<1x128xf32>
    %4 = vector.broadcast %3 : vector<1x128xf32> to vector<32x128xf32>
    %5 = arith.mulf %2, %4 : vector<32x128xf32>
    %c0_5 = arith.constant 0 : index
    %c0_6 = arith.constant 0 : index
    %6 = vector.load %arg4[%c0_5, %c0_6] : memref<1x128xf32, #tpu.memory_space<vmem>>, vector<1x128xf32>
    %7 = vector.broadcast %6 : vector<1x128xf32> to vector<32x128xf32>
    %8 = arith.addf %5, %7 : vector<32x128xf32>
    %cst_7 = arith.constant 0.000000e+00 : f32
    %9 = vector.broadcast %cst_7 : f32 to vector<32x128xf32>
    %10 = arith.maximumf %8, %9 : vector<32x128xf32>
    %c0_8 = arith.constant 0 : index
    %c0_9 = arith.constant 0 : index
    %11 = vector.load %arg5[%c0_8, %c0_9] : memref<32x128xf32, #tpu.memory_space<vmem>>, vector<32x128xf32>
    tpu.vector_store %arg5[%c0_8, %c0_9], %10 {strides = array<i32>} : memref<32x128xf32, #tpu.memory_space<vmem>>, vector<32x128xf32>,
    return
  }
  func.func @transform_0(%arg0: i32) -> (i32, i32) {
    %c0_i32 = arith.constant 0 : i32
    %c0_i32_0 = arith.constant 0 : i32
    return %arg0, %c0_i32 : i32, i32
  }
  func.func @transform_1(%arg0: i32) -> (i32, i32) {
    %c0_i32 = arith.constant 0 : i32
    %c0_i32_0 = arith.constant 0 : i32
    %c0_i32_1 = arith.constant 0 : i32
    return %c0_i32, %c0_i32_0 : i32, i32
  }
  func.func @transform_2(%arg0: i32) -> (i32, i32) {
    %c0_i32 = arith.constant 0 : i32
    %c0_i32_0 = arith.constant 0 : i32
    %c0_i32_1 = arith.constant 0 : i32
    return %c0_i32, %c0_i32_0 : i32, i32
  }
  func.func @transform_3(%arg0: i32) -> (i32, i32) {
    %c0_i32 = arith.constant 0 : i32
    %c0_i32_0 = arith.constant 0 : i32
    %c0_i32_1 = arith.constant 0 : i32
    return %c0_i32, %c0_i32_0 : i32, i32
  }
  func.func @transform_4(%arg0: i32) -> (i32, i32) {
    %c0_i32 = arith.constant 0 : i32
    %c0_i32_0 = arith.constant 0 : i32
    return %arg0, %c0_i32 : i32, i32
  }
}

module attributes {stable_mosaic.version = 11 : i64} {
  func.func @_mm_bn_kernel(%arg0: i32, %arg1: memref<16x144xbf16, #tpu.memory_space<vmem>>, %arg2: memref<144x128xbf16, #tpu.memory_space<vmem>>, %arg3: memref<1x128xf32, #tpu.memory_space<vmem>>, %arg4: memref<1x128xf32, #tpu.memory_space<vmem>>, %arg5: memref<16x128xf32, #tpu.memory_space<vmem>>) attributes {dimension_semantics = [#tpu.dimension_semantics<parallel>], iteration_bounds = array<i64: 1>, scalar_prefetch = 0 : i64, scratch_operands = 0 : i64, tpu.core_type = #tpu.core_type<tc>, window_params = [{transform_indices = @transform_0, window_bounds = array<i64: 16, 144>}, {pipeline_mode = #tpu.pipeline_mode<synchronous>, transform_indices = @transform_1, window_bounds = array<i64: 144, 128>}, {pipeline_mode = #tpu.pipeline_mode<synchronous>, transform_indices = @transform_2, window_bounds = array<i64: 1, 128>}, {pipeline_mode = #tpu.pipeline_mode<synchronous>, transform_indices = @transform_3, window_bounds = array<i64: 1, 128>}, {transform_indices = @transform_4, window_bounds = array<i64: 16, 128>}]} {
    %c0 = arith.constant 0 : index
    %c0_0 = arith.constant 0 : index
    %0 = vector.load %arg1[%c0, %c0_0] : memref<16x144xbf16, #tpu.memory_space<vmem>>, vector<16x144xbf16>
    %c0_1 = arith.constant 0 : index
    %c0_2 = arith.constant 0 : index
    %1 = vector.load %arg2[%c0_1, %c0_2] : memref<144x128xbf16, #tpu.memory_space<vmem>>, vector<144x128xbf16>
    %cst = arith.constant dense<0.000000e+00> : vector<16x128xf32>
    %2 = tpu.matmul %0, %1, %cst {dimension_numbers = #tpu.dot_dimension_numbers<[1], [0], [0], [1], [0, 0, 1, 1], [], []>} : vector<16x144xbf16>, vector<144x128xbf16>, vector<16x128xf32> -> vector<16x128xf32>
    %c0_3 = arith.constant 0 : index
    %c0_4 = arith.constant 0 : index
    %3 = vector.load %arg3[%c0_3, %c0_4] : memref<1x128xf32, #tpu.memory_space<vmem>>, vector<1x128xf32>
    %4 = vector.broadcast %3 : vector<1x128xf32> to vector<16x128xf32>
    %5 = arith.mulf %2, %4 : vector<16x128xf32>
    %c0_5 = arith.constant 0 : index
    %c0_6 = arith.constant 0 : index
    %6 = vector.load %arg4[%c0_5, %c0_6] : memref<1x128xf32, #tpu.memory_space<vmem>>, vector<1x128xf32>
    %7 = vector.broadcast %6 : vector<1x128xf32> to vector<16x128xf32>
    %8 = arith.addf %5, %7 : vector<16x128xf32>
    %cst_7 = arith.constant 0.000000e+00 : f32
    %9 = vector.broadcast %cst_7 : f32 to vector<16x128xf32>
    %10 = arith.maximumf %8, %9 : vector<16x128xf32>
    %c0_8 = arith.constant 0 : index
    %c0_9 = arith.constant 0 : index
    %11 = vector.load %arg5[%c0_8, %c0_9] : memref<16x128xf32, #tpu.memory_space<vmem>>, vector<16x128xf32>
    tpu.vector_store %arg5[%c0_8, %c0_9], %10 {strides = array<i32>} : memref<16x128xf32, #tpu.memory_space<vmem>>, vector<16x128xf32>,
    return
  }
  func.func @transform_0(%arg0: i32) -> (i32, i32) {
    %c0_i32 = arith.constant 0 : i32
    %c0_i32_0 = arith.constant 0 : i32
    return %arg0, %c0_i32 : i32, i32
  }
  func.func @transform_1(%arg0: i32) -> (i32, i32) {
    %c0_i32 = arith.constant 0 : i32
    %c0_i32_0 = arith.constant 0 : i32
    %c0_i32_1 = arith.constant 0 : i32
    return %c0_i32, %c0_i32_0 : i32, i32
  }
  func.func @transform_2(%arg0: i32) -> (i32, i32) {
    %c0_i32 = arith.constant 0 : i32
    %c0_i32_0 = arith.constant 0 : i32
    %c0_i32_1 = arith.constant 0 : i32
    return %c0_i32, %c0_i32_0 : i32, i32
  }
  func.func @transform_3(%arg0: i32) -> (i32, i32) {
    %c0_i32 = arith.constant 0 : i32
    %c0_i32_0 = arith.constant 0 : i32
    %c0_i32_1 = arith.constant 0 : i32
    return %c0_i32, %c0_i32_0 : i32, i32
  }
  func.func @transform_4(%arg0: i32) -> (i32, i32) {
    %c0_i32 = arith.constant 0 : i32
    %c0_i32_0 = arith.constant 0 : i32
    return %arg0, %c0_i32 : i32, i32
  }
}

module attributes {stable_mosaic.version = 11 : i64} {
  func.func @_mm_bn_kernel(%arg0: i32, %arg1: memref<16x16xbf16, #tpu.memory_space<vmem>>, %arg2: memref<16x128xbf16, #tpu.memory_space<vmem>>, %arg3: memref<1x128xf32, #tpu.memory_space<vmem>>, %arg4: memref<1x128xf32, #tpu.memory_space<vmem>>, %arg5: memref<16x128xf32, #tpu.memory_space<vmem>>) attributes {dimension_semantics = [#tpu.dimension_semantics<parallel>], iteration_bounds = array<i64: 1>, scalar_prefetch = 0 : i64, scratch_operands = 0 : i64, tpu.core_type = #tpu.core_type<tc>, window_params = [{transform_indices = @transform_0, window_bounds = array<i64: 16, 16>}, {pipeline_mode = #tpu.pipeline_mode<synchronous>, transform_indices = @transform_1, window_bounds = array<i64: 16, 128>}, {pipeline_mode = #tpu.pipeline_mode<synchronous>, transform_indices = @transform_2, window_bounds = array<i64: 1, 128>}, {pipeline_mode = #tpu.pipeline_mode<synchronous>, transform_indices = @transform_3, window_bounds = array<i64: 1, 128>}, {transform_indices = @transform_4, window_bounds = array<i64: 16, 128>}]} {
    %c0 = arith.constant 0 : index
    %c0_0 = arith.constant 0 : index
    %0 = vector.load %arg1[%c0, %c0_0] : memref<16x16xbf16, #tpu.memory_space<vmem>>, vector<16x16xbf16>
    %c0_1 = arith.constant 0 : index
    %c0_2 = arith.constant 0 : index
    %1 = vector.load %arg2[%c0_1, %c0_2] : memref<16x128xbf16, #tpu.memory_space<vmem>>, vector<16x128xbf16>
    %cst = arith.constant dense<0.000000e+00> : vector<16x128xf32>
    %2 = tpu.matmul %0, %1, %cst {dimension_numbers = #tpu.dot_dimension_numbers<[1], [0], [0], [1], [0, 0, 1, 1], [], []>} : vector<16x16xbf16>, vector<16x128xbf16>, vector<16x128xf32> -> vector<16x128xf32>
    %c0_3 = arith.constant 0 : index
    %c0_4 = arith.constant 0 : index
    %3 = vector.load %arg3[%c0_3, %c0_4] : memref<1x128xf32, #tpu.memory_space<vmem>>, vector<1x128xf32>
    %4 = vector.broadcast %3 : vector<1x128xf32> to vector<16x128xf32>
    %5 = arith.mulf %2, %4 : vector<16x128xf32>
    %c0_5 = arith.constant 0 : index
    %c0_6 = arith.constant 0 : index
    %6 = vector.load %arg4[%c0_5, %c0_6] : memref<1x128xf32, #tpu.memory_space<vmem>>, vector<1x128xf32>
    %7 = vector.broadcast %6 : vector<1x128xf32> to vector<16x128xf32>
    %8 = arith.addf %5, %7 : vector<16x128xf32>
    %c0_7 = arith.constant 0 : index
    %c0_8 = arith.constant 0 : index
    %9 = vector.load %arg5[%c0_7, %c0_8] : memref<16x128xf32, #tpu.memory_space<vmem>>, vector<16x128xf32>
    tpu.vector_store %arg5[%c0_7, %c0_8], %8 {strides = array<i32>} : memref<16x128xf32, #tpu.memory_space<vmem>>, vector<16x128xf32>,
    return
  }
  func.func @transform_0(%arg0: i32) -> (i32, i32) {
    %c0_i32 = arith.constant 0 : i32
    %c0_i32_0 = arith.constant 0 : i32
    return %arg0, %c0_i32 : i32, i32
  }
  func.func @transform_1(%arg0: i32) -> (i32, i32) {
    %c0_i32 = arith.constant 0 : i32
    %c0_i32_0 = arith.constant 0 : i32
    %c0_i32_1 = arith.constant 0 : i32
    return %c0_i32, %c0_i32_0 : i32, i32
  }
  func.func @transform_2(%arg0: i32) -> (i32, i32) {
    %c0_i32 = arith.constant 0 : i32
    %c0_i32_0 = arith.constant 0 : i32
    %c0_i32_1 = arith.constant 0 : i32
    return %c0_i32, %c0_i32_0 : i32, i32
  }
  func.func @transform_3(%arg0: i32) -> (i32, i32) {
    %c0_i32 = arith.constant 0 : i32
    %c0_i32_0 = arith.constant 0 : i32
    %c0_i32_1 = arith.constant 0 : i32
    return %c0_i32, %c0_i32_0 : i32, i32
  }
  func.func @transform_4(%arg0: i32) -> (i32, i32) {
    %c0_i32 = arith.constant 0 : i32
    %c0_i32_0 = arith.constant 0 : i32
    return %arg0, %c0_i32 : i32, i32
  }
}

module attributes {stable_mosaic.version = 11 : i64} {
  func.func @_mm_bn_res_kernel(%arg0: i32, %arg1: memref<16x288xbf16, #tpu.memory_space<vmem>>, %arg2: memref<288x128xbf16, #tpu.memory_space<vmem>>, %arg3: memref<1x128xf32, #tpu.memory_space<vmem>>, %arg4: memref<1x128xf32, #tpu.memory_space<vmem>>, %arg5: memref<16x128xf32, #tpu.memory_space<vmem>>, %arg6: memref<16x128xf32, #tpu.memory_space<vmem>>) attributes {dimension_semantics = [#tpu.dimension_semantics<parallel>], iteration_bounds = array<i64: 1>, scalar_prefetch = 0 : i64, scratch_operands = 0 : i64, tpu.core_type = #tpu.core_type<tc>, window_params = [{transform_indices = @transform_0, window_bounds = array<i64: 16, 288>}, {pipeline_mode = #tpu.pipeline_mode<synchronous>, transform_indices = @transform_1, window_bounds = array<i64: 288, 128>}, {pipeline_mode = #tpu.pipeline_mode<synchronous>, transform_indices = @transform_2, window_bounds = array<i64: 1, 128>}, {pipeline_mode = #tpu.pipeline_mode<synchronous>, transform_indices = @transform_3, window_bounds = array<i64: 1, 128>}, {transform_indices = @transform_4, window_bounds = array<i64: 16, 128>}, {transform_indices = @transform_5, window_bounds = array<i64: 16, 128>}]} {
    %c0 = arith.constant 0 : index
    %c0_0 = arith.constant 0 : index
    %0 = vector.load %arg1[%c0, %c0_0] : memref<16x288xbf16, #tpu.memory_space<vmem>>, vector<16x288xbf16>
    %c0_1 = arith.constant 0 : index
    %c0_2 = arith.constant 0 : index
    %1 = vector.load %arg2[%c0_1, %c0_2] : memref<288x128xbf16, #tpu.memory_space<vmem>>, vector<288x128xbf16>
    %cst = arith.constant dense<0.000000e+00> : vector<16x128xf32>
    %2 = tpu.matmul %0, %1, %cst {dimension_numbers = #tpu.dot_dimension_numbers<[1], [0], [0], [1], [0, 0, 1, 1], [], []>} : vector<16x288xbf16>, vector<288x128xbf16>, vector<16x128xf32> -> vector<16x128xf32>
    %c0_3 = arith.constant 0 : index
    %c0_4 = arith.constant 0 : index
    %3 = vector.load %arg3[%c0_3, %c0_4] : memref<1x128xf32, #tpu.memory_space<vmem>>, vector<1x128xf32>
    %4 = vector.broadcast %3 : vector<1x128xf32> to vector<16x128xf32>
    %5 = arith.mulf %2, %4 : vector<16x128xf32>
    %c0_5 = arith.constant 0 : index
    %c0_6 = arith.constant 0 : index
    %6 = vector.load %arg4[%c0_5, %c0_6] : memref<1x128xf32, #tpu.memory_space<vmem>>, vector<1x128xf32>
    %7 = vector.broadcast %6 : vector<1x128xf32> to vector<16x128xf32>
    %8 = arith.addf %5, %7 : vector<16x128xf32>
    %c0_7 = arith.constant 0 : index
    %c0_8 = arith.constant 0 : index
    %9 = vector.load %arg5[%c0_7, %c0_8] : memref<16x128xf32, #tpu.memory_space<vmem>>, vector<16x128xf32>
    %10 = arith.addf %8, %9 : vector<16x128xf32>
    %cst_9 = arith.constant 0.000000e+00 : f32
    %11 = vector.broadcast %cst_9 : f32 to vector<16x128xf32>
    %12 = arith.maximumf %10, %11 : vector<16x128xf32>
    %c0_10 = arith.constant 0 : index
    %c0_11 = arith.constant 0 : index
    %13 = vector.load %arg6[%c0_10, %c0_11] : memref<16x128xf32, #tpu.memory_space<vmem>>, vector<16x128xf32>
    tpu.vector_store %arg6[%c0_10, %c0_11], %12 {strides = array<i32>} : memref<16x128xf32, #tpu.memory_space<vmem>>, vector<16x128xf32>,
    return
  }
  func.func @transform_0(%arg0: i32) -> (i32, i32) {
    %c0_i32 = arith.constant 0 : i32
    %c0_i32_0 = arith.constant 0 : i32
    return %arg0, %c0_i32 : i32, i32
  }
  func.func @transform_1(%arg0: i32) -> (i32, i32) {
    %c0_i32 = arith.constant 0 : i32
    %c0_i32_0 = arith.constant 0 : i32
    %c0_i32_1 = arith.constant 0 : i32
    return %c0_i32, %c0_i32_0 : i32, i32
  }
  func.func @transform_2(%arg0: i32) -> (i32, i32) {
    %c0_i32 = arith.constant 0 : i32
    %c0_i32_0 = arith.constant 0 : i32
    %c0_i32_1 = arith.constant 0 : i32
    return %c0_i32, %c0_i32_0 : i32, i32
  }
  func.func @transform_3(%arg0: i32) -> (i32, i32) {
    %c0_i32 = arith.constant 0 : i32
    %c0_i32_0 = arith.constant 0 : i32
    %c0_i32_1 = arith.constant 0 : i32
    return %c0_i32, %c0_i32_0 : i32, i32
  }
  func.func @transform_4(%arg0: i32) -> (i32, i32) {
    %c0_i32 = arith.constant 0 : i32
    %c0_i32_0 = arith.constant 0 : i32
    return %arg0, %c0_i32 : i32, i32
  }
  func.func @transform_5(%arg0: i32) -> (i32, i32) {
    %c0_i32 = arith.constant 0 : i32
    %c0_i32_0 = arith.constant 0 : i32
    return %arg0, %c0_i32 : i32, i32
  }
}

module attributes {stable_mosaic.version = 11 : i64} {
  func.func @_mm_bn_kernel(%arg0: i32, %arg1: memref<16x288xbf16, #tpu.memory_space<vmem>>, %arg2: memref<288x128xbf16, #tpu.memory_space<vmem>>, %arg3: memref<1x128xf32, #tpu.memory_space<vmem>>, %arg4: memref<1x128xf32, #tpu.memory_space<vmem>>, %arg5: memref<16x128xf32, #tpu.memory_space<vmem>>) attributes {dimension_semantics = [#tpu.dimension_semantics<parallel>], iteration_bounds = array<i64: 1>, scalar_prefetch = 0 : i64, scratch_operands = 0 : i64, tpu.core_type = #tpu.core_type<tc>, window_params = [{transform_indices = @transform_0, window_bounds = array<i64: 16, 288>}, {pipeline_mode = #tpu.pipeline_mode<synchronous>, transform_indices = @transform_1, window_bounds = array<i64: 288, 128>}, {pipeline_mode = #tpu.pipeline_mode<synchronous>, transform_indices = @transform_2, window_bounds = array<i64: 1, 128>}, {pipeline_mode = #tpu.pipeline_mode<synchronous>, transform_indices = @transform_3, window_bounds = array<i64: 1, 128>}, {transform_indices = @transform_4, window_bounds = array<i64: 16, 128>}]} {
    %c0 = arith.constant 0 : index
    %c0_0 = arith.constant 0 : index
    %0 = vector.load %arg1[%c0, %c0_0] : memref<16x288xbf16, #tpu.memory_space<vmem>>, vector<16x288xbf16>
    %c0_1 = arith.constant 0 : index
    %c0_2 = arith.constant 0 : index
    %1 = vector.load %arg2[%c0_1, %c0_2] : memref<288x128xbf16, #tpu.memory_space<vmem>>, vector<288x128xbf16>
    %cst = arith.constant dense<0.000000e+00> : vector<16x128xf32>
    %2 = tpu.matmul %0, %1, %cst {dimension_numbers = #tpu.dot_dimension_numbers<[1], [0], [0], [1], [0, 0, 1, 1], [], []>} : vector<16x288xbf16>, vector<288x128xbf16>, vector<16x128xf32> -> vector<16x128xf32>
    %c0_3 = arith.constant 0 : index
    %c0_4 = arith.constant 0 : index
    %3 = vector.load %arg3[%c0_3, %c0_4] : memref<1x128xf32, #tpu.memory_space<vmem>>, vector<1x128xf32>
    %4 = vector.broadcast %3 : vector<1x128xf32> to vector<16x128xf32>
    %5 = arith.mulf %2, %4 : vector<16x128xf32>
    %c0_5 = arith.constant 0 : index
    %c0_6 = arith.constant 0 : index
    %6 = vector.load %arg4[%c0_5, %c0_6] : memref<1x128xf32, #tpu.memory_space<vmem>>, vector<1x128xf32>
    %7 = vector.broadcast %6 : vector<1x128xf32> to vector<16x128xf32>
    %8 = arith.addf %5, %7 : vector<16x128xf32>
    %cst_7 = arith.constant 0.000000e+00 : f32
    %9 = vector.broadcast %cst_7 : f32 to vector<16x128xf32>
    %10 = arith.maximumf %8, %9 : vector<16x128xf32>
    %c0_8 = arith.constant 0 : index
    %c0_9 = arith.constant 0 : index
    %11 = vector.load %arg5[%c0_8, %c0_9] : memref<16x128xf32, #tpu.memory_space<vmem>>, vector<16x128xf32>
    tpu.vector_store %arg5[%c0_8, %c0_9], %10 {strides = array<i32>} : memref<16x128xf32, #tpu.memory_space<vmem>>, vector<16x128xf32>,
    return
  }
  func.func @transform_0(%arg0: i32) -> (i32, i32) {
    %c0_i32 = arith.constant 0 : i32
    %c0_i32_0 = arith.constant 0 : i32
    return %arg0, %c0_i32 : i32, i32
  }
  func.func @transform_1(%arg0: i32) -> (i32, i32) {
    %c0_i32 = arith.constant 0 : i32
    %c0_i32_0 = arith.constant 0 : i32
    %c0_i32_1 = arith.constant 0 : i32
    return %c0_i32, %c0_i32_0 : i32, i32
  }
  func.func @transform_2(%arg0: i32) -> (i32, i32) {
    %c0_i32 = arith.constant 0 : i32
    %c0_i32_0 = arith.constant 0 : i32
    %c0_i32_1 = arith.constant 0 : i32
    return %c0_i32, %c0_i32_0 : i32, i32
  }
  func.func @transform_3(%arg0: i32) -> (i32, i32) {
    %c0_i32 = arith.constant 0 : i32
    %c0_i32_0 = arith.constant 0 : i32
    %c0_i32_1 = arith.constant 0 : i32
    return %c0_i32, %c0_i32_0 : i32, i32
  }
  func.func @transform_4(%arg0: i32) -> (i32, i32) {
    %c0_i32 = arith.constant 0 : i32
    %c0_i32_0 = arith.constant 0 : i32
    return %arg0, %c0_i32 : i32, i32
  }
}

module attributes {stable_mosaic.version = 11 : i64} {
  func.func @_mm_bn_res_kernel(%arg0: i32, %arg1: memref<16x576xbf16, #tpu.memory_space<vmem>>, %arg2: memref<576x128xbf16, #tpu.memory_space<vmem>>, %arg3: memref<1x128xf32, #tpu.memory_space<vmem>>, %arg4: memref<1x128xf32, #tpu.memory_space<vmem>>, %arg5: memref<16x128xf32, #tpu.memory_space<vmem>>, %arg6: memref<16x128xf32, #tpu.memory_space<vmem>>) attributes {dimension_semantics = [#tpu.dimension_semantics<parallel>], iteration_bounds = array<i64: 1>, scalar_prefetch = 0 : i64, scratch_operands = 0 : i64, tpu.core_type = #tpu.core_type<tc>, window_params = [{transform_indices = @transform_0, window_bounds = array<i64: 16, 576>}, {pipeline_mode = #tpu.pipeline_mode<synchronous>, transform_indices = @transform_1, window_bounds = array<i64: 576, 128>}, {pipeline_mode = #tpu.pipeline_mode<synchronous>, transform_indices = @transform_2, window_bounds = array<i64: 1, 128>}, {pipeline_mode = #tpu.pipeline_mode<synchronous>, transform_indices = @transform_3, window_bounds = array<i64: 1, 128>}, {transform_indices = @transform_4, window_bounds = array<i64: 16, 128>}, {transform_indices = @transform_5, window_bounds = array<i64: 16, 128>}]} {
    %c0 = arith.constant 0 : index
    %c0_0 = arith.constant 0 : index
    %0 = vector.load %arg1[%c0, %c0_0] : memref<16x576xbf16, #tpu.memory_space<vmem>>, vector<16x576xbf16>
    %c0_1 = arith.constant 0 : index
    %c0_2 = arith.constant 0 : index
    %1 = vector.load %arg2[%c0_1, %c0_2] : memref<576x128xbf16, #tpu.memory_space<vmem>>, vector<576x128xbf16>
    %cst = arith.constant dense<0.000000e+00> : vector<16x128xf32>
    %2 = tpu.matmul %0, %1, %cst {dimension_numbers = #tpu.dot_dimension_numbers<[1], [0], [0], [1], [0, 0, 1, 1], [], []>} : vector<16x576xbf16>, vector<576x128xbf16>, vector<16x128xf32> -> vector<16x128xf32>
    %c0_3 = arith.constant 0 : index
    %c0_4 = arith.constant 0 : index
    %3 = vector.load %arg3[%c0_3, %c0_4] : memref<1x128xf32, #tpu.memory_space<vmem>>, vector<1x128xf32>
    %4 = vector.broadcast %3 : vector<1x128xf32> to vector<16x128xf32>
    %5 = arith.mulf %2, %4 : vector<16x128xf32>
    %c0_5 = arith.constant 0 : index
    %c0_6 = arith.constant 0 : index
    %6 = vector.load %arg4[%c0_5, %c0_6] : memref<1x128xf32, #tpu.memory_space<vmem>>, vector<1x128xf32>
    %7 = vector.broadcast %6 : vector<1x128xf32> to vector<16x128xf32>
    %8 = arith.addf %5, %7 : vector<16x128xf32>
    %c0_7 = arith.constant 0 : index
    %c0_8 = arith.constant 0 : index
    %9 = vector.load %arg5[%c0_7, %c0_8] : memref<16x128xf32, #tpu.memory_space<vmem>>, vector<16x128xf32>
    %10 = arith.addf %8, %9 : vector<16x128xf32>
    %cst_9 = arith.constant 0.000000e+00 : f32
    %11 = vector.broadcast %cst_9 : f32 to vector<16x128xf32>
    %12 = arith.maximumf %10, %11 : vector<16x128xf32>
    %c0_10 = arith.constant 0 : index
    %c0_11 = arith.constant 0 : index
    %13 = vector.load %arg6[%c0_10, %c0_11] : memref<16x128xf32, #tpu.memory_space<vmem>>, vector<16x128xf32>
    tpu.vector_store %arg6[%c0_10, %c0_11], %12 {strides = array<i32>} : memref<16x128xf32, #tpu.memory_space<vmem>>, vector<16x128xf32>,
    return
  }
  func.func @transform_0(%arg0: i32) -> (i32, i32) {
    %c0_i32 = arith.constant 0 : i32
    %c0_i32_0 = arith.constant 0 : i32
    return %arg0, %c0_i32 : i32, i32
  }
  func.func @transform_1(%arg0: i32) -> (i32, i32) {
    %c0_i32 = arith.constant 0 : i32
    %c0_i32_0 = arith.constant 0 : i32
    %c0_i32_1 = arith.constant 0 : i32
    return %c0_i32, %c0_i32_0 : i32, i32
  }
  func.func @transform_2(%arg0: i32) -> (i32, i32) {
    %c0_i32 = arith.constant 0 : i32
    %c0_i32_0 = arith.constant 0 : i32
    %c0_i32_1 = arith.constant 0 : i32
    return %c0_i32, %c0_i32_0 : i32, i32
  }
  func.func @transform_3(%arg0: i32) -> (i32, i32) {
    %c0_i32 = arith.constant 0 : i32
    %c0_i32_0 = arith.constant 0 : i32
    %c0_i32_1 = arith.constant 0 : i32
    return %c0_i32, %c0_i32_0 : i32, i32
  }
  func.func @transform_4(%arg0: i32) -> (i32, i32) {
    %c0_i32 = arith.constant 0 : i32
    %c0_i32_0 = arith.constant 0 : i32
    return %arg0, %c0_i32 : i32, i32
  }
  func.func @transform_5(%arg0: i32) -> (i32, i32) {
    %c0_i32 = arith.constant 0 : i32
    %c0_i32_0 = arith.constant 0 : i32
    return %arg0, %c0_i32 : i32, i32
  }
}

module attributes {stable_mosaic.version = 11 : i64} {
  func.func @_mm_bn_kernel(%arg0: i32, %arg1: memref<16x32xbf16, #tpu.memory_space<vmem>>, %arg2: memref<32x128xbf16, #tpu.memory_space<vmem>>, %arg3: memref<1x128xf32, #tpu.memory_space<vmem>>, %arg4: memref<1x128xf32, #tpu.memory_space<vmem>>, %arg5: memref<16x128xf32, #tpu.memory_space<vmem>>) attributes {dimension_semantics = [#tpu.dimension_semantics<parallel>], iteration_bounds = array<i64: 1>, scalar_prefetch = 0 : i64, scratch_operands = 0 : i64, tpu.core_type = #tpu.core_type<tc>, window_params = [{transform_indices = @transform_0, window_bounds = array<i64: 16, 32>}, {pipeline_mode = #tpu.pipeline_mode<synchronous>, transform_indices = @transform_1, window_bounds = array<i64: 32, 128>}, {pipeline_mode = #tpu.pipeline_mode<synchronous>, transform_indices = @transform_2, window_bounds = array<i64: 1, 128>}, {pipeline_mode = #tpu.pipeline_mode<synchronous>, transform_indices = @transform_3, window_bounds = array<i64: 1, 128>}, {transform_indices = @transform_4, window_bounds = array<i64: 16, 128>}]} {
    %c0 = arith.constant 0 : index
    %c0_0 = arith.constant 0 : index
    %0 = vector.load %arg1[%c0, %c0_0] : memref<16x32xbf16, #tpu.memory_space<vmem>>, vector<16x32xbf16>
    %c0_1 = arith.constant 0 : index
    %c0_2 = arith.constant 0 : index
    %1 = vector.load %arg2[%c0_1, %c0_2] : memref<32x128xbf16, #tpu.memory_space<vmem>>, vector<32x128xbf16>
    %cst = arith.constant dense<0.000000e+00> : vector<16x128xf32>
    %2 = tpu.matmul %0, %1, %cst {dimension_numbers = #tpu.dot_dimension_numbers<[1], [0], [0], [1], [0, 0, 1, 1], [], []>} : vector<16x32xbf16>, vector<32x128xbf16>, vector<16x128xf32> -> vector<16x128xf32>
    %c0_3 = arith.constant 0 : index
    %c0_4 = arith.constant 0 : index
    %3 = vector.load %arg3[%c0_3, %c0_4] : memref<1x128xf32, #tpu.memory_space<vmem>>, vector<1x128xf32>
    %4 = vector.broadcast %3 : vector<1x128xf32> to vector<16x128xf32>
    %5 = arith.mulf %2, %4 : vector<16x128xf32>
    %c0_5 = arith.constant 0 : index
    %c0_6 = arith.constant 0 : index
    %6 = vector.load %arg4[%c0_5, %c0_6] : memref<1x128xf32, #tpu.memory_space<vmem>>, vector<1x128xf32>
    %7 = vector.broadcast %6 : vector<1x128xf32> to vector<16x128xf32>
    %8 = arith.addf %5, %7 : vector<16x128xf32>
    %c0_7 = arith.constant 0 : index
    %c0_8 = arith.constant 0 : index
    %9 = vector.load %arg5[%c0_7, %c0_8] : memref<16x128xf32, #tpu.memory_space<vmem>>, vector<16x128xf32>
    tpu.vector_store %arg5[%c0_7, %c0_8], %8 {strides = array<i32>} : memref<16x128xf32, #tpu.memory_space<vmem>>, vector<16x128xf32>,
    return
  }
  func.func @transform_0(%arg0: i32) -> (i32, i32) {
    %c0_i32 = arith.constant 0 : i32
    %c0_i32_0 = arith.constant 0 : i32
    return %arg0, %c0_i32 : i32, i32
  }
  func.func @transform_1(%arg0: i32) -> (i32, i32) {
    %c0_i32 = arith.constant 0 : i32
    %c0_i32_0 = arith.constant 0 : i32
    %c0_i32_1 = arith.constant 0 : i32
    return %c0_i32, %c0_i32_0 : i32, i32
  }
  func.func @transform_2(%arg0: i32) -> (i32, i32) {
    %c0_i32 = arith.constant 0 : i32
    %c0_i32_0 = arith.constant 0 : i32
    %c0_i32_1 = arith.constant 0 : i32
    return %c0_i32, %c0_i32_0 : i32, i32
  }
  func.func @transform_3(%arg0: i32) -> (i32, i32) {
    %c0_i32 = arith.constant 0 : i32
    %c0_i32_0 = arith.constant 0 : i32
    %c0_i32_1 = arith.constant 0 : i32
    return %c0_i32, %c0_i32_0 : i32, i32
  }
  func.func @transform_4(%arg0: i32) -> (i32, i32) {
    %c0_i32 = arith.constant 0 : i32
    %c0_i32_0 = arith.constant 0 : i32
    return %arg0, %c0_i32 : i32, i32
  }
}

module attributes {stable_mosaic.version = 11 : i64} {
  func.func @_mm_bn_kernel(%arg0: i32, %arg1: memref<16x576xbf16, #tpu.memory_space<vmem>>, %arg2: memref<576x128xbf16, #tpu.memory_space<vmem>>, %arg3: memref<1x128xf32, #tpu.memory_space<vmem>>, %arg4: memref<1x128xf32, #tpu.memory_space<vmem>>, %arg5: memref<16x128xf32, #tpu.memory_space<vmem>>) attributes {dimension_semantics = [#tpu.dimension_semantics<parallel>], iteration_bounds = array<i64: 1>, scalar_prefetch = 0 : i64, scratch_operands = 0 : i64, tpu.core_type = #tpu.core_type<tc>, window_params = [{transform_indices = @transform_0, window_bounds = array<i64: 16, 576>}, {pipeline_mode = #tpu.pipeline_mode<synchronous>, transform_indices = @transform_1, window_bounds = array<i64: 576, 128>}, {pipeline_mode = #tpu.pipeline_mode<synchronous>, transform_indices = @transform_2, window_bounds = array<i64: 1, 128>}, {pipeline_mode = #tpu.pipeline_mode<synchronous>, transform_indices = @transform_3, window_bounds = array<i64: 1, 128>}, {transform_indices = @transform_4, window_bounds = array<i64: 16, 128>}]} {
    %c0 = arith.constant 0 : index
    %c0_0 = arith.constant 0 : index
    %0 = vector.load %arg1[%c0, %c0_0] : memref<16x576xbf16, #tpu.memory_space<vmem>>, vector<16x576xbf16>
    %c0_1 = arith.constant 0 : index
    %c0_2 = arith.constant 0 : index
    %1 = vector.load %arg2[%c0_1, %c0_2] : memref<576x128xbf16, #tpu.memory_space<vmem>>, vector<576x128xbf16>
    %cst = arith.constant dense<0.000000e+00> : vector<16x128xf32>
    %2 = tpu.matmul %0, %1, %cst {dimension_numbers = #tpu.dot_dimension_numbers<[1], [0], [0], [1], [0, 0, 1, 1], [], []>} : vector<16x576xbf16>, vector<576x128xbf16>, vector<16x128xf32> -> vector<16x128xf32>
    %c0_3 = arith.constant 0 : index
    %c0_4 = arith.constant 0 : index
    %3 = vector.load %arg3[%c0_3, %c0_4] : memref<1x128xf32, #tpu.memory_space<vmem>>, vector<1x128xf32>
    %4 = vector.broadcast %3 : vector<1x128xf32> to vector<16x128xf32>
    %5 = arith.mulf %2, %4 : vector<16x128xf32>
    %c0_5 = arith.constant 0 : index
    %c0_6 = arith.constant 0 : index
    %6 = vector.load %arg4[%c0_5, %c0_6] : memref<1x128xf32, #tpu.memory_space<vmem>>, vector<1x128xf32>
    %7 = vector.broadcast %6 : vector<1x128xf32> to vector<16x128xf32>
    %8 = arith.addf %5, %7 : vector<16x128xf32>
    %cst_7 = arith.constant 0.000000e+00 : f32
    %9 = vector.broadcast %cst_7 : f32 to vector<16x128xf32>
    %10 = arith.maximumf %8, %9 : vector<16x128xf32>
    %c0_8 = arith.constant 0 : index
    %c0_9 = arith.constant 0 : index
    %11 = vector.load %arg5[%c0_8, %c0_9] : memref<16x128xf32, #tpu.memory_space<vmem>>, vector<16x128xf32>
    tpu.vector_store %arg5[%c0_8, %c0_9], %10 {strides = array<i32>} : memref<16x128xf32, #tpu.memory_space<vmem>>, vector<16x128xf32>,
    return
  }
  func.func @transform_0(%arg0: i32) -> (i32, i32) {
    %c0_i32 = arith.constant 0 : i32
    %c0_i32_0 = arith.constant 0 : i32
    return %arg0, %c0_i32 : i32, i32
  }
  func.func @transform_1(%arg0: i32) -> (i32, i32) {
    %c0_i32 = arith.constant 0 : i32
    %c0_i32_0 = arith.constant 0 : i32
    %c0_i32_1 = arith.constant 0 : i32
    return %c0_i32, %c0_i32_0 : i32, i32
  }
  func.func @transform_2(%arg0: i32) -> (i32, i32) {
    %c0_i32 = arith.constant 0 : i32
    %c0_i32_0 = arith.constant 0 : i32
    %c0_i32_1 = arith.constant 0 : i32
    return %c0_i32, %c0_i32_0 : i32, i32
  }
  func.func @transform_3(%arg0: i32) -> (i32, i32) {
    %c0_i32 = arith.constant 0 : i32
    %c0_i32_0 = arith.constant 0 : i32
    %c0_i32_1 = arith.constant 0 : i32
    return %c0_i32, %c0_i32_0 : i32, i32
  }
  func.func @transform_4(%arg0: i32) -> (i32, i32) {
    %c0_i32 = arith.constant 0 : i32
    %c0_i32_0 = arith.constant 0 : i32
    return %arg0, %c0_i32 : i32, i32
  }
}

module attributes {stable_mosaic.version = 11 : i64} {
  func.func @_gap_kernel(%arg0: i32, %arg1: memref<2x1x128xf32, #tpu.memory_space<vmem>>, %arg2: memref<2x128xf32, #tpu.memory_space<vmem>>) attributes {dimension_semantics = [#tpu.dimension_semantics<parallel>], iteration_bounds = array<i64: 1>, scalar_prefetch = 0 : i64, scratch_operands = 0 : i64, tpu.core_type = #tpu.core_type<tc>, window_params = [{pipeline_mode = #tpu.pipeline_mode<synchronous>, transform_indices = @transform_0, window_bounds = array<i64: 2, 1, 128>}, {pipeline_mode = #tpu.pipeline_mode<synchronous>, transform_indices = @transform_1, window_bounds = array<i64: 2, 128>}]} {
    %c0 = arith.constant 0 : index
    %c0_0 = arith.constant 0 : index
    %c0_1 = arith.constant 0 : index
    %0 = vector.load %arg1[%c0, %c0_0, %c0_1] : memref<2x1x128xf32, #tpu.memory_space<vmem>>, vector<2x1x128xf32>
    %cst = arith.constant dense<0.000000e+00> : vector<2x128xf32>
    %1 = vector.multi_reduction <add>, %0, %cst [1] : vector<2x1x128xf32> to vector<2x128xf32>
    %cst_2 = arith.constant 1.000000e+00 : f32
    %2 = vector.broadcast %cst_2 : f32 to vector<2x128xf32>
    %3 = arith.divf %1, %2 : vector<2x128xf32>
    %c0_3 = arith.constant 0 : index
    %c0_4 = arith.constant 0 : index
    %4 = vector.load %arg2[%c0_3, %c0_4] : memref<2x128xf32, #tpu.memory_space<vmem>>, vector<2x128xf32>
    tpu.vector_store %arg2[%c0_3, %c0_4], %3 {strides = array<i32>} : memref<2x128xf32, #tpu.memory_space<vmem>>, vector<2x128xf32>,
    return
  }
  func.func @transform_0(%arg0: i32) -> (i32, i32, i32) {
    %c0_i32 = arith.constant 0 : i32
    %c0_i32_0 = arith.constant 0 : i32
    %c0_i32_1 = arith.constant 0 : i32
    %c0_i32_2 = arith.constant 0 : i32
    return %c0_i32, %c0_i32_0, %c0_i32_1 : i32, i32, i32
  }
  func.func @transform_1(%arg0: i32) -> (i32, i32) {
    %c0_i32 = arith.constant 0 : i32
    %c0_i32_0 = arith.constant 0 : i32
    %c0_i32_1 = arith.constant 0 : i32
    return %c0_i32, %c0_i32_0 : i32, i32
  }
}

module attributes {stable_mosaic.version = 11 : i64} {
  func.func @_mm_bn_kernel(%arg0: i32, %arg1: memref<16x128xbf16, #tpu.memory_space<vmem>>, %arg2: memref<128x128xbf16, #tpu.memory_space<vmem>>, %arg3: memref<1x128xf32, #tpu.memory_space<vmem>>, %arg4: memref<1x128xf32, #tpu.memory_space<vmem>>, %arg5: memref<16x128xf32, #tpu.memory_space<vmem>>) attributes {dimension_semantics = [#tpu.dimension_semantics<parallel>], iteration_bounds = array<i64: 1>, scalar_prefetch = 0 : i64, scratch_operands = 0 : i64, tpu.core_type = #tpu.core_type<tc>, window_params = [{transform_indices = @transform_0, window_bounds = array<i64: 16, 128>}, {pipeline_mode = #tpu.pipeline_mode<synchronous>, transform_indices = @transform_1, window_bounds = array<i64: 128, 128>}, {pipeline_mode = #tpu.pipeline_mode<synchronous>, transform_indices = @transform_2, window_bounds = array<i64: 1, 128>}, {pipeline_mode = #tpu.pipeline_mode<synchronous>, transform_indices = @transform_3, window_bounds = array<i64: 1, 128>}, {transform_indices = @transform_4, window_bounds = array<i64: 16, 128>}]} {
    %c0 = arith.constant 0 : index
    %c0_0 = arith.constant 0 : index
    %0 = vector.load %arg1[%c0, %c0_0] : memref<16x128xbf16, #tpu.memory_space<vmem>>, vector<16x128xbf16>
    %c0_1 = arith.constant 0 : index
    %c0_2 = arith.constant 0 : index
    %1 = vector.load %arg2[%c0_1, %c0_2] : memref<128x128xbf16, #tpu.memory_space<vmem>>, vector<128x128xbf16>
    %cst = arith.constant dense<0.000000e+00> : vector<16x128xf32>
    %2 = tpu.matmul %0, %1, %cst {dimension_numbers = #tpu.dot_dimension_numbers<[1], [0], [0], [1], [0, 0, 1, 1], [], []>} : vector<16x128xbf16>, vector<128x128xbf16>, vector<16x128xf32> -> vector<16x128xf32>
    %c0_3 = arith.constant 0 : index
    %c0_4 = arith.constant 0 : index
    %3 = vector.load %arg3[%c0_3, %c0_4] : memref<1x128xf32, #tpu.memory_space<vmem>>, vector<1x128xf32>
    %4 = vector.broadcast %3 : vector<1x128xf32> to vector<16x128xf32>
    %5 = arith.mulf %2, %4 : vector<16x128xf32>
    %c0_5 = arith.constant 0 : index
    %c0_6 = arith.constant 0 : index
    %6 = vector.load %arg4[%c0_5, %c0_6] : memref<1x128xf32, #tpu.memory_space<vmem>>, vector<1x128xf32>
    %7 = vector.broadcast %6 : vector<1x128xf32> to vector<16x128xf32>
    %8 = arith.addf %5, %7 : vector<16x128xf32>
    %c0_7 = arith.constant 0 : index
    %c0_8 = arith.constant 0 : index
    %9 = vector.load %arg5[%c0_7, %c0_8] : memref<16x128xf32, #tpu.memory_space<vmem>>, vector<16x128xf32>
    tpu.vector_store %arg5[%c0_7, %c0_8], %8 {strides = array<i32>} : memref<16x128xf32, #tpu.memory_space<vmem>>, vector<16x128xf32>,
    return
  }
  func.func @transform_0(%arg0: i32) -> (i32, i32) {
    %c0_i32 = arith.constant 0 : i32
    %c0_i32_0 = arith.constant 0 : i32
    return %arg0, %c0_i32 : i32, i32
  }
  func.func @transform_1(%arg0: i32) -> (i32, i32) {
    %c0_i32 = arith.constant 0 : i32
    %c0_i32_0 = arith.constant 0 : i32
    %c0_i32_1 = arith.constant 0 : i32
    return %c0_i32, %c0_i32_0 : i32, i32
  }
  func.func @transform_2(%arg0: i32) -> (i32, i32) {
    %c0_i32 = arith.constant 0 : i32
    %c0_i32_0 = arith.constant 0 : i32
    %c0_i32_1 = arith.constant 0 : i32
    return %c0_i32, %c0_i32_0 : i32, i32
  }
  func.func @transform_3(%arg0: i32) -> (i32, i32) {
    %c0_i32 = arith.constant 0 : i32
    %c0_i32_0 = arith.constant 0 : i32
    %c0_i32_1 = arith.constant 0 : i32
    return %c0_i32, %c0_i32_0 : i32, i32
  }
  func.func @transform_4(%arg0: i32) -> (i32, i32) {
    %c0_i32 = arith.constant 0 : i32
    %c0_i32_0 = arith.constant 0 : i32
    return %arg0, %c0_i32 : i32, i32
  }
}

</mosaic_0001>

<bundles_post_ra>
// kernel: _forward.101
= control target key start
LH: loop header
LB: loop body
LE: loop exit
PB: predicated region body
PF: predicated region fallthrough
CT: control target
= control target key end

     0   :  { %s1068_s15 = smov 0   ;;  %s1280_s0 = inlined_call_operand.vmem [shape: bf16[512,147], index: 0, kind: input, shape index: {}]   ;;  %s1281_s1 = inlined_call_operand.vmem [shape: bf16[147,128], index: 1, kind: input, shape index: {}]   ;;  %s1282_s2 = inlined_call_operand.vmem [shape: f32[1,128], index: 2, kind: input, shape index: {}]   ;;  %s1283_s3 = inlined_call_operand.vmem [shape: f32[1,128], index: 3, kind: input, shape index: {}]   ;;  %s1284_s4 = inlined_call_operand.vmem [shape: f32[512,128], index: 4, kind: output, shape index: {}]  }
   0x1 LB: > { %s872_s16 = sadd.s32 4294967295, %s1039_s15   ;;  %p876_p0 = scmp.ge.s32.totalorder %s1039_s15, 1  ;;  %s1039_s15 = sphi %s1068_s15, %s14_s15  }
   0x2   : > { %p164_p1 = scmp.lt.s32.totalorder %s1039_s15, 3 }
   0x4   : > { %p165_p2 = pnand %p876_p0, %p164_p1 }
   0x5   : > { %v975_v0 = vld [vmem:[%s1281_s1] sm:$0xff] (!%p165_p2)   ;;  %v1041_v1 = vmov (!%p165_p2), 0   ;;  %v976_v2 = vld [vmem:[%s1281_s1 + $0x8] sm:$0xff] (!%p165_p2)   ;;  %v977_v3 = vld [vmem:[%s1281_s1 + $0x10] sm:$0xff] (!%p165_p2)   ;;  %s877_s23 = sshll.u32 (!%p165_p2), %s872_s16, 5  ;;  %vm457_vm0 = vcmask (!%p165_p2), 154624  }
   0x6   : > { %168 = sbr.rel (%p165_p2) target bundleno = 323 (0x143), region = 36  ;;  %513 = vmatprep.subr.bf16.mxu0 (!%p165_p2), %v1041_v1  ;;  %945 = vmatprep.subr.bf16.mxu1 (!%p165_p2), %v1041_v1  ;;  %p192_p3 = scmp.lt.s32.totalorder (!%p165_p2), %s877_s23, 63  ;;  %v978_v4 = vld [vmem:[%s1281_s1 + $0x18] sm:$0xff] (!%p165_p2)   ;;  %v979_v5 = vld [vmem:[%s1281_s1 + $0x20] sm:$0xff] (!%p165_p2)   ;;  %v980_v8 = vld [vmem:[%s1281_s1 + $0x28] sm:$0xff] (!%p165_p2)   ;;  %vm506_vm1 = vcmask (!%p165_p2), 1040384  }
   0x7   : > { %514 = vmatpush1.bf16.msra.mxu0 (!%p165_p2), %v975_v0  ;;  %955 = vmatpush1.bf16.msra.mxu1 (!%p165_p2), %v975_v0  ;;  %v981_v9 = vld [vmem:[%s1281_s1 + $0x30] sm:$0xff] (!%p165_p2)   ;;  %v982_v10 = vld [vmem:[%s1281_s1 + $0x38] sm:$0xff] (!%p165_p2)   ;;  %vm507_vm2 = vcmask (!%p165_p2), 1041408   ;;  %v1042_v11 = vmov (!%p165_p2), 65535   ;;  %v983_v13 = vld [vmem:[%s1281_s1 + $0x40] sm:$0xff] (!%p165_p2)  }
   0x8   : > { %515 = vmatprep.subr.bf16.mxu0 (!%p165_p2), %v1041_v1  ;;  %946 = vmatprep.subr.bf16.mxu1 (!%p165_p2), %v1041_v1  ;;  %v508_v12 = vsel (!%p165_p2), %vm506_vm1, 4294967295, %v1042_v11  ;;  %v984_v14 = vld [vmem:[%s1281_s1 + $0x48] ss:$0 sps:$4 sm:$0x33] (!%p165_p2)   ;;  %v1167_v47 = vld [vmem:[%s1282_s2] ss:$0 sm:$0xff] (!%p165_p2) }
   0x9   : > { %v509_v15 = vsel (!%p165_p2), %vm507_vm2, %v508_v12, 0  ;;  %v1172_v49 = vld [vmem:[%s1283_s3] ss:$0 sm:$0xff] (!%p165_p2) }
   0xa   : > { %v511_v16 = vand.u32 (!%p165_p2), %v984_v14, %v509_v15 }
   0xb   : > { %516 = vmatpush1.bf16.msra.mxu0 (!%p165_p2), %v976_v2  ;;  %956 = vmatpush1.bf16.msra.mxu1 (!%p165_p2), %v976_v2 }
   0xc   : > { %517 = vmatprep.subr.bf16.mxu0 (!%p165_p2), %v1041_v1  ;;  %947 = vmatprep.subr.bf16.mxu1 (!%p165_p2), %v1041_v1 }
   0xd   : > { %s1286_s23 = smov (!%p192_p3, %s877_s23), 63 }
   0xe   : > { %s944_s26 = sshll.u32 %s1286_s23, 3 }
   0xf   : > { %518 = vmatpush1.bf16.msra.mxu0 %v977_v3  ;;  %957 = vmatpush1.bf16.msra.mxu1 %v977_v3  ;;  %s1096_s29 = scalar_lea.vmem %s1280_s0, %s944_s26  ;;  %s1185_s24 = scalar_lea.vmem %s1284_s4, %s944_s26 }
  0x10   : > { %519 = vmatprep.subr.bf16.mxu0 %v1041_v1  ;;  %948 = vmatprep.subr.bf16.mxu1 %v1041_v1  ;;  %v987_v6 = vld [vmem:[%s1096_s29 + $0x4] ss:$8 sps:$4 sm:$0xff]   ;;  %v985_v17 = vld [vmem:[%s1096_s29] ss:$8 sps:$4 sm:$0xff]   ;;  %v991_v19 = vld [vmem:[%s1096_s29 + $0x14] ss:$8 sps:$4 sm:$0xff]  }
  0x11   : > { %v990_v7 = vld [vmem:[%s1096_s29 + $0x84] ss:$8 sps:$4 sm:$0xff]   ;;  %924 = vmatprep.mubr.msk.bf16.mxu0 %vm457_vm0, %v987_v6  ;;  %v988_v18 = vld [vmem:[%s1096_s29 + $0x80] ss:$8 sps:$4 sm:$0xff]   ;;  %v993_v20 = vld [vmem:[%s1096_s29 + $0x94] ss:$8 sps:$4 sm:$0xff]  }
  0x12   : > { %932 = vmatprep.mubr.msk.bf16.mxu1 %vm457_vm0, %v990_v7  ;;  %v995_v21 = vld [vmem:[%s1096_s29 + $0x10] ss:$8 sps:$4 sm:$0xff]   ;;  %v997_v23 = vld [vmem:[%s1096_s29 + $0x24] ss:$8 sps:$4 sm:$0xff]   ;;  %v1001_v25 = vld [vmem:[%s1096_s29 + $0x20] ss:$8 sps:$4 sm:$0xff]  }
  0x13   : > { %520 = vmatpush1.bf16.msra.mxu0 %v978_v4  ;;  %958 = vmatpush1.bf16.msra.mxu1 %v978_v4  ;;  %v996_v22 = vld [vmem:[%s1096_s29 + $0x90] ss:$8 sps:$4 sm:$0xff]   ;;  %v999_v24 = vld [vmem:[%s1096_s29 + $0xa4] ss:$8 sps:$4 sm:$0xff]   ;;  %v1002_v26 = vld [vmem:[%s1096_s29 + $0xa0] ss:$8 sps:$4 sm:$0xff]  }
  0x14   : > { %521 = vmatprep.subr.bf16.mxu0 %v1041_v1  ;;  %949 = vmatprep.subr.bf16.mxu1 %v1041_v1  ;;  %v1003_v27 = vld [vmem:[%s1096_s29 + $0x34] ss:$8 sps:$4 sm:$0xff]   ;;  %v1007_v29 = vld [vmem:[%s1096_s29 + $0x30] ss:$8 sps:$4 sm:$0xff]   ;;  %v1009_v31 = vld [vmem:[%s1096_s29 + $0x44] ss:$8 sps:$4 sm:$0xff]  }
  0x15   : > { %v1005_v28 = vld [vmem:[%s1096_s29 + $0xb4] ss:$8 sps:$4 sm:$0xff]   ;;  %v1008_v30 = vld [vmem:[%s1096_s29 + $0xb0] ss:$8 sps:$4 sm:$0xff]   ;;  %v1011_v32 = vld [vmem:[%s1096_s29 + $0xc4] ss:$8 sps:$4 sm:$0xff]  }
  0x16   : > { %v1013_v33 = vld [vmem:[%s1096_s29 + $0x40] ss:$8 sps:$4 sm:$0xff]   ;;  %v1015_v35 = vld [vmem:[%s1096_s29 + $0x54] ss:$8 sps:$4 sm:$0xff]   ;;  %v1019_v37 = vld [vmem:[%s1096_s29 + $0x50] ss:$8 sps:$4 sm:$0xff]  }
  0x17   : > { %522 = vmatpush1.bf16.msra.mxu0 %v979_v5  ;;  %959 = vmatpush1.bf16.msra.mxu1 %v979_v5  ;;  %v1014_v34 = vld [vmem:[%s1096_s29 + $0xc0] ss:$8 sps:$4 sm:$0xff]   ;;  %v1017_v36 = vld [vmem:[%s1096_s29 + $0xd4] ss:$8 sps:$4 sm:$0xff]   ;;  %v1020_v38 = vld [vmem:[%s1096_s29 + $0xd0] ss:$8 sps:$4 sm:$0xff]  }
  0x18   : > { %523 = vmatprep.subr.bf16.mxu0 %v1041_v1  ;;  %950 = vmatprep.subr.bf16.mxu1 %v1041_v1  ;;  %v1021_v39 = vld [vmem:[%s1096_s29 + $0x64] ss:$8 sps:$4 sm:$0xff]   ;;  %v1025_v41 = vld [vmem:[%s1096_s29 + $0x60] ss:$8 sps:$4 sm:$0xff]   ;;  %v1027_v43 = vld [vmem:[%s1096_s29 + $0x74] ss:$8 sps:$4 sm:$0xff]  }
  0x19   : > { %v1023_v40 = vld [vmem:[%s1096_s29 + $0xe4] ss:$8 sps:$4 sm:$0xff]   ;;  %v1026_v42 = vld [vmem:[%s1096_s29 + $0xe0] ss:$8 sps:$4 sm:$0xff]   ;;  %v1029_v44 = vld [vmem:[%s1096_s29 + $0xf4] ss:$8 sps:$4 sm:$0xff]  }
  0x1a   : > { %v1031_v45 = vld [vmem:[%s1096_s29 + $0x70] ss:$8 sps:$4 sm:$0xff]  }
  0x1b   : > { %524 = vmatpush1.bf16.msra.mxu0 %v980_v8  ;;  %960 = vmatpush1.bf16.msra.mxu1 %v980_v8  ;;  %v1032_v46 = vld [vmem:[%s1096_s29 + $0xf0] ss:$8 sps:$4 sm:$0xff]  }
  0x1c   : > { %525 = vmatprep.subr.bf16.mxu0 %v1041_v1  ;;  %951 = vmatprep.subr.bf16.mxu1 %v1041_v1 }
  0x1f   : > { %526 = vmatpush1.bf16.msra.mxu0 %v981_v9  ;;  %961 = vmatpush1.bf16.msra.mxu1 %v981_v9 }
  0x20   : > { %527 = vmatprep.subr.bf16.mxu0 %v1041_v1  ;;  %952 = vmatprep.subr.bf16.mxu1 %v1041_v1 }
  0x23   : > { %528 = vmatpush1.bf16.msra.mxu0 %v982_v10  ;;  %962 = vmatpush1.bf16.msra.mxu1 %v982_v10 }
  0x24   : > { %529 = vmatprep.subr.bf16.mxu0 %v1041_v1  ;;  %953 = vmatprep.subr.bf16.mxu1 %v1041_v1 }
  0x27   : > { %530 = vmatpush1.bf16.msra.mxu0 %v983_v13  ;;  %963 = vmatpush1.bf16.msra.mxu1 %v983_v13 }
  0x28   : > { %531 = vmatprep.subr.bf16.mxu0 %v1041_v1  ;;  %954 = vmatprep.subr.bf16.mxu1 %v1041_v1 }
  0x2b   : > { %532 = vmatpush1.bf16.msra.mxu0 %v511_v16  ;;  %964 = vmatpush1.bf16.msra.mxu1 %v511_v16 }
  0x2e   : > { %546 = vmatmul.mubr.bf16.vlgmr.msra.gmra.mrb[0].mxu0 %v985_v17  ;;  %610 = vmatmul.mubr.bf16.vlgmr.msra.gmra.mrb[0].mxu1 %v988_v18 }
  0x2f   : > { %925 = vmatprep.mubr.msk.bf16.mxu0 %vm457_vm0, %v991_v19  ;;  %933 = vmatprep.mubr.msk.bf16.mxu1 %vm457_vm0, %v993_v20 }
  0x36   : > { %554 = vmatmul.mubr.bf16.gmra.mrb[4].mxu0 %v995_v21  ;;  %618 = vmatmul.mubr.bf16.gmra.mrb[4].mxu1 %v996_v22 }
  0x37   : > { %926 = vmatprep.mubr.msk.bf16.mxu0 %vm457_vm0, %v997_v23  ;;  %934 = vmatprep.mubr.msk.bf16.mxu1 %vm457_vm0, %v999_v24 }
  0x3e   : > { %562 = vmatmul.mubr.bf16.gmra.mrb[8].mxu0 %v1001_v25  ;;  %626 = vmatmul.mubr.bf16.gmra.mrb[8].mxu1 %v1002_v26 }
  0x3f   : > { %927 = vmatprep.mubr.msk.bf16.mxu0 %vm457_vm0, %v1003_v27  ;;  %935 = vmatprep.mubr.msk.bf16.mxu1 %vm457_vm0, %v1005_v28 }
  0x46   : > { %570 = vmatmul.mubr.bf16.gmra.mrb[12].mxu0 %v1007_v29  ;;  %634 = vmatmul.mubr.bf16.gmra.mrb[12].mxu1 %v1008_v30 }
  0x47   : > { %928 = vmatprep.mubr.msk.bf16.mxu0 %vm457_vm0, %v1009_v31  ;;  %936 = vmatprep.mubr.msk.bf16.mxu1 %vm457_vm0, %v1011_v32 }
  0x4e   : > { %578 = vmatmul.mubr.bf16.gmra.mrb[16].mxu0 %v1013_v33  ;;  %642 = vmatmul.mubr.bf16.gmra.mrb[16].mxu1 %v1014_v34 }
  0x4f   : > { %929 = vmatprep.mubr.msk.bf16.mxu0 %vm457_vm0, %v1015_v35  ;;  %937 = vmatprep.mubr.msk.bf16.mxu1 %vm457_vm0, %v1017_v36 }
  0x56   : > { %586 = vmatmul.mubr.bf16.gmra.mrb[20].mxu0 %v1019_v37  ;;  %650 = vmatmul.mubr.bf16.gmra.mrb[20].mxu1 %v1020_v38 }
  0x57   : > { %930 = vmatprep.mubr.msk.bf16.mxu0 %vm457_vm0, %v1021_v39  ;;  %938 = vmatprep.mubr.msk.bf16.mxu1 %vm457_vm0, %v1023_v40 }
  0x5e   : > { %594 = vmatmul.mubr.bf16.gmra.mrb[24].mxu0 %v1025_v41  ;;  %658 = vmatmul.mubr.bf16.gmra.mrb[24].mxu1 %v1026_v42 }
  0x5f   : > { %931 = vmatprep.mubr.msk.bf16.mxu0 %vm457_vm0, %v1027_v43  ;;  %939 = vmatprep.mubr.msk.bf16.mxu1 %vm457_vm0, %v1029_v44 }
  0x66   : > { %602 = vmatmul.mubr.bf16.gmra.mrb[28].mxu0 %v1031_v45  ;;  %666 = vmatmul.mubr.bf16.gmra.mrb[28].mxu1 %v1032_v46 }
 0x101   : > { %v547_v48 = vpop.f32.mrb[0].mxu0  ;;  %v611_v50 = vpop.f32.mrb[0].mxu1 }
 0x102   : > { %v681_v51 = vmul.f32 %v1167_v47, %v547_v48  ;;  %v697_v52 = vmul.f32 %v1167_v47, %v611_v50  ;;  %v549_v53 = vpop.f32.mrb[1].mxu0  ;;  %v613_v54 = vpop.f32.mrb[1].mxu1 }
 0x103   : > { %v550_v55 = vpop.f32.mrb[2].mxu0  ;;  %v614_v56 = vpop.f32.mrb[2].mxu1 }
 0x104   : > { %v720_v57 = vadd.f32 %v1172_v49, %v681_v51  ;;  %v736_v58 = vadd.f32 %v1172_v49, %v697_v52  ;;  %v682_v59 = vmul.f32 %v1167_v47, %v550_v55  ;;  %v698_v60 = vmul.f32 %v1167_v47, %v614_v56  ;;  %v552_v61 = vpop.f32.mrb[3].mxu0  ;;  %v616_v62 = vpop.f32.mrb[3].mxu1 }
 0x106   : > { %v752_v63 = vmax.f32 %v720_v57, 0.0  ;;  %v768_v0 = vmax.f32 %v736_v58, 0.0  ;;  %v721_v1 = vadd.f32 %v1172_v49, %v682_v59  ;;  %v737_v2 = vadd.f32 %v1172_v49, %v698_v60 }
 0x108   : > { %784 = vst [vmem:[%s1185_s24] sm:$0xff] %v752_v63  ;;  %800 = vst [vmem:[%s1185_s24 + $0x80] sm:$0xff] %v768_v0  ;;  %v753_v3 = vmax.f32 %v721_v1, 0.0  ;;  %v769_v4 = vmax.f32 %v737_v2, 0.0 }
 0x109   : > { %v555_v5 = vpop.f32.mrb[4].mxu0  ;;  %v619_v6 = vpop.f32.mrb[4].mxu1 }
 0x10a   : > { %785 = vst [vmem:[%s1185_s24 + $0x8] sm:$0xff] %v753_v3  ;;  %801 = vst [vmem:[%s1185_s24 + $0x88] sm:$0xff] %v769_v4  ;;  %v683_v7 = vmul.f32 %v1167_v47, %v555_v5  ;;  %v699_v8 = vmul.f32 %v1167_v47, %v619_v6  ;;  %v557_v9 = vpop.f32.mrb[5].mxu0  ;;  %v621_v10 = vpop.f32.mrb[5].mxu1 }
 0x10b   : > { %v558_v11 = vpop.f32.mrb[6].mxu0  ;;  %v622_v12 = vpop.f32.mrb[6].mxu1 }
 0x10c   : > { %v722_v13 = vadd.f32 %v1172_v49, %v683_v7  ;;  %v738_v14 = vadd.f32 %v1172_v49, %v699_v8  ;;  %v684_v15 = vmul.f32 %v1167_v47, %v558_v11  ;;  %v700_v16 = vmul.f32 %v1167_v47, %v622_v12  ;;  %v560_v17 = vpop.f32.mrb[7].mxu0  ;;  %v624_v18 = vpop.f32.mrb[7].mxu1 }
 0x10e   : > { %v754_v19 = vmax.f32 %v722_v13, 0.0  ;;  %v770_v20 = vmax.f32 %v738_v14, 0.0  ;;  %v723_v21 = vadd.f32 %v1172_v49, %v684_v15  ;;  %v739_v22 = vadd.f32 %v1172_v49, %v700_v16 }
 0x110   : > { %786 = vst [vmem:[%s1185_s24 + $0x10] sm:$0xff] %v754_v19  ;;  %802 = vst [vmem:[%s1185_s24 + $0x90] sm:$0xff] %v770_v20  ;;  %v755_v23 = vmax.f32 %v723_v21, 0.0  ;;  %v771_v24 = vmax.f32 %v739_v22, 0.0 }
 0x111   : > { %v563_v25 = vpop.f32.mrb[8].mxu0  ;;  %v627_v26 = vpop.f32.mrb[8].mxu1 }
 0x112   : > { %787 = vst [vmem:[%s1185_s24 + $0x18] sm:$0xff] %v755_v23  ;;  %803 = vst [vmem:[%s1185_s24 + $0x98] sm:$0xff] %v771_v24  ;;  %v685_v27 = vmul.f32 %v1167_v47, %v563_v25  ;;  %v701_v28 = vmul.f32 %v1167_v47, %v627_v26  ;;  %v565_v29 = vpop.f32.mrb[9].mxu0  ;;  %v629_v30 = vpop.f32.mrb[9].mxu1 }
 0x113   : > { %v566_v31 = vpop.f32.mrb[10].mxu0  ;;  %v630_v32 = vpop.f32.mrb[10].mxu1 }
 0x114   : > { %v724_v33 = vadd.f32 %v1172_v49, %v685_v27  ;;  %v740_v34 = vadd.f32 %v1172_v49, %v701_v28  ;;  %v686_v35 = vmul.f32 %v1167_v47, %v566_v31  ;;  %v702_v36 = vmul.f32 %v1167_v47, %v630_v32  ;;  %v568_v37 = vpop.f32.mrb[11].mxu0  ;;  %v632_v38 = vpop.f32.mrb[11].mxu1 }
 0x116   : > { %v756_v39 = vmax.f32 %v724_v33, 0.0  ;;  %v772_v40 = vmax.f32 %v740_v34, 0.0  ;;  %v725_v41 = vadd.f32 %v1172_v49, %v686_v35  ;;  %v741_v42 = vadd.f32 %v1172_v49, %v702_v36 }
 0x118   : > { %788 = vst [vmem:[%s1185_s24 + $0x20] sm:$0xff] %v756_v39  ;;  %804 = vst [vmem:[%s1185_s24 + $0xa0] sm:$0xff] %v772_v40  ;;  %v757_v43 = vmax.f32 %v725_v41, 0.0  ;;  %v773_v44 = vmax.f32 %v741_v42, 0.0 }
 0x119   : > { %v571_v45 = vpop.f32.mrb[12].mxu0  ;;  %v635_v46 = vpop.f32.mrb[12].mxu1 }
 0x11a   : > { %789 = vst [vmem:[%s1185_s24 + $0x28] sm:$0xff] %v757_v43  ;;  %805 = vst [vmem:[%s1185_s24 + $0xa8] sm:$0xff] %v773_v44  ;;  %v687_v48 = vmul.f32 %v1167_v47, %v571_v45  ;;  %v703_v50 = vmul.f32 %v1167_v47, %v635_v46  ;;  %v573_v51 = vpop.f32.mrb[13].mxu0  ;;  %v637_v52 = vpop.f32.mrb[13].mxu1 }
 0x11b   : > { %v574_v53 = vpop.f32.mrb[14].mxu0  ;;  %v638_v54 = vpop.f32.mrb[14].mxu1 }
 0x11c   : > { %v726_v55 = vadd.f32 %v1172_v49, %v687_v48  ;;  %v742_v56 = vadd.f32 %v1172_v49, %v703_v50  ;;  %v688_v57 = vmul.f32 %v1167_v47, %v574_v53  ;;  %v704_v58 = vmul.f32 %v1167_v47, %v638_v54  ;;  %v576_v59 = vpop.f32.mrb[15].mxu0  ;;  %v640_v60 = vpop.f32.mrb[15].mxu1 }
 0x11e   : > { %v758_v61 = vmax.f32 %v726_v55, 0.0  ;;  %v774_v62 = vmax.f32 %v742_v56, 0.0  ;;  %v727_v63 = vadd.f32 %v1172_v49, %v688_v57  ;;  %v743_v0 = vadd.f32 %v1172_v49, %v704_v58 }
 0x120   : > { %790 = vst [vmem:[%s1185_s24 + $0x30] sm:$0xff] %v758_v61  ;;  %806 = vst [vmem:[%s1185_s24 + $0xb0] sm:$0xff] %v774_v62  ;;  %v759_v1 = vmax.f32 %v727_v63, 0.0  ;;  %v775_v2 = vmax.f32 %v743_v0, 0.0 }
 0x121   : > { %v579_v3 = vpop.f32.mrb[16].mxu0  ;;  %v643_v4 = vpop.f32.mrb[16].mxu1 }
 0x122   : > { %791 = vst [vmem:[%s1185_s24 + $0x38] sm:$0xff] %v759_v1  ;;  %807 = vst [vmem:[%s1185_s24 + $0xb8] sm:$0xff] %v775_v2  ;;  %v689_v5 = vmul.f32 %v1167_v47, %v579_v3  ;;  %v705_v6 = vmul.f32 %v1167_v47, %v643_v4  ;;  %v581_v7 = vpop.f32.mrb[17].mxu0  ;;  %v645_v8 = vpop.f32.mrb[17].mxu1 }
 0x123   : > { %v582_v9 = vpop.f32.mrb[18].mxu0  ;;  %v646_v10 = vpop.f32.mrb[18].mxu1 }
 0x124   : > { %v728_v11 = vadd.f32 %v1172_v49, %v689_v5  ;;  %v744_v12 = vadd.f32 %v1172_v49, %v705_v6  ;;  %v690_v13 = vmul.f32 %v1167_v47, %v582_v9  ;;  %v706_v14 = vmul.f32 %v1167_v47, %v646_v10  ;;  %v584_v15 = vpop.f32.mrb[19].mxu0  ;;  %v648_v16 = vpop.f32.mrb[19].mxu1 }
 0x126   : > { %v760_v17 = vmax.f32 %v728_v11, 0.0  ;;  %v776_v18 = vmax.f32 %v744_v12, 0.0  ;;  %v729_v19 = vadd.f32 %v1172_v49, %v690_v13  ;;  %v745_v20 = vadd.f32 %v1172_v49, %v706_v14 }
 0x128   : > { %792 = vst [vmem:[%s1185_s24 + $0x40] sm:$0xff] %v760_v17  ;;  %808 = vst [vmem:[%s1185_s24 + $0xc0] sm:$0xff] %v776_v18  ;;  %v761_v21 = vmax.f32 %v729_v19, 0.0  ;;  %v777_v22 = vmax.f32 %v745_v20, 0.0 }
 0x129   : > { %v587_v23 = vpop.f32.mrb[20].mxu0  ;;  %v651_v24 = vpop.f32.mrb[20].mxu1 }
 0x12a   : > { %793 = vst [vmem:[%s1185_s24 + $0x48] sm:$0xff] %v761_v21  ;;  %809 = vst [vmem:[%s1185_s24 + $0xc8] sm:$0xff] %v777_v22  ;;  %v691_v25 = vmul.f32 %v1167_v47, %v587_v23  ;;  %v707_v26 = vmul.f32 %v1167_v47, %v651_v24  ;;  %v589_v27 = vpop.f32.mrb[21].mxu0  ;;  %v653_v28 = vpop.f32.mrb[21].mxu1 }
 0x12b   : > { %v590_v29 = vpop.f32.mrb[22].mxu0  ;;  %v654_v30 = vpop.f32.mrb[22].mxu1 }
 0x12c   : > { %v730_v31 = vadd.f32 %v1172_v49, %v691_v25  ;;  %v746_v32 = vadd.f32 %v1172_v49, %v707_v26  ;;  %v692_v33 = vmul.f32 %v1167_v47, %v590_v29  ;;  %v708_v34 = vmul.f32 %v1167_v47, %v654_v30  ;;  %v592_v35 = vpop.f32.mrb[23].mxu0  ;;  %v656_v36 = vpop.f32.mrb[23].mxu1 }
 0x12e   : > { %v762_v37 = vmax.f32 %v730_v31, 0.0  ;;  %v778_v38 = vmax.f32 %v746_v32, 0.0  ;;  %v731_v39 = vadd.f32 %v1172_v49, %v692_v33  ;;  %v747_v40 = vadd.f32 %v1172_v49, %v708_v34 }
 0x130   : > { %794 = vst [vmem:[%s1185_s24 + $0x50] sm:$0xff] %v762_v37  ;;  %810 = vst [vmem:[%s1185_s24 + $0xd0] sm:$0xff] %v778_v38  ;;  %v763_v41 = vmax.f32 %v731_v39, 0.0  ;;  %v779_v42 = vmax.f32 %v747_v40, 0.0 }
 0x131   : > { %v595_v43 = vpop.f32.mrb[24].mxu0  ;;  %v659_v44 = vpop.f32.mrb[24].mxu1 }
 0x132   : > { %795 = vst [vmem:[%s1185_s24 + $0x58] sm:$0xff] %v763_v41  ;;  %811 = vst [vmem:[%s1185_s24 + $0xd8] sm:$0xff] %v779_v42  ;;  %v693_v45 = vmul.f32 %v1167_v47, %v595_v43  ;;  %v709_v46 = vmul.f32 %v1167_v47, %v659_v44  ;;  %v597_v48 = vpop.f32.mrb[25].mxu0  ;;  %v661_v50 = vpop.f32.mrb[25].mxu1 }
 0x133   : > { %v598_v51 = vpop.f32.mrb[26].mxu0  ;;  %v662_v52 = vpop.f32.mrb[26].mxu1 }
 0x134   : > { %v732_v53 = vadd.f32 %v1172_v49, %v693_v45  ;;  %v748_v54 = vadd.f32 %v1172_v49, %v709_v46  ;;  %v694_v55 = vmul.f32 %v1167_v47, %v598_v51  ;;  %v710_v56 = vmul.f32 %v1167_v47, %v662_v52  ;;  %v600_v57 = vpop.f32.mrb[27].mxu0  ;;  %v664_v58 = vpop.f32.mrb[27].mxu1 }
 0x136   : > { %v764_v59 = vmax.f32 %v732_v53, 0.0  ;;  %v780_v60 = vmax.f32 %v748_v54, 0.0  ;;  %v733_v61 = vadd.f32 %v1172_v49, %v694_v55  ;;  %v749_v62 = vadd.f32 %v1172_v49, %v710_v56 }
 0x138   : > { %796 = vst [vmem:[%s1185_s24 + $0x60] sm:$0xff] %v764_v59  ;;  %812 = vst [vmem:[%s1185_s24 + $0xe0] sm:$0xff] %v780_v60  ;;  %v765_v63 = vmax.f32 %v733_v61, 0.0  ;;  %v781_v0 = vmax.f32 %v749_v62, 0.0 }
 0x139   : > { %v603_v1 = vpop.f32.mrb[28].mxu0  ;;  %v667_v2 = vpop.f32.mrb[28].mxu1 }
 0x13a   : > { %797 = vst [vmem:[%s1185_s24 + $0x68] sm:$0xff] %v765_v63  ;;  %813 = vst [vmem:[%s1185_s24 + $0xe8] sm:$0xff] %v781_v0  ;;  %v695_v3 = vmul.f32 %v1167_v47, %v603_v1  ;;  %v711_v4 = vmul.f32 %v1167_v47, %v667_v2  ;;  %v605_v5 = vpop.f32.mrb[29].mxu0  ;;  %v669_v6 = vpop.f32.mrb[29].mxu1 }
 0x13b   : > { %v606_v7 = vpop.f32.mrb[30].mxu0  ;;  %v670_v8 = vpop.f32.mrb[30].mxu1 }
 0x13c   : > { %v734_v9 = vadd.f32 %v1172_v49, %v695_v3  ;;  %v750_v10 = vadd.f32 %v1172_v49, %v711_v4  ;;  %v696_v11 = vmul.f32 %v1167_v47, %v606_v7  ;;  %v712_v12 = vmul.f32 %v1167_v47, %v670_v8  ;;  %v608_v13 = vpop.f32.mrb[31].mxu0  ;;  %v672_v14 = vpop.f32.mrb[31].mxu1 }
 0x13e   : > { %v766_v15 = vmax.f32 %v734_v9, 0.0  ;;  %v782_v16 = vmax.f32 %v750_v10, 0.0  ;;  %v735_v17 = vadd.f32 %v1172_v49, %v696_v11  ;;  %v751_v18 = vadd.f32 %v1172_v49, %v712_v12 }
 0x140   : > { %798 = vst [vmem:[%s1185_s24 + $0x70] sm:$0xff] %v766_v15  ;;  %814 = vst [vmem:[%s1185_s24 + $0xf0] sm:$0xff] %v782_v16  ;;  %v767_v19 = vmax.f32 %v735_v17, 0.0  ;;  %v783_v20 = vmax.f32 %v751_v18, 0.0 }
 0x142   : > { %799 = vst [vmem:[%s1185_s24 + $0x78] sm:$0xff] %v767_v19  ;;  %815 = vst [vmem:[%s1185_s24 + $0xf8] sm:$0xff] %v783_v20 }
 0x143 PF: > { %s14_s15 = sadd.s32 1, %s1039_s15  }
 0x144   : > { %p11_p4 = scmp.ge.s32.totalorder %s14_s15, 4  }
 0x146   :  { %13 = sbr.rel (!%p11_p4) target bundleno = 1 (0x1), region = 66 }

// kernel: _forward.102
= control target key start
LH: loop header
LB: loop body
LE: loop exit
PB: predicated region body
PF: predicated region fallthrough
CT: control target
= control target key end

     0   :  { %s790_s0 = inlined_call_operand.vmem [shape: f32[9,128,128], index: 0, kind: input, shape index: {}]   ;;  %s791_s1 = inlined_call_operand.vmem [shape: f32[128,128], index: 1, kind: output, shape index: {}]  }
   0x1   :  { %v8_v0 = vld [vmem:[%s790_s0] sm:$0xff]  ;;  %v9_v6 = vld [vmem:[%s790_s0 + $0x8] sm:$0xff]  ;;  %v10_v15 = vld [vmem:[%s790_s0 + $0x10] sm:$0xff] }
   0x2   :  { %v24_v1 = vld [vmem:[%s790_s0 + $0x80] sm:$0xff]  ;;  %v25_v7 = vld [vmem:[%s790_s0 + $0x88] sm:$0xff]  ;;  %v26_v16 = vld [vmem:[%s790_s0 + $0x90] sm:$0xff] }
   0x3   :  { %v40_v2 = vld [vmem:[%s790_s0 + $0x100] sm:$0xff]  ;;  %v152_v3 = vmax.f32 %v8_v0, %v24_v1  ;;  %v41_v8 = vld [vmem:[%s790_s0 + $0x108] sm:$0xff]  ;;  %v160_v10 = vmax.f32 %v9_v6, %v25_v7  ;;  %v42_v17 = vld [vmem:[%s790_s0 + $0x110] sm:$0xff]  ;;  %v168_v20 = vmax.f32 %v10_v15, %v26_v16 }
   0x4   :  { %v56_v4 = vld [vmem:[%s790_s0 + $0x180] sm:$0xff]  ;;  %v57_v13 = vld [vmem:[%s790_s0 + $0x188] sm:$0xff]  ;;  %v58_v24 = vld [vmem:[%s790_s0 + $0x190] sm:$0xff] }
   0x5   :  { %v153_v5 = vmax.f32 %v152_v3, %v40_v2  ;;  %v72_v9 = vld [vmem:[%s790_s0 + $0x200] sm:$0xff]  ;;  %v161_v14 = vmax.f32 %v160_v10, %v41_v8  ;;  %v73_v19 = vld [vmem:[%s790_s0 + $0x208] sm:$0xff]  ;;  %v169_v26 = vmax.f32 %v168_v20, %v42_v17  ;;  %v11_v27 = vld [vmem:[%s790_s0 + $0x18] sm:$0xff] }
   0x6   :  { %v88_v11 = vld [vmem:[%s790_s0 + $0x280] sm:$0xff]  ;;  %v89_v22 = vld [vmem:[%s790_s0 + $0x288] sm:$0xff]  ;;  %v27_v28 = vld [vmem:[%s790_s0 + $0x98] sm:$0xff] }
   0x7   :  { %v154_v12 = vmax.f32 %v153_v5, %v56_v4  ;;  %v104_v21 = vld [vmem:[%s790_s0 + $0x300] sm:$0xff]  ;;  %v162_v23 = vmax.f32 %v161_v14, %v57_v13  ;;  %v43_v29 = vld [vmem:[%s790_s0 + $0x118] sm:$0xff]  ;;  %v74_v33 = vld [vmem:[%s790_s0 + $0x210] sm:$0xff]  ;;  %v176_v34 = vmax.f32 %v11_v27, %v27_v28  ;;  %v170_v38 = vmax.f32 %v169_v26, %v58_v24 }
   0x8   :  { %v120_v30 = vld [vmem:[%s790_s0 + $0x380] sm:$0xff]  ;;  %v105_v36 = vld [vmem:[%s790_s0 + $0x308] sm:$0xff]  ;;  %v90_v37 = vld [vmem:[%s790_s0 + $0x290] sm:$0xff] }
   0x9   :  { %v155_v18 = vmax.f32 %v154_v12, %v72_v9  ;;  %v136_v31 = vld [vmem:[%s790_s0 + $0x400] sm:$0xff]  ;;  %v163_v32 = vmax.f32 %v162_v23, %v73_v19  ;;  %v59_v39 = vld [vmem:[%s790_s0 + $0x198] sm:$0xff]  ;;  %v177_v41 = vmax.f32 %v176_v34, %v43_v29  ;;  %v121_v46 = vld [vmem:[%s790_s0 + $0x388] sm:$0xff]  ;;  %v171_v48 = vmax.f32 %v170_v38, %v74_v33 }
   0xa   :  { %v12_v42 = vld [vmem:[%s790_s0 + $0x20] sm:$0xff]  ;;  %v137_v47 = vld [vmem:[%s790_s0 + $0x408] sm:$0xff]  ;;  %v75_v49 = vld [vmem:[%s790_s0 + $0x218] sm:$0xff] }
   0xb   :  { %v156_v25 = vmax.f32 %v155_v18, %v88_v11  ;;  %v164_v40 = vmax.f32 %v163_v32, %v89_v22  ;;  %v28_v43 = vld [vmem:[%s790_s0 + $0xa0] sm:$0xff]  ;;  %v106_v52 = vld [vmem:[%s790_s0 + $0x310] sm:$0xff]  ;;  %v91_v53 = vld [vmem:[%s790_s0 + $0x298] sm:$0xff]  ;;  %v178_v54 = vmax.f32 %v177_v41, %v59_v39  ;;  %v172_v57 = vmax.f32 %v171_v48, %v90_v37 }
   0xc   :  { %v44_v44 = vld [vmem:[%s790_s0 + $0x120] sm:$0xff]  ;;  %v184_v50 = vmax.f32 %v12_v42, %v28_v43  ;;  %v13_v59 = vld [vmem:[%s790_s0 + $0x28] sm:$0xff]  ;;  %v122_v63 = vld [vmem:[%s790_s0 + $0x390] sm:$0xff] }
   0xd   :  { %v157_v35 = vmax.f32 %v156_v25, %v104_v21  ;;  %v165_v51 = vmax.f32 %v164_v40, %v105_v36  ;;  %v60_v55 = vld [vmem:[%s790_s0 + $0x1a0] sm:$0xff]  ;;  %v29_v60 = vld [vmem:[%s790_s0 + $0xa8] sm:$0xff]  ;;  %v138_v0 = vld [vmem:[%s790_s0 + $0x410] sm:$0xff]  ;;  %v179_v1 = vmax.f32 %v178_v54, %v75_v49  ;;  %v173_v4 = vmax.f32 %v172_v57, %v106_v52 }
   0xe   :  { %v185_v58 = vmax.f32 %v184_v50, %v44_v44  ;;  %v45_v61 = vld [vmem:[%s790_s0 + $0x128] sm:$0xff]  ;;  %v76_v2 = vld [vmem:[%s790_s0 + $0x220] sm:$0xff]  ;;  %v192_v3 = vmax.f32 %v13_v59, %v29_v60  ;;  %v107_v5 = vld [vmem:[%s790_s0 + $0x318] sm:$0xff] }
   0xf   :  { %v158_v45 = vmax.f32 %v157_v35, %v120_v30  ;;  %v166_v62 = vmax.f32 %v165_v51, %v121_v46  ;;  %v92_v6 = vld [vmem:[%s790_s0 + $0x2a0] sm:$0xff]  ;;  %v61_v8 = vld [vmem:[%s790_s0 + $0x1a8] sm:$0xff]  ;;  %v180_v10 = vmax.f32 %v179_v1, %v91_v53  ;;  %v14_v12 = vld [vmem:[%s790_s0 + $0x30] sm:$0xff]  ;;  %v174_v15 = vmax.f32 %v173_v4, %v122_v63 }
  0x10   :  { %v186_v7 = vmax.f32 %v185_v58, %v60_v55  ;;  %v193_v11 = vmax.f32 %v192_v3, %v45_v61  ;;  %v30_v13 = vld [vmem:[%s790_s0 + $0xb0] sm:$0xff]  ;;  %v123_v16 = vld [vmem:[%s790_s0 + $0x398] sm:$0xff]  ;;  %v77_v19 = vld [vmem:[%s790_s0 + $0x228] sm:$0xff] }
  0x11   :  { %v159_v56 = vmax.f32 %v158_v45, %v136_v31  ;;  %v167_v9 = vmax.f32 %v166_v62, %v137_v47  ;;  %v46_v14 = vld [vmem:[%s790_s0 + $0x130] sm:$0xff]  ;;  %v139_v17 = vld [vmem:[%s790_s0 + $0x418] sm:$0xff]  ;;  %v200_v20 = vmax.f32 %v14_v12, %v30_v13  ;;  %v181_v21 = vmax.f32 %v180_v10, %v107_v5  ;;  %v108_v22 = vld [vmem:[%s790_s0 + $0x320] sm:$0xff] }
  0x12   :  { %v187_v18 = vmax.f32 %v186_v7, %v76_v2  ;;  %v93_v23 = vld [vmem:[%s790_s0 + $0x2a8] sm:$0xff]  ;;  %v194_v24 = vmax.f32 %v193_v11, %v61_v8  ;;  %v62_v25 = vld [vmem:[%s790_s0 + $0x1b0] sm:$0xff]  ;;  %v175_v26 = vmax.f32 %v174_v15, %v138_v0  ;;  %v15_v29 = vld [vmem:[%s790_s0 + $0x38] sm:$0xff] }
  0x13   :  { %280 = vst [vmem:[%s791_s1] sm:$0xff] %v159_v56  ;;  %281 = vst [vmem:[%s791_s1 + $0x8] sm:$0xff] %v167_v9  ;;  %v201_v28 = vmax.f32 %v200_v20, %v46_v14  ;;  %v31_v30 = vld [vmem:[%s790_s0 + $0xb8] sm:$0xff]  ;;  %v182_v32 = vmax.f32 %v181_v21, %v123_v16  ;;  %v124_v33 = vld [vmem:[%s790_s0 + $0x3a0] sm:$0xff] }
  0x14   :  { %v188_v27 = vmax.f32 %v187_v18, %v92_v6  ;;  %v47_v31 = vld [vmem:[%s790_s0 + $0x138] sm:$0xff]  ;;  %v140_v34 = vld [vmem:[%s790_s0 + $0x420] sm:$0xff]  ;;  %v195_v35 = vmax.f32 %v194_v24, %v77_v19  ;;  %v78_v36 = vld [vmem:[%s790_s0 + $0x230] sm:$0xff]  ;;  %v208_v37 = vmax.f32 %v15_v29, %v31_v30  ;;  %282 = vst [vmem:[%s791_s1 + $0x10] sm:$0xff] %v175_v26 }
  0x15   :  { %v109_v39 = vld [vmem:[%s790_s0 + $0x328] sm:$0xff]  ;;  %v94_v40 = vld [vmem:[%s790_s0 + $0x2b0] sm:$0xff]  ;;  %v202_v41 = vmax.f32 %v201_v28, %v62_v25  ;;  %v63_v42 = vld [vmem:[%s790_s0 + $0x1b8] sm:$0xff]  ;;  %v183_v43 = vmax.f32 %v182_v32, %v139_v17 }
  0x16   :  { %v189_v38 = vmax.f32 %v188_v27, %v108_v22  ;;  %v196_v44 = vmax.f32 %v195_v35, %v93_v23  ;;  %v209_v45 = vmax.f32 %v208_v37, %v47_v31  ;;  %v16_v46 = vld [vmem:[%s790_s0 + $0x40] sm:$0xff]  ;;  %v125_v50 = vld [vmem:[%s790_s0 + $0x3a8] sm:$0xff]  ;;  %v79_v53 = vld [vmem:[%s790_s0 + $0x238] sm:$0xff] }
  0x17   :  { %v32_v47 = vld [vmem:[%s790_s0 + $0xc0] sm:$0xff]  ;;  %v141_v51 = vld [vmem:[%s790_s0 + $0x428] sm:$0xff]  ;;  %v203_v52 = vmax.f32 %v202_v41, %v78_v36  ;;  %283 = vst [vmem:[%s791_s1 + $0x18] sm:$0xff] %v183_v43  ;;  %v110_v56 = vld [vmem:[%s790_s0 + $0x330] sm:$0xff] }
  0x18   :  { %v48_v48 = vld [vmem:[%s790_s0 + $0x140] sm:$0xff]  ;;  %v190_v49 = vmax.f32 %v189_v38, %v124_v33  ;;  %v216_v54 = vmax.f32 %v16_v46, %v32_v47  ;;  %v197_v55 = vmax.f32 %v196_v44, %v109_v39  ;;  %v95_v57 = vld [vmem:[%s790_s0 + $0x2b8] sm:$0xff]  ;;  %v210_v58 = vmax.f32 %v209_v45, %v63_v42  ;;  %v17_v63 = vld [vmem:[%s790_s0 + $0x48] sm:$0xff] }
  0x19   :  { %v64_v59 = vld [vmem:[%s790_s0 + $0x1c0] sm:$0xff]  ;;  %v204_v61 = vmax.f32 %v203_v52, %v94_v40  ;;  %v33_v0 = vld [vmem:[%s790_s0 + $0xc8] sm:$0xff]  ;;  %v126_v3 = vld [vmem:[%s790_s0 + $0x3b0] sm:$0xff] }
  0x1a   :  { %v191_v60 = vmax.f32 %v190_v49, %v140_v34  ;;  %v217_v62 = vmax.f32 %v216_v54, %v48_v48  ;;  %v49_v1 = vld [vmem:[%s790_s0 + $0x148] sm:$0xff]  ;;  %v198_v2 = vmax.f32 %v197_v55, %v125_v50  ;;  %v142_v4 = vld [vmem:[%s790_s0 + $0x430] sm:$0xff]  ;;  %v211_v5 = vmax.f32 %v210_v58, %v79_v53  ;;  %v80_v6 = vld [vmem:[%s790_s0 + $0x240] sm:$0xff] }
  0x1b   :  { %v224_v7 = vmax.f32 %v17_v63, %v33_v0  ;;  %v205_v8 = vmax.f32 %v204_v61, %v110_v56  ;;  %v111_v9 = vld [vmem:[%s790_s0 + $0x338] sm:$0xff]  ;;  %v96_v10 = vld [vmem:[%s790_s0 + $0x2c0] sm:$0xff]  ;;  %v65_v12 = vld [vmem:[%s790_s0 + $0x1c8] sm:$0xff] }
  0x1c   :  { %284 = vst [vmem:[%s791_s1 + $0x20] sm:$0xff] %v191_v60  ;;  %v218_v11 = vmax.f32 %v217_v62, %v64_v59  ;;  %v199_v13 = vmax.f32 %v198_v2, %v141_v51  ;;  %v212_v14 = vmax.f32 %v211_v5, %v95_v57  ;;  %v18_v16 = vld [vmem:[%s790_s0 + $0x50] sm:$0xff]  ;;  %v127_v20 = vld [vmem:[%s790_s0 + $0x3b8] sm:$0xff]  ;;  %v81_v23 = vld [vmem:[%s790_s0 + $0x248] sm:$0xff] }
  0x1d   :  { %v225_v15 = vmax.f32 %v224_v7, %v49_v1  ;;  %v34_v17 = vld [vmem:[%s790_s0 + $0xd0] sm:$0xff]  ;;  %v206_v19 = vmax.f32 %v205_v8, %v126_v3  ;;  %v143_v21 = vld [vmem:[%s790_s0 + $0x438] sm:$0xff]  ;;  %v112_v26 = vld [vmem:[%s790_s0 + $0x340] sm:$0xff] }
  0x1e   :  { %v50_v18 = vld [vmem:[%s790_s0 + $0x150] sm:$0xff]  ;;  %v219_v22 = vmax.f32 %v218_v11, %v80_v6  ;;  %v232_v24 = vmax.f32 %v18_v16, %v34_v17  ;;  %285 = vst [vmem:[%s791_s1 + $0x28] sm:$0xff] %v199_v13  ;;  %v213_v25 = vmax.f32 %v212_v14, %v111_v9  ;;  %v97_v27 = vld [vmem:[%s790_s0 + $0x2c8] sm:$0xff]  ;;  %v19_v33 = vld [vmem:[%s790_s0 + $0x58] sm:$0xff] }
  0x1f   :  { %v226_v28 = vmax.f32 %v225_v15, %v65_v12  ;;  %v66_v29 = vld [vmem:[%s790_s0 + $0x1d0] sm:$0xff]  ;;  %v207_v30 = vmax.f32 %v206_v19, %v142_v4  ;;  %v35_v34 = vld [vmem:[%s790_s0 + $0xd8] sm:$0xff]  ;;  %v128_v37 = vld [vmem:[%s790_s0 + $0x3c0] sm:$0xff] }
  0x20   :  { %v220_v31 = vmax.f32 %v219_v22, %v96_v10  ;;  %v233_v32 = vmax.f32 %v232_v24, %v50_v18  ;;  %v51_v35 = vld [vmem:[%s790_s0 + $0x158] sm:$0xff]  ;;  %v214_v36 = vmax.f32 %v213_v25, %v127_v20  ;;  %v144_v38 = vld [vmem:[%s790_s0 + $0x440] sm:$0xff]  ;;  %v82_v40 = vld [vmem:[%s790_s0 + $0x250] sm:$0xff]  ;;  %v240_v41 = vmax.f32 %v19_v33, %v35_v34 }
  0x21   :  { %v227_v39 = vmax.f32 %v226_v28, %v81_v23  ;;  %286 = vst [vmem:[%s791_s1 + $0x30] sm:$0xff] %v207_v30  ;;  %v113_v43 = vld [vmem:[%s790_s0 + $0x348] sm:$0xff]  ;;  %v98_v44 = vld [vmem:[%s790_s0 + $0x2d0] sm:$0xff]  ;;  %v67_v46 = vld [vmem:[%s790_s0 + $0x1d8] sm:$0xff] }
  0x22   :  { %v221_v42 = vmax.f32 %v220_v31, %v112_v26  ;;  %v234_v45 = vmax.f32 %v233_v32, %v66_v29  ;;  %v215_v47 = vmax.f32 %v214_v36, %v143_v21  ;;  %v241_v49 = vmax.f32 %v240_v41, %v51_v35  ;;  %v20_v50 = vld [vmem:[%s790_s0 + $0x60] sm:$0xff]  ;;  %v129_v54 = vld [vmem:[%s790_s0 + $0x3c8] sm:$0xff]  ;;  %v83_v57 = vld [vmem:[%s790_s0 + $0x258] sm:$0xff] }
  0x23   :  { %v228_v48 = vmax.f32 %v227_v39, %v97_v27  ;;  %v36_v51 = vld [vmem:[%s790_s0 + $0xe0] sm:$0xff]  ;;  %v145_v55 = vld [vmem:[%s790_s0 + $0x448] sm:$0xff]  ;;  %v114_v60 = vld [vmem:[%s790_s0 + $0x350] sm:$0xff] }
  0x24   :  { %v52_v52 = vld [vmem:[%s790_s0 + $0x160] sm:$0xff]  ;;  %v222_v53 = vmax.f32 %v221_v42, %v128_v37  ;;  %v235_v56 = vmax.f32 %v234_v45, %v82_v40  ;;  %v248_v58 = vmax.f32 %v20_v50, %v36_v51  ;;  %287 = vst [vmem:[%s791_s1 + $0x38] sm:$0xff] %v215_v47  ;;  %v99_v61 = vld [vmem:[%s790_s0 + $0x2d8] sm:$0xff]  ;;  %v242_v62 = vmax.f32 %v241_v49, %v67_v46  ;;  %v21_v3 = vld [vmem:[%s790_s0 + $0x68] sm:$0xff] }
  0x25   :  { %v229_v59 = vmax.f32 %v228_v48, %v113_v43  ;;  %v68_v63 = vld [vmem:[%s790_s0 + $0x1e0] sm:$0xff]  ;;  %v37_v4 = vld [vmem:[%s790_s0 + $0xe8] sm:$0xff]  ;;  %v130_v7 = vld [vmem:[%s790_s0 + $0x3d0] sm:$0xff] }
  0x26   :  { %v223_v0 = vmax.f32 %v222_v53, %v144_v38  ;;  %v236_v1 = vmax.f32 %v235_v56, %v98_v44  ;;  %v249_v2 = vmax.f32 %v248_v58, %v52_v52  ;;  %v53_v5 = vld [vmem:[%s790_s0 + $0x168] sm:$0xff]  ;;  %v146_v8 = vld [vmem:[%s790_s0 + $0x450] sm:$0xff]  ;;  %v243_v9 = vmax.f32 %v242_v62, %v83_v57  ;;  %v84_v10 = vld [vmem:[%s790_s0 + $0x260] sm:$0xff] }
  0x27   :  { %v230_v6 = vmax.f32 %v229_v59, %v129_v54  ;;  %v256_v11 = vmax.f32 %v21_v3, %v37_v4  ;;  %v115_v13 = vld [vmem:[%s790_s0 + $0x358] sm:$0xff]  ;;  %v100_v14 = vld [vmem:[%s790_s0 + $0x2e0] sm:$0xff]  ;;  %v69_v16 = vld [vmem:[%s790_s0 + $0x1e8] sm:$0xff] }
  0x28   :  { %288 = vst [vmem:[%s791_s1 + $0x40] sm:$0xff] %v223_v0  ;;  %v237_v12 = vmax.f32 %v236_v1, %v114_v60  ;;  %v250_v15 = vmax.f32 %v249_v2, %v68_v63  ;;  %v244_v18 = vmax.f32 %v243_v9, %v99_v61  ;;  %v22_v20 = vld [vmem:[%s790_s0 + $0x70] sm:$0xff]  ;;  %v131_v24 = vld [vmem:[%s790_s0 + $0x3d8] sm:$0xff]  ;;  %v85_v27 = vld [vmem:[%s790_s0 + $0x268] sm:$0xff] }
  0x29   :  { %v231_v17 = vmax.f32 %v230_v6, %v145_v55  ;;  %v257_v19 = vmax.f32 %v256_v11, %v53_v5  ;;  %v38_v21 = vld [vmem:[%s790_s0 + $0xf0] sm:$0xff]  ;;  %v147_v25 = vld [vmem:[%s790_s0 + $0x458] sm:$0xff]  ;;  %v116_v30 = vld [vmem:[%s790_s0 + $0x360] sm:$0xff] }
  0x2a   :  { %v54_v22 = vld [vmem:[%s790_s0 + $0x170] sm:$0xff]  ;;  %v238_v23 = vmax.f32 %v237_v12, %v130_v7  ;;  %v251_v26 = vmax.f32 %v250_v15, %v84_v10  ;;  %v264_v28 = vmax.f32 %v22_v20, %v38_v21  ;;  %v245_v29 = vmax.f32 %v244_v18, %v115_v13  ;;  %v101_v31 = vld [vmem:[%s790_s0 + $0x2e8] sm:$0xff]  ;;  %v23_v37 = vld [vmem:[%s790_s0 + $0x78] sm:$0xff] }
  0x2b   :  { %289 = vst [vmem:[%s791_s1 + $0x48] sm:$0xff] %v231_v17  ;;  %v258_v32 = vmax.f32 %v257_v19, %v69_v16  ;;  %v70_v33 = vld [vmem:[%s790_s0 + $0x1f0] sm:$0xff]  ;;  %v39_v38 = vld [vmem:[%s790_s0 + $0xf8] sm:$0xff]  ;;  %v132_v41 = vld [vmem:[%s790_s0 + $0x3e0] sm:$0xff] }
  0x2c   :  { %v239_v34 = vmax.f32 %v238_v23, %v146_v8  ;;  %v252_v35 = vmax.f32 %v251_v26, %v100_v14  ;;  %v265_v36 = vmax.f32 %v264_v28, %v54_v22  ;;  %v55_v39 = vld [vmem:[%s790_s0 + $0x178] sm:$0xff]  ;;  %v246_v40 = vmax.f32 %v245_v29, %v131_v24  ;;  %v86_v43 = vld [vmem:[%s790_s0 + $0x270] sm:$0xff]  ;;  %v117_v46 = vld [vmem:[%s790_s0 + $0x368] sm:$0xff] }
  0x2d   :  { %v259_v42 = vmax.f32 %v258_v32, %v85_v27  ;;  %v272_v44 = vmax.f32 %v23_v37, %v39_v38  ;;  %v71_v48 = vld [vmem:[%s790_s0 + $0x1f8] sm:$0xff]  ;;  %v148_v50 = vld [vmem:[%s790_s0 + $0x460] sm:$0xff]  ;;  %v102_v52 = vld [vmem:[%s790_s0 + $0x2f0] sm:$0xff] }
  0x2e   :  { %290 = vst [vmem:[%s791_s1 + $0x50] sm:$0xff] %v239_v34  ;;  %v253_v45 = vmax.f32 %v252_v35, %v116_v30  ;;  %v266_v47 = vmax.f32 %v265_v36, %v70_v33  ;;  %v247_v49 = vmax.f32 %v246_v40, %v147_v25  ;;  %v133_v55 = vld [vmem:[%s790_s0 + $0x3e8] sm:$0xff]  ;;  %v87_v57 = vld [vmem:[%s790_s0 + $0x278] sm:$0xff]  ;;  %v118_v59 = vld [vmem:[%s790_s0 + $0x370] sm:$0xff] }
  0x2f   :  { %v260_v51 = vmax.f32 %v259_v42, %v101_v31  ;;  %v273_v53 = vmax.f32 %v272_v44, %v55_v39  ;;  %v149_v62 = vld [vmem:[%s790_s0 + $0x468] sm:$0xff]  ;;  %v103_v0 = vld [vmem:[%s790_s0 + $0x2f8] sm:$0xff]  ;;  %v134_v2 = vld [vmem:[%s790_s0 + $0x3f0] sm:$0xff] }
  0x30   :  { %v254_v54 = vmax.f32 %v253_v45, %v132_v41  ;;  %v267_v56 = vmax.f32 %v266_v47, %v86_v43  ;;  %291 = vst [vmem:[%s791_s1 + $0x58] sm:$0xff] %v247_v49  ;;  %v119_v5 = vld [vmem:[%s790_s0 + $0x378] sm:$0xff]  ;;  %v150_v7 = vld [vmem:[%s790_s0 + $0x470] sm:$0xff] }
  0x31   :  { %v261_v58 = vmax.f32 %v260_v51, %v117_v46  ;;  %v274_v60 = vmax.f32 %v273_v53, %v71_v48  ;;  %v135_v10 = vld [vmem:[%s790_s0 + $0x3f8] sm:$0xff] }
  0x32   :  { %v255_v61 = vmax.f32 %v254_v54, %v148_v50  ;;  %v268_v63 = vmax.f32 %v267_v56, %v102_v52  ;;  %v151_v13 = vld [vmem:[%s790_s0 + $0x478] sm:$0xff] }
  0x33   :  { %v262_v1 = vmax.f32 %v261_v58, %v133_v55  ;;  %v275_v3 = vmax.f32 %v274_v60, %v87_v57 }
  0x34   :  { %292 = vst [vmem:[%s791_s1 + $0x60] sm:$0xff] %v255_v61  ;;  %v269_v4 = vmax.f32 %v268_v63, %v118_v59 }
  0x35   :  { %v263_v6 = vmax.f32 %v262_v1, %v149_v62  ;;  %v276_v8 = vmax.f32 %v275_v3, %v103_v0 }
  0x36   :  { %v270_v9 = vmax.f32 %v269_v4, %v134_v2 }
  0x37   :  { %293 = vst [vmem:[%s791_s1 + $0x68] sm:$0xff] %v263_v6  ;;  %v277_v11 = vmax.f32 %v276_v8, %v119_v5 }
  0x38   :  { %v271_v12 = vmax.f32 %v270_v9, %v150_v7 }
  0x39   :  { %v278_v14 = vmax.f32 %v277_v11, %v135_v10 }
  0x3a   :  { %294 = vst [vmem:[%s791_s1 + $0x70] sm:$0xff] %v271_v12 }
  0x3b   :  { %v279_v15 = vmax.f32 %v278_v14, %v151_v13 }
  0x3d   :  { %295 = vst [vmem:[%s791_s1 + $0x78] sm:$0xff] %v279_v15 }

// kernel: _forward.103
= control target key start
LH: loop header
LB: loop body
LE: loop exit
PB: predicated region body
PF: predicated region fallthrough
CT: control target
= control target key end

     0   :  { %vm110_vm0 = vcmask 588800   ;;  %vm135_vm1 = vcmask 1043456   ;;  %s549_s1 = inlined_call_operand.vmem [shape: bf16[72,128], index: 1, kind: input, shape index: {}]   ;;  %s550_s0 = inlined_call_operand.vmem [shape: bf16[128,72], index: 0, kind: input, shape index: {}]   ;;  %s551_s2 = inlined_call_operand.vmem [shape: f32[1,128], index: 2, kind: input, shape index: {}]   ;;  %s552_s3 = inlined_call_operand.vmem [shape: f32[1,128], index: 3, kind: input, shape index: {}]   ;;  %s553_s4 = inlined_call_operand.vmem [shape: f32[128,128], index: 4, kind: output, shape index: {}]  }
   0x1   :  { %v392_v0 = vld [vmem:[%s549_s1] sm:$0xff]   ;;  %v393_v1 = vld [vmem:[%s549_s1 + $0x8] sm:$0xff]   ;;  %v394_v2 = vld [vmem:[%s549_s1 + $0x10] sm:$0xff]  }
   0x2   :  { %354 = vmatprep.subr.bf16.mxu0 %v392_v0  ;;  %380 = vmatprep.subr.bf16.mxu1 %v392_v0  ;;  %v397_v3 = vld [vmem:[%s550_s0] sm:$0xff]   ;;  %v395_v5 = vld [vmem:[%s549_s1 + $0x18] sm:$0xff]   ;;  %v399_v8 = vld [vmem:[%s550_s0 + $0x8] sm:$0xff]  }
   0x3   :  { %355 = vmatpush3.bf16.msra.mxu0 %v392_v0  ;;  %385 = vmatpush3.bf16.msra.mxu1 %v392_v0  ;;  %v398_v4 = vld [vmem:[%s550_s0 + $0x20] sm:$0xff]   ;;  %v400_v9 = vld [vmem:[%s550_s0 + $0x28] sm:$0xff]   ;;  %v401_v10 = vld [vmem:[%s550_s0 + $0x10] sm:$0xff]  }
   0x4   :  { %356 = vmatprep.subr.bf16.mxu0 %v393_v1  ;;  %381 = vmatprep.subr.bf16.mxu1 %v393_v1  ;;  %v396_v6 = vld [vmem:[%s549_s1 + $0x20] ss:$0 sps:$4 sm:$0xff]   ;;  %v402_v11 = vld [vmem:[%s550_s0 + $0x30] sm:$0xff]   ;;  %v403_v12 = vld [vmem:[%s550_s0 + $0x18] sm:$0xff]  }
   0x5   :  { %364 = vmatprep.mubr.msk.bf16.mxu0 %vm110_vm0, %v397_v3  ;;  %372 = vmatprep.mubr.msk.bf16.mxu1 %vm110_vm0, %v398_v4  ;;  %v137_v7 = vsel %vm135_vm1, %v396_v6, 0  ;;  %v404_v13 = vld [vmem:[%s550_s0 + $0x38] sm:$0xff]   ;;  %v339_v14 = vld [vmem:[%s551_s2] ss:$0 sm:$0xff] }
   0x6   :  { %v483_v16 = vld [vmem:[%s552_s3] ss:$0 sm:$0xff] }
   0x7   :  { %357 = vmatpush3.bf16.msra.mxu0 %v393_v1  ;;  %386 = vmatpush3.bf16.msra.mxu1 %v393_v1 }
   0x8   :  { %358 = vmatprep.subr.bf16.mxu0 %v394_v2  ;;  %382 = vmatprep.subr.bf16.mxu1 %v394_v2 }
   0xb   :  { %359 = vmatpush3.bf16.msra.mxu0 %v394_v2  ;;  %387 = vmatpush3.bf16.msra.mxu1 %v394_v2 }
   0xc   :  { %360 = vmatprep.subr.bf16.mxu0 %v395_v5  ;;  %383 = vmatprep.subr.bf16.mxu1 %v395_v5 }
   0xf   :  { %361 = vmatpush3.bf16.msra.mxu0 %v395_v5  ;;  %388 = vmatpush3.bf16.msra.mxu1 %v395_v5 }
  0x10   :  { %390 = vmatprep.subr.msk.bf16.mxu0 %vm135_vm1, %v396_v6  ;;  %391 = vmatprep.subr.msk.bf16.mxu1 %vm135_vm1, %v396_v6 }
  0x13   :  { %363 = vmatpush3.bf16.msra.mxu0 %v137_v7  ;;  %389 = vmatpush3.bf16.msra.mxu1 %v137_v7 }
  0x16   :  { %365 = vmatmul.mubr.msk.bf16.vlgmr.msra.gmra.mrb[0].mxu0 %vm110_vm0, %v399_v8  ;;  %373 = vmatmul.mubr.msk.bf16.vlgmr.msra.gmra.mrb[0].mxu1 %vm110_vm0, %v400_v9 }
  0x17   :  { %368 = vmatprep.mubr.msk.bf16.mxu0 %vm110_vm0, %v401_v10  ;;  %376 = vmatprep.mubr.msk.bf16.mxu1 %vm110_vm0, %v402_v11 }
  0x1e   :  { %369 = vmatmul.mubr.msk.bf16.gmra.mrb[4].mxu0 %vm110_vm0, %v403_v12  ;;  %377 = vmatmul.mubr.msk.bf16.gmra.mrb[4].mxu1 %vm110_vm0, %v404_v13 }
  0xe9   :  { %v366_v15 = vpop.f32.mrb[0].mxu0  ;;  %v374_v17 = vpop.f32.mrb[0].mxu1 }
  0xea   :  { %v245_v18 = vmul.f32 %v366_v15, %v339_v14  ;;  %v253_v19 = vmul.f32 %v374_v17, %v339_v14  ;;  %v173_v20 = vpop.f32.mrb[1].mxu0  ;;  %v205_v21 = vpop.f32.mrb[1].mxu1 }
  0xeb   :  { %v243_v22 = vmul.f32 %v339_v14, %v173_v20  ;;  %v251_v23 = vmul.f32 %v339_v14, %v205_v21  ;;  %v367_v24 = vpop.f32.mrb[2].mxu0  ;;  %v375_v25 = vpop.f32.mrb[2].mxu1 }
  0xec   :  { %v268_v26 = vadd.f32 %v483_v16, %v245_v18  ;;  %v276_v27 = vadd.f32 %v483_v16, %v253_v19  ;;  %v246_v28 = vmul.f32 %v367_v24, %v339_v14  ;;  %v254_v29 = vmul.f32 %v375_v25, %v339_v14  ;;  %v176_v30 = vpop.f32.mrb[3].mxu0  ;;  %v208_v31 = vpop.f32.mrb[3].mxu1 }
  0xed   :  { %v266_v32 = vadd.f32 %v483_v16, %v243_v22  ;;  %v274_v33 = vadd.f32 %v483_v16, %v251_v23  ;;  %v244_v34 = vmul.f32 %v339_v14, %v176_v30  ;;  %v252_v35 = vmul.f32 %v339_v14, %v208_v31 }
  0xee   :  { %v284_v36 = vmax.f32 %v268_v26, 0.0  ;;  %v292_v37 = vmax.f32 %v276_v27, 0.0  ;;  %v269_v38 = vadd.f32 %v483_v16, %v246_v28  ;;  %v277_v39 = vadd.f32 %v483_v16, %v254_v29 }
  0xef   :  { %v282_v40 = vmax.f32 %v266_v32, 0.0  ;;  %v290_v41 = vmax.f32 %v274_v33, 0.0  ;;  %v267_v42 = vadd.f32 %v483_v16, %v244_v34  ;;  %v275_v43 = vadd.f32 %v483_v16, %v252_v35 }
  0xf0   :  { %300 = vst [vmem:[%s553_s4 + $0x10] sm:$0xff] %v284_v36  ;;  %308 = vst [vmem:[%s553_s4 + $0x50] sm:$0xff] %v292_v37  ;;  %v285_v44 = vmax.f32 %v269_v38, 0.0  ;;  %v293_v45 = vmax.f32 %v277_v39, 0.0 }
  0xf1   :  { %298 = vst [vmem:[%s553_s4] sm:$0xff] %v282_v40  ;;  %306 = vst [vmem:[%s553_s4 + $0x40] sm:$0xff] %v290_v41  ;;  %v283_v46 = vmax.f32 %v267_v42, 0.0  ;;  %v291_v47 = vmax.f32 %v275_v43, 0.0  ;;  %v370_v48 = vpop.f32.mrb[4].mxu0  ;;  %v378_v49 = vpop.f32.mrb[4].mxu1 }
  0xf2   :  { %301 = vst [vmem:[%s553_s4 + $0x18] sm:$0xff] %v285_v44  ;;  %309 = vst [vmem:[%s553_s4 + $0x58] sm:$0xff] %v293_v45  ;;  %v249_v50 = vmul.f32 %v370_v48, %v339_v14  ;;  %v257_v51 = vmul.f32 %v378_v49, %v339_v14  ;;  %v189_v52 = vpop.f32.mrb[5].mxu0  ;;  %v221_v53 = vpop.f32.mrb[5].mxu1 }
  0xf3   :  { %299 = vst [vmem:[%s553_s4 + $0x8] sm:$0xff] %v283_v46  ;;  %307 = vst [vmem:[%s553_s4 + $0x48] sm:$0xff] %v291_v47  ;;  %v247_v54 = vmul.f32 %v339_v14, %v189_v52  ;;  %v255_v55 = vmul.f32 %v339_v14, %v221_v53  ;;  %v371_v56 = vpop.f32.mrb[6].mxu0  ;;  %v379_v57 = vpop.f32.mrb[6].mxu1 }
  0xf4   :  { %v272_v58 = vadd.f32 %v483_v16, %v249_v50  ;;  %v280_v59 = vadd.f32 %v483_v16, %v257_v51  ;;  %v250_v60 = vmul.f32 %v371_v56, %v339_v14  ;;  %v258_v61 = vmul.f32 %v379_v57, %v339_v14  ;;  %v192_v62 = vpop.f32.mrb[7].mxu0  ;;  %v224_v63 = vpop.f32.mrb[7].mxu1 }
  0xf5   :  { %v270_v0 = vadd.f32 %v483_v16, %v247_v54  ;;  %v278_v1 = vadd.f32 %v483_v16, %v255_v55  ;;  %v248_v2 = vmul.f32 %v339_v14, %v192_v62  ;;  %v256_v3 = vmul.f32 %v339_v14, %v224_v63 }
  0xf6   :  { %v288_v4 = vmax.f32 %v272_v58, 0.0  ;;  %v296_v5 = vmax.f32 %v280_v59, 0.0  ;;  %v273_v6 = vadd.f32 %v483_v16, %v250_v60  ;;  %v281_v7 = vadd.f32 %v483_v16, %v258_v61 }
  0xf7   :  { %v286_v8 = vmax.f32 %v270_v0, 0.0  ;;  %v294_v9 = vmax.f32 %v278_v1, 0.0  ;;  %v271_v10 = vadd.f32 %v483_v16, %v248_v2  ;;  %v279_v11 = vadd.f32 %v483_v16, %v256_v3 }
  0xf8   :  { %304 = vst [vmem:[%s553_s4 + $0x30] sm:$0xff] %v288_v4  ;;  %312 = vst [vmem:[%s553_s4 + $0x70] sm:$0xff] %v296_v5  ;;  %v289_v12 = vmax.f32 %v273_v6, 0.0  ;;  %v297_v13 = vmax.f32 %v281_v7, 0.0 }
  0xf9   :  { %302 = vst [vmem:[%s553_s4 + $0x20] sm:$0xff] %v286_v8  ;;  %310 = vst [vmem:[%s553_s4 + $0x60] sm:$0xff] %v294_v9  ;;  %v287_v14 = vmax.f32 %v271_v10, 0.0  ;;  %v295_v15 = vmax.f32 %v279_v11, 0.0 }
  0xfa   :  { %305 = vst [vmem:[%s553_s4 + $0x38] sm:$0xff] %v289_v12  ;;  %313 = vst [vmem:[%s553_s4 + $0x78] sm:$0xff] %v297_v13 }
  0xfb   :  { %303 = vst [vmem:[%s553_s4 + $0x28] sm:$0xff] %v287_v14  ;;  %311 = vst [vmem:[%s553_s4 + $0x68] sm:$0xff] %v295_v15 }

// kernel: _forward.104
= control target key start
LH: loop header
LB: loop body
LE: loop exit
PB: predicated region body
PF: predicated region fallthrough
CT: control target
= control target key end

     0   :  { %vm113_vm0 = vcmask 588800   ;;  %vm138_vm1 = vcmask 1043456   ;;  %s655_s1 = inlined_call_operand.vmem [shape: bf16[72,128], index: 1, kind: input, shape index: {}]   ;;  %s656_s0 = inlined_call_operand.vmem [shape: bf16[128,72], index: 0, kind: input, shape index: {}]   ;;  %s657_s2 = inlined_call_operand.vmem [shape: f32[1,128], index: 2, kind: input, shape index: {}]   ;;  %s658_s3 = inlined_call_operand.vmem [shape: f32[1,128], index: 3, kind: input, shape index: {}]   ;;  %s659_s4 = inlined_call_operand.vmem [shape: f32[128,128], index: 4, kind: input, shape index: {}]   ;;  %s660_s5 = inlined_call_operand.vmem [shape: f32[128,128], index: 5, kind: output, shape index: {}]  }
   0x1   :  { %v427_v0 = vld [vmem:[%s655_s1] sm:$0xff]   ;;  %v428_v1 = vld [vmem:[%s655_s1 + $0x8] sm:$0xff]   ;;  %v429_v2 = vld [vmem:[%s655_s1 + $0x10] sm:$0xff]  }
   0x2   :  { %389 = vmatprep.subr.bf16.mxu0 %v427_v0  ;;  %415 = vmatprep.subr.bf16.mxu1 %v427_v0  ;;  %v432_v3 = vld [vmem:[%s656_s0] sm:$0xff]   ;;  %v430_v5 = vld [vmem:[%s655_s1 + $0x18] sm:$0xff]   ;;  %v434_v8 = vld [vmem:[%s656_s0 + $0x8] sm:$0xff]  }
   0x3   :  { %390 = vmatpush3.bf16.msra.mxu0 %v427_v0  ;;  %420 = vmatpush3.bf16.msra.mxu1 %v427_v0  ;;  %v433_v4 = vld [vmem:[%s656_s0 + $0x20] sm:$0xff]   ;;  %v435_v9 = vld [vmem:[%s656_s0 + $0x28] sm:$0xff]   ;;  %v436_v10 = vld [vmem:[%s656_s0 + $0x10] sm:$0xff]  }
   0x4   :  { %391 = vmatprep.subr.bf16.mxu0 %v428_v1  ;;  %416 = vmatprep.subr.bf16.mxu1 %v428_v1  ;;  %v431_v6 = vld [vmem:[%s655_s1 + $0x20] ss:$0 sps:$4 sm:$0xff]   ;;  %v437_v11 = vld [vmem:[%s656_s0 + $0x30] sm:$0xff]   ;;  %v438_v12 = vld [vmem:[%s656_s0 + $0x18] sm:$0xff]  }
   0x5   :  { %399 = vmatprep.mubr.msk.bf16.mxu0 %vm113_vm0, %v432_v3  ;;  %407 = vmatprep.mubr.msk.bf16.mxu1 %vm113_vm0, %v433_v4  ;;  %v140_v7 = vsel %vm138_vm1, %v431_v6, 0  ;;  %v439_v13 = vld [vmem:[%s656_s0 + $0x38] sm:$0xff]   ;;  %v520_v14 = vld [vmem:[%s657_s2] ss:$0 sm:$0xff]  ;;  %v287_v22 = vld [vmem:[%s659_s4 + $0x10] sm:$0xff] }
   0x6   :  { %v525_v16 = vld [vmem:[%s658_s3] ss:$0 sm:$0xff]  ;;  %v295_v23 = vld [vmem:[%s659_s4 + $0x50] sm:$0xff]  ;;  %v288_v38 = vld [vmem:[%s659_s4 + $0x18] sm:$0xff] }
   0x7   :  { %392 = vmatpush3.bf16.msra.mxu0 %v428_v1  ;;  %421 = vmatpush3.bf16.msra.mxu1 %v428_v1  ;;  %v285_v30 = vld [vmem:[%s659_s4] sm:$0xff]  ;;  %v296_v39 = vld [vmem:[%s659_s4 + $0x58] sm:$0xff]  ;;  %v286_v46 = vld [vmem:[%s659_s4 + $0x8] sm:$0xff] }
   0x8   :  { %393 = vmatprep.subr.bf16.mxu0 %v429_v2  ;;  %417 = vmatprep.subr.bf16.mxu1 %v429_v2  ;;  %v293_v31 = vld [vmem:[%s659_s4 + $0x40] sm:$0xff]  ;;  %v294_v47 = vld [vmem:[%s659_s4 + $0x48] sm:$0xff] }
   0xb   :  { %394 = vmatpush3.bf16.msra.mxu0 %v429_v2  ;;  %422 = vmatpush3.bf16.msra.mxu1 %v429_v2 }
   0xc   :  { %395 = vmatprep.subr.bf16.mxu0 %v430_v5  ;;  %418 = vmatprep.subr.bf16.mxu1 %v430_v5 }
   0xf   :  { %396 = vmatpush3.bf16.msra.mxu0 %v430_v5  ;;  %423 = vmatpush3.bf16.msra.mxu1 %v430_v5 }
  0x10   :  { %425 = vmatprep.subr.msk.bf16.mxu0 %vm138_vm1, %v431_v6  ;;  %426 = vmatprep.subr.msk.bf16.mxu1 %vm138_vm1, %v431_v6  ;;  %v291_v6 = vld [vmem:[%s659_s4 + $0x30] sm:$0xff] }
  0x13   :  { %398 = vmatpush3.bf16.msra.mxu0 %v140_v7  ;;  %424 = vmatpush3.bf16.msra.mxu1 %v140_v7  ;;  %v299_v7 = vld [vmem:[%s659_s4 + $0x70] sm:$0xff] }
  0x16   :  { %400 = vmatmul.mubr.msk.bf16.vlgmr.msra.gmra.mrb[0].mxu0 %vm113_vm0, %v434_v8  ;;  %408 = vmatmul.mubr.msk.bf16.vlgmr.msra.gmra.mrb[0].mxu1 %vm113_vm0, %v435_v9 }
  0x17   :  { %403 = vmatprep.mubr.msk.bf16.mxu0 %vm113_vm0, %v436_v10  ;;  %411 = vmatprep.mubr.msk.bf16.mxu1 %vm113_vm0, %v437_v11 }
  0x1e   :  { %404 = vmatmul.mubr.msk.bf16.gmra.mrb[4].mxu0 %vm113_vm0, %v438_v12  ;;  %412 = vmatmul.mubr.msk.bf16.gmra.mrb[4].mxu1 %vm113_vm0, %v439_v13 }
  0xe9   :  { %v401_v15 = vpop.f32.mrb[0].mxu0  ;;  %v409_v17 = vpop.f32.mrb[0].mxu1 }
  0xea   :  { %v248_v18 = vmul.f32 %v401_v15, %v520_v14  ;;  %v256_v19 = vmul.f32 %v409_v17, %v520_v14  ;;  %v176_v20 = vpop.f32.mrb[1].mxu0  ;;  %v208_v21 = vpop.f32.mrb[1].mxu1  ;;  %v289_v15 = vld [vmem:[%s659_s4 + $0x20] sm:$0xff] }
  0xeb   :  { %v246_v24 = vmul.f32 %v520_v14, %v176_v20  ;;  %v254_v25 = vmul.f32 %v520_v14, %v208_v21  ;;  %v402_v26 = vpop.f32.mrb[2].mxu0  ;;  %v410_v27 = vpop.f32.mrb[2].mxu1  ;;  %v297_v17 = vld [vmem:[%s659_s4 + $0x60] sm:$0xff] }
  0xec   :  { %v271_v28 = vadd.f32 %v525_v16, %v248_v18  ;;  %v279_v29 = vadd.f32 %v525_v16, %v256_v19  ;;  %v249_v32 = vmul.f32 %v402_v26, %v520_v14  ;;  %v257_v33 = vmul.f32 %v410_v27, %v520_v14  ;;  %v179_v34 = vpop.f32.mrb[3].mxu0  ;;  %v211_v35 = vpop.f32.mrb[3].mxu1 }
  0xed   :  { %v269_v36 = vadd.f32 %v525_v16, %v246_v24  ;;  %v277_v37 = vadd.f32 %v525_v16, %v254_v25  ;;  %v247_v40 = vmul.f32 %v520_v14, %v179_v34  ;;  %v255_v41 = vmul.f32 %v520_v14, %v211_v35  ;;  %v292_v24 = vld [vmem:[%s659_s4 + $0x38] sm:$0xff] }
  0xee   :  { %v303_v42 = vadd.f32 %v287_v22, %v271_v28  ;;  %v311_v43 = vadd.f32 %v295_v23, %v279_v29  ;;  %v272_v44 = vadd.f32 %v525_v16, %v249_v32  ;;  %v280_v45 = vadd.f32 %v525_v16, %v257_v33  ;;  %v300_v25 = vld [vmem:[%s659_s4 + $0x78] sm:$0xff]  ;;  %v290_v32 = vld [vmem:[%s659_s4 + $0x28] sm:$0xff] }
  0xef   :  { %v301_v48 = vadd.f32 %v285_v30, %v269_v36  ;;  %v309_v49 = vadd.f32 %v293_v31, %v277_v37  ;;  %v270_v50 = vadd.f32 %v525_v16, %v247_v40  ;;  %v278_v51 = vadd.f32 %v525_v16, %v255_v41  ;;  %v298_v33 = vld [vmem:[%s659_s4 + $0x68] sm:$0xff] }
  0xf0   :  { %v319_v52 = vmax.f32 %v303_v42, 0.0  ;;  %v327_v53 = vmax.f32 %v311_v43, 0.0  ;;  %v304_v54 = vadd.f32 %v288_v38, %v272_v44  ;;  %v312_v55 = vadd.f32 %v296_v39, %v280_v45 }
  0xf1   :  { %v317_v56 = vmax.f32 %v301_v48, 0.0  ;;  %v325_v57 = vmax.f32 %v309_v49, 0.0  ;;  %v302_v58 = vadd.f32 %v286_v46, %v270_v50  ;;  %v310_v59 = vadd.f32 %v294_v47, %v278_v51  ;;  %v405_v60 = vpop.f32.mrb[4].mxu0  ;;  %v413_v61 = vpop.f32.mrb[4].mxu1 }
  0xf2   :  { %335 = vst [vmem:[%s660_s5 + $0x10] sm:$0xff] %v319_v52  ;;  %343 = vst [vmem:[%s660_s5 + $0x50] sm:$0xff] %v327_v53  ;;  %v320_v62 = vmax.f32 %v304_v54, 0.0  ;;  %v328_v63 = vmax.f32 %v312_v55, 0.0  ;;  %v252_v0 = vmul.f32 %v405_v60, %v520_v14  ;;  %v260_v1 = vmul.f32 %v413_v61, %v520_v14  ;;  %v192_v2 = vpop.f32.mrb[5].mxu0  ;;  %v224_v3 = vpop.f32.mrb[5].mxu1 }
  0xf3   :  { %333 = vst [vmem:[%s660_s5] sm:$0xff] %v317_v56  ;;  %341 = vst [vmem:[%s660_s5 + $0x40] sm:$0xff] %v325_v57  ;;  %v318_v4 = vmax.f32 %v302_v58, 0.0  ;;  %v326_v5 = vmax.f32 %v310_v59, 0.0  ;;  %v250_v8 = vmul.f32 %v520_v14, %v192_v2  ;;  %v258_v9 = vmul.f32 %v520_v14, %v224_v3  ;;  %v406_v10 = vpop.f32.mrb[6].mxu0  ;;  %v414_v11 = vpop.f32.mrb[6].mxu1 }
  0xf4   :  { %336 = vst [vmem:[%s660_s5 + $0x18] sm:$0xff] %v320_v62  ;;  %344 = vst [vmem:[%s660_s5 + $0x58] sm:$0xff] %v328_v63  ;;  %v275_v12 = vadd.f32 %v525_v16, %v252_v0  ;;  %v283_v13 = vadd.f32 %v525_v16, %v260_v1  ;;  %v253_v18 = vmul.f32 %v406_v10, %v520_v14  ;;  %v195_v20 = vpop.f32.mrb[7].mxu0  ;;  %v227_v21 = vpop.f32.mrb[7].mxu1 }
  0xf5   :  { %v261_v19 = vmul.f32 %v414_v11, %v520_v14  ;;  %334 = vst [vmem:[%s660_s5 + $0x8] sm:$0xff] %v318_v4  ;;  %342 = vst [vmem:[%s660_s5 + $0x48] sm:$0xff] %v326_v5  ;;  %v273_v22 = vadd.f32 %v525_v16, %v250_v8  ;;  %v281_v23 = vadd.f32 %v525_v16, %v258_v9 }
  0xf6   :  { %v251_v26 = vmul.f32 %v520_v14, %v195_v20  ;;  %v259_v27 = vmul.f32 %v520_v14, %v227_v21  ;;  %v307_v28 = vadd.f32 %v291_v6, %v275_v12  ;;  %v315_v29 = vadd.f32 %v299_v7, %v283_v13 }
  0xf7   :  { %v276_v30 = vadd.f32 %v525_v16, %v253_v18  ;;  %v284_v31 = vadd.f32 %v525_v16, %v261_v19  ;;  %v305_v34 = vadd.f32 %v289_v15, %v273_v22  ;;  %v313_v35 = vadd.f32 %v297_v17, %v281_v23 }
  0xf8   :  { %v274_v36 = vadd.f32 %v525_v16, %v251_v26  ;;  %v282_v14 = vadd.f32 %v525_v16, %v259_v27  ;;  %v323_v37 = vmax.f32 %v307_v28, 0.0  ;;  %v331_v38 = vmax.f32 %v315_v29, 0.0 }
  0xf9   :  { %v308_v39 = vadd.f32 %v292_v24, %v276_v30  ;;  %v316_v40 = vadd.f32 %v300_v25, %v284_v31  ;;  %v321_v41 = vmax.f32 %v305_v34, 0.0  ;;  %v329_v42 = vmax.f32 %v313_v35, 0.0 }
  0xfa   :  { %v306_v43 = vadd.f32 %v290_v32, %v274_v36  ;;  %v314_v44 = vadd.f32 %v298_v33, %v282_v14  ;;  %339 = vst [vmem:[%s660_s5 + $0x30] sm:$0xff] %v323_v37  ;;  %347 = vst [vmem:[%s660_s5 + $0x70] sm:$0xff] %v331_v38 }
  0xfb   :  { %v324_v45 = vmax.f32 %v308_v39, 0.0  ;;  %v332_v46 = vmax.f32 %v316_v40, 0.0  ;;  %337 = vst [vmem:[%s660_s5 + $0x20] sm:$0xff] %v321_v41  ;;  %345 = vst [vmem:[%s660_s5 + $0x60] sm:$0xff] %v329_v42 }
  0xfc   :  { %v322_v16 = vmax.f32 %v306_v43, 0.0  ;;  %v330_v47 = vmax.f32 %v314_v44, 0.0 }
  0xfd   :  { %340 = vst [vmem:[%s660_s5 + $0x38] sm:$0xff] %v324_v45  ;;  %348 = vst [vmem:[%s660_s5 + $0x78] sm:$0xff] %v332_v46 }
  0xfe   :  { %338 = vst [vmem:[%s660_s5 + $0x28] sm:$0xff] %v322_v16  ;;  %346 = vst [vmem:[%s660_s5 + $0x68] sm:$0xff] %v330_v47 }

// kernel: _forward.107
= control target key start
LH: loop header
LB: loop body
LE: loop exit
PB: predicated region body
PF: predicated region fallthrough
CT: control target
= control target key end

     0   :  { %vm68_vm0 = vcmask 588800   ;;  %vm75_vm1 = vcmask 1043456   ;;  %s266_s1 = inlined_call_operand.vmem [shape: bf16[72,128], index: 1, kind: input, shape index: {}]   ;;  %s267_s0 = inlined_call_operand.vmem [shape: bf16[32,72], index: 0, kind: input, shape index: {}]   ;;  %s268_s2 = inlined_call_operand.vmem [shape: f32[1,128], index: 2, kind: input, shape index: {}]   ;;  %s269_s3 = inlined_call_operand.vmem [shape: f32[1,128], index: 3, kind: input, shape index: {}]   ;;  %s270_s4 = inlined_call_operand.vmem [shape: f32[32,128], index: 4, kind: output, shape index: {}]  }
   0x1   :  { %v195_v0 = vld [vmem:[%s266_s1] sm:$0xff]   ;;  %v196_v1 = vld [vmem:[%s266_s1 + $0x8] sm:$0xff]   ;;  %v197_v2 = vld [vmem:[%s266_s1 + $0x10] sm:$0xff]  }
   0x2   :  { %180 = vmatprep.subr.bf16.mxu0 %v195_v0  ;;  %v200_v3 = vld [vmem:[%s267_s0] sm:$0xff]   ;;  %v198_v4 = vld [vmem:[%s266_s1 + $0x18] sm:$0xff]   ;;  %v201_v7 = vld [vmem:[%s267_s0 + $0x8] sm:$0xff]  }
   0x3   :  { %181 = vmatpush3.bf16.msra.mxu0 %v195_v0  ;;  %190 = vmatprep.mubr.msk.bf16.mxu0 %vm68_vm0, %v200_v3  ;;  %v199_v5 = vld [vmem:[%s266_s1 + $0x20] ss:$0 sps:$4 sm:$0xff]  }
   0x4   :  { %182 = vmatprep.subr.bf16.mxu0 %v196_v1  ;;  %v77_v6 = vsel %vm75_vm1, %v199_v5, 0  ;;  %v171_v8 = vld [vmem:[%s268_s2] ss:$0 sm:$0xff] }
   0x5   :  { %v172_v10 = vld [vmem:[%s269_s3] ss:$0 sm:$0xff] }
   0x7   :  { %183 = vmatpush3.bf16.msra.mxu0 %v196_v1 }
   0x8   :  { %184 = vmatprep.subr.bf16.mxu0 %v197_v2 }
   0xb   :  { %185 = vmatpush3.bf16.msra.mxu0 %v197_v2 }
   0xc   :  { %186 = vmatprep.subr.bf16.mxu0 %v198_v4 }
   0xf   :  { %187 = vmatpush3.bf16.msra.mxu0 %v198_v4 }
  0x10   :  { %194 = vmatprep.subr.msk.bf16.mxu0 %vm75_vm1, %v199_v5 }
  0x13   :  { %189 = vmatpush3.bf16.msra.mxu0 %v77_v6 }
  0x16   :  { %191 = vmatmul.mubr.msk.bf16.vlgmr.msra.gmra.mrb[0].mxu0 %vm68_vm0, %v201_v7 }
  0xe9   :  { %v192_v9 = vpop.f32.mrb[0].mxu0 }
  0xea   :  { %v137_v11 = vmul.f32 %v192_v9, %v171_v8  ;;  %v113_v12 = vpop.f32.mrb[1].mxu0 }
  0xeb   :  { %v135_v13 = vmul.f32 %v171_v8, %v113_v12  ;;  %v193_v14 = vpop.f32.mrb[2].mxu0 }
  0xec   :  { %v148_v15 = vadd.f32 %v172_v10, %v137_v11  ;;  %v138_v16 = vmul.f32 %v193_v14, %v171_v8  ;;  %v116_v17 = vpop.f32.mrb[3].mxu0 }
  0xed   :  { %v146_v18 = vadd.f32 %v172_v10, %v135_v13  ;;  %v136_v19 = vmul.f32 %v171_v8, %v116_v17 }
  0xee   :  { %v152_v20 = vmax.f32 %v148_v15, 0.0  ;;  %v149_v21 = vadd.f32 %v172_v10, %v138_v16 }
  0xef   :  { %v150_v22 = vmax.f32 %v146_v18, 0.0  ;;  %v147_v23 = vadd.f32 %v172_v10, %v136_v19 }
  0xf0   :  { %156 = vst [vmem:[%s270_s4 + $0x10] sm:$0xff] %v152_v20  ;;  %v153_v24 = vmax.f32 %v149_v21, 0.0 }
  0xf1   :  { %154 = vst [vmem:[%s270_s4] sm:$0xff] %v150_v22  ;;  %v151_v25 = vmax.f32 %v147_v23, 0.0 }
  0xf2   :  { %157 = vst [vmem:[%s270_s4 + $0x18] sm:$0xff] %v153_v24 }
  0xf3   :  { %155 = vst [vmem:[%s270_s4 + $0x8] sm:$0xff] %v151_v25 }

// kernel: _forward.108
= control target key start
LH: loop header
LB: loop body
LE: loop exit
PB: predicated region body
PF: predicated region fallthrough
CT: control target
= control target key end

     0   :  { %vm40_vm0 = vcmask 1043456   ;;  %vm33_vm1 = vcmask 64512   ;;  %s193_s1 = inlined_call_operand.vmem [shape: bf16[8,128], index: 1, kind: input, shape index: {}]   ;;  %s194_s0 = inlined_call_operand.vmem [shape: bf16[32,8], index: 0, kind: input, shape index: {}]   ;;  %s195_s2 = inlined_call_operand.vmem [shape: f32[1,128], index: 2, kind: input, shape index: {}]   ;;  %s196_s3 = inlined_call_operand.vmem [shape: f32[1,128], index: 3, kind: input, shape index: {}]   ;;  %s197_s4 = inlined_call_operand.vmem [shape: f32[32,128], index: 4, kind: output, shape index: {}]  }
   0x1   :  { %v22_v0 = vld [vmem:[%s193_s1] sm:$0xf]  ;;  %v140_v3 = vld [vmem:[%s194_s0 + $0x8] sm:$0xff]  }
   0x2   :  { %138 = vmatprep.subr.msk.bf16.mxu0 %vm40_vm0, %v22_v0  ;;  %v42_v1 = vsel %vm40_vm0, %v22_v0, 0  ;;  %v139_v2 = vld [vmem:[%s194_s0] sm:$0xff]  }
   0x3   :  { %133 = vmatpush3.bf16.msra.mxu0 %v42_v1  ;;  %134 = vmatprep.mubr.msk.bf16.mxu0 %vm33_vm1, %v139_v2  ;;  %v127_v4 = vld [vmem:[%s195_s2] ss:$0 sm:$0xff] }
   0x4   :  { %v128_v6 = vld [vmem:[%s196_s3] ss:$0 sm:$0xff] }
   0x6   :  { %135 = vmatmul.mubr.msk.bf16.vlgmr.msra.gmra.mrb[0].mxu0 %vm33_vm1, %v140_v3 }
  0xd9   :  { %v136_v5 = vpop.f32.mrb[0].mxu0 }
  0xda   :  { %v102_v7 = vmul.f32 %v136_v5, %v127_v4  ;;  %v78_v8 = vpop.f32.mrb[1].mxu0 }
  0xdb   :  { %v100_v9 = vmul.f32 %v127_v4, %v78_v8  ;;  %v137_v10 = vpop.f32.mrb[2].mxu0 }
  0xdc   :  { %v113_v11 = vadd.f32 %v128_v6, %v102_v7  ;;  %v103_v12 = vmul.f32 %v137_v10, %v127_v4  ;;  %v81_v13 = vpop.f32.mrb[3].mxu0 }
  0xdd   :  { %v111_v14 = vadd.f32 %v128_v6, %v100_v9  ;;  %v101_v15 = vmul.f32 %v127_v4, %v81_v13 }
  0xde   :  { %117 = vst [vmem:[%s197_s4 + $0x10] sm:$0xff] %v113_v11  ;;  %v114_v16 = vadd.f32 %v128_v6, %v103_v12 }
  0xdf   :  { %115 = vst [vmem:[%s197_s4] sm:$0xff] %v111_v14  ;;  %v112_v17 = vadd.f32 %v128_v6, %v101_v15 }
  0xe0   :  { %118 = vst [vmem:[%s197_s4 + $0x18] sm:$0xff] %v114_v16 }
  0xe1   :  { %116 = vst [vmem:[%s197_s4 + $0x8] sm:$0xff] %v112_v17 }

// kernel: _forward.109
= control target key start
LH: loop header
LB: loop body
LE: loop exit
PB: predicated region body
PF: predicated region fallthrough
CT: control target
= control target key end

     0   :  { %v264_v0 = vmov 0   ;;  %vm115_vm0 = vcmask 130048   ;;  %s364_s1 = inlined_call_operand.vmem [shape: bf16[144,128], index: 1, kind: input, shape index: {}]   ;;  %s365_s0 = inlined_call_operand.vmem [shape: bf16[32,144], index: 0, kind: input, shape index: {}]   ;;  %s366_s2 = inlined_call_operand.vmem [shape: f32[1,128], index: 2, kind: input, shape index: {}]   ;;  %s367_s3 = inlined_call_operand.vmem [shape: f32[1,128], index: 3, kind: input, shape index: {}]   ;;  %s368_s4 = inlined_call_operand.vmem [shape: f32[32,128], index: 4, kind: input, shape index: {}]   ;;  %s369_s5 = inlined_call_operand.vmem [shape: f32[32,128], index: 5, kind: output, shape index: {}]  }
   0x1   :  { %122 = vmatprep.subr.bf16.mxu0 %v264_v0  ;;  %230 = vmatprep.subr.bf16.mxu1 %v264_v0  ;;  %v249_v1 = vld [vmem:[%s364_s1] sm:$0xff]   ;;  %v250_v2 = vld [vmem:[%s364_s1 + $0x8] sm:$0xff]   ;;  %v251_v3 = vld [vmem:[%s364_s1 + $0x10] sm:$0xff]  }
   0x2   :  { %123 = vmatpush1.bf16.msra.mxu0 %v249_v1  ;;  %239 = vmatpush1.bf16.msra.mxu1 %v249_v1  ;;  %v252_v4 = vld [vmem:[%s364_s1 + $0x18] sm:$0xff]   ;;  %v260_v5 = vld [vmem:[%s365_s0 + $0x4] ss:$8 sps:$4 sm:$0xff]   ;;  %v255_v9 = vld [vmem:[%s364_s1 + $0x30] sm:$0xff]  }
   0x3   :  { %124 = vmatprep.subr.bf16.mxu0 %v264_v0  ;;  %231 = vmatprep.subr.bf16.mxu1 %v264_v0  ;;  %v263_v6 = vld [vmem:[%s365_s0 + $0x14] ss:$8 sps:$4 sm:$0xff]   ;;  %v253_v7 = vld [vmem:[%s364_s1 + $0x20] sm:$0xff]   ;;  %v254_v8 = vld [vmem:[%s364_s1 + $0x28] sm:$0xff]  }
   0x4   :  { %226 = vmatprep.mubr.msk.bf16.mxu0 %vm115_vm0, %v260_v5  ;;  %227 = vmatprep.mubr.msk.bf16.mxu1 %vm115_vm0, %v263_v6  ;;  %v256_v10 = vld [vmem:[%s364_s1 + $0x38] sm:$0xff]   ;;  %v257_v11 = vld [vmem:[%s364_s1 + $0x40] sm:$0xff]   ;;  %v195_v23 = vld [vmem:[%s368_s4 + $0x10] sm:$0xff] }
   0x5   :  { %v258_v12 = vld [vmem:[%s365_s0] ss:$8 sps:$4 sm:$0xff]   ;;  %v261_v13 = vld [vmem:[%s365_s0 + $0x10] ss:$8 sps:$4 sm:$0xff]  }
   0x6   :  { %125 = vmatpush1.bf16.msra.mxu0 %v250_v2  ;;  %240 = vmatpush1.bf16.msra.mxu1 %v250_v2  ;;  %v228_v14 = vld [vmem:[%s366_s2] ss:$0 sm:$0xff]  ;;  %v194_v32 = vld [vmem:[%s368_s4 + $0x8] sm:$0xff]  ;;  %v196_v33 = vld [vmem:[%s368_s4 + $0x18] sm:$0xff] }
   0x7   :  { %126 = vmatprep.subr.bf16.mxu0 %v264_v0  ;;  %232 = vmatprep.subr.bf16.mxu1 %v264_v0  ;;  %v229_v16 = vld [vmem:[%s367_s3] ss:$0 sm:$0xff] }
   0x8   :  { %v193_v22 = vld [vmem:[%s368_s4] sm:$0xff] }
   0xa   :  { %127 = vmatpush1.bf16.msra.mxu0 %v251_v3  ;;  %241 = vmatpush1.bf16.msra.mxu1 %v251_v3 }
   0xb   :  { %128 = vmatprep.subr.bf16.mxu0 %v264_v0  ;;  %233 = vmatprep.subr.bf16.mxu1 %v264_v0 }
   0xe   :  { %129 = vmatpush1.bf16.msra.mxu0 %v252_v4  ;;  %242 = vmatpush1.bf16.msra.mxu1 %v252_v4 }
   0xf   :  { %130 = vmatprep.subr.bf16.mxu0 %v264_v0  ;;  %234 = vmatprep.subr.bf16.mxu1 %v264_v0 }
  0x12   :  { %131 = vmatpush1.bf16.msra.mxu0 %v253_v7  ;;  %243 = vmatpush1.bf16.msra.mxu1 %v253_v7 }
  0x13   :  { %132 = vmatprep.subr.bf16.mxu0 %v264_v0  ;;  %235 = vmatprep.subr.bf16.mxu1 %v264_v0 }
  0x16   :  { %133 = vmatpush1.bf16.msra.mxu0 %v254_v8  ;;  %244 = vmatpush1.bf16.msra.mxu1 %v254_v8 }
  0x17   :  { %134 = vmatprep.subr.bf16.mxu0 %v264_v0  ;;  %236 = vmatprep.subr.bf16.mxu1 %v264_v0 }
  0x1a   :  { %135 = vmatpush1.bf16.msra.mxu0 %v255_v9  ;;  %245 = vmatpush1.bf16.msra.mxu1 %v255_v9 }
  0x1b   :  { %136 = vmatprep.subr.bf16.mxu0 %v264_v0  ;;  %237 = vmatprep.subr.bf16.mxu1 %v264_v0 }
  0x1e   :  { %137 = vmatpush1.bf16.msra.mxu0 %v256_v10  ;;  %246 = vmatpush1.bf16.msra.mxu1 %v256_v10 }
  0x1f   :  { %138 = vmatprep.subr.bf16.mxu0 %v264_v0  ;;  %238 = vmatprep.subr.bf16.mxu1 %v264_v0 }
  0x22   :  { %139 = vmatpush1.bf16.msra.mxu0 %v257_v11  ;;  %247 = vmatpush1.bf16.msra.mxu1 %v257_v11 }
  0x25   :  { %155 = vmatmul.mubr.bf16.vlgmr.msra.gmra.mrb[0].mxu0 %v258_v12  ;;  %163 = vmatmul.mubr.bf16.vlgmr.msra.gmra.mrb[0].mxu1 %v261_v13 }
  0xf8   :  { %v156_v15 = vpop.f32.mrb[0].mxu0  ;;  %v164_v17 = vpop.f32.mrb[0].mxu1 }
  0xf9   :  { %v178_v18 = vmul.f32 %v228_v14, %v156_v15  ;;  %v180_v19 = vmul.f32 %v228_v14, %v164_v17  ;;  %v158_v20 = vpop.f32.mrb[1].mxu0  ;;  %v166_v21 = vpop.f32.mrb[1].mxu1 }
  0xfa   :  { %v159_v24 = vpop.f32.mrb[2].mxu0  ;;  %v167_v25 = vpop.f32.mrb[2].mxu1 }
  0xfb   :  { %v189_v26 = vadd.f32 %v229_v16, %v178_v18  ;;  %v191_v27 = vadd.f32 %v229_v16, %v180_v19  ;;  %v179_v28 = vmul.f32 %v228_v14, %v159_v24  ;;  %v181_v29 = vmul.f32 %v228_v14, %v167_v25  ;;  %v161_v30 = vpop.f32.mrb[3].mxu0  ;;  %v169_v31 = vpop.f32.mrb[3].mxu1 }
  0xfd   :  { %v197_v34 = vadd.f32 %v193_v22, %v189_v26  ;;  %v199_v35 = vadd.f32 %v195_v23, %v191_v27  ;;  %v190_v36 = vadd.f32 %v229_v16, %v179_v28  ;;  %v192_v37 = vadd.f32 %v229_v16, %v181_v29 }
  0xff   :  { %v201_v38 = vmax.f32 %v197_v34, 0.0  ;;  %v203_v39 = vmax.f32 %v199_v35, 0.0  ;;  %v198_v40 = vadd.f32 %v194_v32, %v190_v36  ;;  %v200_v41 = vadd.f32 %v196_v33, %v192_v37 }
 0x101   :  { %205 = vst [vmem:[%s369_s5] sm:$0xff] %v201_v38  ;;  %207 = vst [vmem:[%s369_s5 + $0x10] sm:$0xff] %v203_v39  ;;  %v202_v42 = vmax.f32 %v198_v40, 0.0  ;;  %v204_v43 = vmax.f32 %v200_v41, 0.0 }
 0x103   :  { %206 = vst [vmem:[%s369_s5 + $0x8] sm:$0xff] %v202_v42  ;;  %208 = vst [vmem:[%s369_s5 + $0x18] sm:$0xff] %v204_v43 }

// kernel: _forward.110
= control target key start
LH: loop header
LB: loop body
LE: loop exit
PB: predicated region body
PF: predicated region fallthrough
CT: control target
= control target key end

     0   :  { %v253_v0 = vmov 0   ;;  %vm112_vm0 = vcmask 130048   ;;  %s336_s1 = inlined_call_operand.vmem [shape: bf16[144,128], index: 1, kind: input, shape index: {}]   ;;  %s337_s0 = inlined_call_operand.vmem [shape: bf16[32,144], index: 0, kind: input, shape index: {}]   ;;  %s338_s2 = inlined_call_operand.vmem [shape: f32[1,128], index: 2, kind: input, shape index: {}]   ;;  %s339_s3 = inlined_call_operand.vmem [shape: f32[1,128], index: 3, kind: input, shape index: {}]   ;;  %s340_s4 = inlined_call_operand.vmem [shape: f32[32,128], index: 4, kind: output, shape index: {}]  }
   0x1   :  { %119 = vmatprep.subr.bf16.mxu0 %v253_v0  ;;  %219 = vmatprep.subr.bf16.mxu1 %v253_v0  ;;  %v238_v1 = vld [vmem:[%s336_s1] sm:$0xff]   ;;  %v239_v2 = vld [vmem:[%s336_s1 + $0x8] sm:$0xff]   ;;  %v240_v3 = vld [vmem:[%s336_s1 + $0x10] sm:$0xff]  }
   0x2   :  { %120 = vmatpush1.bf16.msra.mxu0 %v238_v1  ;;  %228 = vmatpush1.bf16.msra.mxu1 %v238_v1  ;;  %v241_v4 = vld [vmem:[%s336_s1 + $0x18] sm:$0xff]   ;;  %v249_v5 = vld [vmem:[%s337_s0 + $0x4] ss:$8 sps:$4 sm:$0xff]   ;;  %v244_v9 = vld [vmem:[%s336_s1 + $0x30] sm:$0xff]  }
   0x3   :  { %121 = vmatprep.subr.bf16.mxu0 %v253_v0  ;;  %220 = vmatprep.subr.bf16.mxu1 %v253_v0  ;;  %v252_v6 = vld [vmem:[%s337_s0 + $0x14] ss:$8 sps:$4 sm:$0xff]   ;;  %v242_v7 = vld [vmem:[%s336_s1 + $0x20] sm:$0xff]   ;;  %v243_v8 = vld [vmem:[%s336_s1 + $0x28] sm:$0xff]  }
   0x4   :  { %215 = vmatprep.mubr.msk.bf16.mxu0 %vm112_vm0, %v249_v5  ;;  %216 = vmatprep.mubr.msk.bf16.mxu1 %vm112_vm0, %v252_v6  ;;  %v245_v10 = vld [vmem:[%s336_s1 + $0x38] sm:$0xff]   ;;  %v246_v11 = vld [vmem:[%s336_s1 + $0x40] sm:$0xff]  }
   0x5   :  { %v247_v12 = vld [vmem:[%s337_s0] ss:$8 sps:$4 sm:$0xff]   ;;  %v250_v13 = vld [vmem:[%s337_s0 + $0x10] ss:$8 sps:$4 sm:$0xff]  }
   0x6   :  { %122 = vmatpush1.bf16.msra.mxu0 %v239_v2  ;;  %229 = vmatpush1.bf16.msra.mxu1 %v239_v2  ;;  %v217_v14 = vld [vmem:[%s338_s2] ss:$0 sm:$0xff] }
   0x7   :  { %123 = vmatprep.subr.bf16.mxu0 %v253_v0  ;;  %221 = vmatprep.subr.bf16.mxu1 %v253_v0  ;;  %v218_v16 = vld [vmem:[%s339_s3] ss:$0 sm:$0xff] }
   0xa   :  { %124 = vmatpush1.bf16.msra.mxu0 %v240_v3  ;;  %230 = vmatpush1.bf16.msra.mxu1 %v240_v3 }
   0xb   :  { %125 = vmatprep.subr.bf16.mxu0 %v253_v0  ;;  %222 = vmatprep.subr.bf16.mxu1 %v253_v0 }
   0xe   :  { %126 = vmatpush1.bf16.msra.mxu0 %v241_v4  ;;  %231 = vmatpush1.bf16.msra.mxu1 %v241_v4 }
   0xf   :  { %127 = vmatprep.subr.bf16.mxu0 %v253_v0  ;;  %223 = vmatprep.subr.bf16.mxu1 %v253_v0 }
  0x12   :  { %128 = vmatpush1.bf16.msra.mxu0 %v242_v7  ;;  %232 = vmatpush1.bf16.msra.mxu1 %v242_v7 }
  0x13   :  { %129 = vmatprep.subr.bf16.mxu0 %v253_v0  ;;  %224 = vmatprep.subr.bf16.mxu1 %v253_v0 }
  0x16   :  { %130 = vmatpush1.bf16.msra.mxu0 %v243_v8  ;;  %233 = vmatpush1.bf16.msra.mxu1 %v243_v8 }
  0x17   :  { %131 = vmatprep.subr.bf16.mxu0 %v253_v0  ;;  %225 = vmatprep.subr.bf16.mxu1 %v253_v0 }
  0x1a   :  { %132 = vmatpush1.bf16.msra.mxu0 %v244_v9  ;;  %234 = vmatpush1.bf16.msra.mxu1 %v244_v9 }
  0x1b   :  { %133 = vmatprep.subr.bf16.mxu0 %v253_v0  ;;  %226 = vmatprep.subr.bf16.mxu1 %v253_v0 }
  0x1e   :  { %134 = vmatpush1.bf16.msra.mxu0 %v245_v10  ;;  %235 = vmatpush1.bf16.msra.mxu1 %v245_v10 }
  0x1f   :  { %135 = vmatprep.subr.bf16.mxu0 %v253_v0  ;;  %227 = vmatprep.subr.bf16.mxu1 %v253_v0 }
  0x22   :  { %136 = vmatpush1.bf16.msra.mxu0 %v246_v11  ;;  %236 = vmatpush1.bf16.msra.mxu1 %v246_v11 }
  0x25   :  { %152 = vmatmul.mubr.bf16.vlgmr.msra.gmra.mrb[0].mxu0 %v247_v12  ;;  %160 = vmatmul.mubr.bf16.vlgmr.msra.gmra.mrb[0].mxu1 %v250_v13 }
  0xf8   :  { %v153_v15 = vpop.f32.mrb[0].mxu0  ;;  %v161_v17 = vpop.f32.mrb[0].mxu1 }
  0xf9   :  { %v175_v18 = vmul.f32 %v217_v14, %v153_v15  ;;  %v177_v19 = vmul.f32 %v217_v14, %v161_v17  ;;  %v155_v20 = vpop.f32.mrb[1].mxu0  ;;  %v163_v21 = vpop.f32.mrb[1].mxu1 }
  0xfa   :  { %v156_v22 = vpop.f32.mrb[2].mxu0  ;;  %v164_v23 = vpop.f32.mrb[2].mxu1 }
  0xfb   :  { %v186_v24 = vadd.f32 %v218_v16, %v175_v18  ;;  %v188_v25 = vadd.f32 %v218_v16, %v177_v19  ;;  %v176_v26 = vmul.f32 %v217_v14, %v156_v22  ;;  %v178_v27 = vmul.f32 %v217_v14, %v164_v23  ;;  %v158_v28 = vpop.f32.mrb[3].mxu0  ;;  %v166_v29 = vpop.f32.mrb[3].mxu1 }
  0xfd   :  { %v190_v30 = vmax.f32 %v186_v24, 0.0  ;;  %v192_v31 = vmax.f32 %v188_v25, 0.0  ;;  %v187_v32 = vadd.f32 %v218_v16, %v176_v26  ;;  %v189_v33 = vadd.f32 %v218_v16, %v178_v27 }
  0xff   :  { %194 = vst [vmem:[%s340_s4] sm:$0xff] %v190_v30  ;;  %196 = vst [vmem:[%s340_s4 + $0x10] sm:$0xff] %v192_v31  ;;  %v191_v34 = vmax.f32 %v187_v32, 0.0  ;;  %v193_v35 = vmax.f32 %v189_v33, 0.0 }
 0x101   :  { %195 = vst [vmem:[%s340_s4 + $0x8] sm:$0xff] %v191_v34  ;;  %197 = vst [vmem:[%s340_s4 + $0x18] sm:$0xff] %v193_v35 }

// kernel: _forward.112
= control target key start
LH: loop header
LB: loop body
LE: loop exit
PB: predicated region body
PF: predicated region fallthrough
CT: control target
= control target key end

     0   :  { %v199_v0 = vmov 0   ;;  %vm101_vm0 = vcmask 130048   ;;  %s270_s1 = inlined_call_operand.vmem [shape: bf16[144,128], index: 1, kind: input, shape index: {}]   ;;  %s271_s0 = inlined_call_operand.vmem [shape: bf16[16,144], index: 0, kind: input, shape index: {}]   ;;  %s272_s2 = inlined_call_operand.vmem [shape: f32[1,128], index: 2, kind: input, shape index: {}]   ;;  %s273_s3 = inlined_call_operand.vmem [shape: f32[1,128], index: 3, kind: input, shape index: {}]   ;;  %s274_s4 = inlined_call_operand.vmem [shape: f32[16,128], index: 4, kind: output, shape index: {}]  }
   0x1   :  { %105 = vmatprep.subr.bf16.mxu0 %v199_v0  ;;  %v187_v1 = vld [vmem:[%s270_s1] sm:$0xff]   ;;  %v188_v2 = vld [vmem:[%s270_s1 + $0x8] sm:$0xff]   ;;  %v189_v3 = vld [vmem:[%s270_s1 + $0x10] sm:$0xff]  }
   0x2   :  { %106 = vmatpush1.bf16.msra.mxu0 %v187_v1  ;;  %v190_v4 = vld [vmem:[%s270_s1 + $0x18] sm:$0xff]   ;;  %v198_v5 = vld [vmem:[%s271_s0 + $0x4] ss:$8 sps:$4 sm:$0xff]   ;;  %v193_v8 = vld [vmem:[%s270_s1 + $0x30] sm:$0xff]  }
   0x3   :  { %107 = vmatprep.subr.bf16.mxu0 %v199_v0  ;;  %183 = vmatprep.mubr.msk.bf16.mxu0 %vm101_vm0, %v198_v5  ;;  %v191_v6 = vld [vmem:[%s270_s1 + $0x20] sm:$0xff]   ;;  %v192_v7 = vld [vmem:[%s270_s1 + $0x28] sm:$0xff]   ;;  %v194_v9 = vld [vmem:[%s270_s1 + $0x38] sm:$0xff]  }
   0x4   :  { %v195_v10 = vld [vmem:[%s270_s1 + $0x40] sm:$0xff]  }
   0x5   :  { %v196_v11 = vld [vmem:[%s271_s0] ss:$8 sps:$4 sm:$0xff]  }
   0x6   :  { %108 = vmatpush1.bf16.msra.mxu0 %v188_v2  ;;  %v184_v12 = vld [vmem:[%s272_s2] ss:$0 sm:$0xff] }
   0x7   :  { %109 = vmatprep.subr.bf16.mxu0 %v199_v0  ;;  %v185_v14 = vld [vmem:[%s273_s3] ss:$0 sm:$0xff] }
   0xa   :  { %110 = vmatpush1.bf16.msra.mxu0 %v189_v3 }
   0xb   :  { %111 = vmatprep.subr.bf16.mxu0 %v199_v0 }
   0xe   :  { %112 = vmatpush1.bf16.msra.mxu0 %v190_v4 }
   0xf   :  { %113 = vmatprep.subr.bf16.mxu0 %v199_v0 }
  0x12   :  { %114 = vmatpush1.bf16.msra.mxu0 %v191_v6 }
  0x13   :  { %115 = vmatprep.subr.bf16.mxu0 %v199_v0 }
  0x16   :  { %116 = vmatpush1.bf16.msra.mxu0 %v192_v7 }
  0x17   :  { %117 = vmatprep.subr.bf16.mxu0 %v199_v0 }
  0x1a   :  { %118 = vmatpush1.bf16.msra.mxu0 %v193_v8 }
  0x1b   :  { %119 = vmatprep.subr.bf16.mxu0 %v199_v0 }
  0x1e   :  { %120 = vmatpush1.bf16.msra.mxu0 %v194_v9 }
  0x1f   :  { %121 = vmatprep.subr.bf16.mxu0 %v199_v0 }
  0x22   :  { %122 = vmatpush1.bf16.msra.mxu0 %v195_v10 }
  0x25   :  { %138 = vmatmul.mubr.bf16.vlgmr.msra.gmra.mrb[0].mxu0 %v196_v11 }
  0xf8   :  { %v139_v13 = vpop.f32.mrb[0].mxu0 }
  0xf9   :  { %v153_v15 = vmul.f32 %v184_v12, %v139_v13  ;;  %v141_v16 = vpop.f32.mrb[1].mxu0 }
  0xfa   :  { %v142_v17 = vpop.f32.mrb[2].mxu0 }
  0xfb   :  { %v162_v18 = vadd.f32 %v185_v14, %v153_v15  ;;  %v154_v19 = vmul.f32 %v184_v12, %v142_v17  ;;  %v144_v20 = vpop.f32.mrb[3].mxu0 }
  0xfd   :  { %v164_v21 = vmax.f32 %v162_v18, 0.0  ;;  %v163_v22 = vadd.f32 %v185_v14, %v154_v19 }
  0xff   :  { %166 = vst [vmem:[%s274_s4] sm:$0xff] %v164_v21  ;;  %v165_v23 = vmax.f32 %v163_v22, 0.0 }
 0x101   :  { %167 = vst [vmem:[%s274_s4 + $0x8] sm:$0xff] %v165_v23 }

// kernel: _forward.113
= control target key start
LH: loop header
LB: loop body
LE: loop exit
PB: predicated region body
PF: predicated region fallthrough
CT: control target
= control target key end

     0   :  { %v119_v0 = vmov 0.0   ;;  %vm120_vm0 = vmmov 0   ;;  %vm33_vm1 = vcmask 130048   ;;  %s164_s1 = inlined_call_operand.vmem [shape: bf16[16,128], index: 1, kind: input, shape index: {}]   ;;  %s165_s0 = inlined_call_operand.vmem [shape: bf16[16,16], index: 0, kind: input, shape index: {}]   ;;  %s166_s2 = inlined_call_operand.vmem [shape: f32[1,128], index: 2, kind: input, shape index: {}]   ;;  %s167_s3 = inlined_call_operand.vmem [shape: f32[1,128], index: 3, kind: input, shape index: {}]   ;;  %s168_s4 = inlined_call_operand.vmem [shape: f32[16,128], index: 4, kind: output, shape index: {}]  }
   0x1   :  { %109 = vmatprep.subr.bf16.mxu0 %v119_v0  ;;  %v117_v1 = vld [vmem:[%s164_s1] sm:$0xff]   ;;  %111 = vmatprep.mubr.msk.bf16.mxu0 %vm120_vm0, %v119_v0 }
   0x2   :  { %v118_v2 = vld [vmem:[%s165_s0] sm:$0xff]   ;;  %110 = vmatpush3.bf16.msra.mxu0 %v117_v1 }
   0x3   :  { %v105_v3 = vld [vmem:[%s166_s2] ss:$0 sm:$0xff] }
   0x4   :  { %v106_v5 = vld [vmem:[%s167_s3] ss:$0 sm:$0xff] }
   0x5   :  { %112 = vmatmul.mubr.msk.bf16.vlgmr.msra.gmra.mrb[0].mxu0 %vm33_vm1, %v118_v2 }
  0xd8   :  { %v71_v4 = vpop.f32.mrb[0].mxu0 }
  0xd9   :  { %v85_v6 = vmul.f32 %v105_v3, %v71_v4  ;;  %v113_v7 = vpop.f32.mrb[1].mxu0 }
  0xda   :  { %v74_v8 = vpop.f32.mrb[2].mxu0 }
  0xdb   :  { %v94_v9 = vadd.f32 %v106_v5, %v85_v6  ;;  %v86_v10 = vmul.f32 %v105_v3, %v74_v8  ;;  %v114_v11 = vpop.f32.mrb[3].mxu0 }
  0xdd   :  { %96 = vst [vmem:[%s168_s4] sm:$0xff] %v94_v9  ;;  %v95_v12 = vadd.f32 %v106_v5, %v86_v10 }
  0xdf   :  { %97 = vst [vmem:[%s168_s4 + $0x8] sm:$0xff] %v95_v12 }

// kernel: _forward.114
= control target key start
LH: loop header
LB: loop body
LE: loop exit
PB: predicated region body
PF: predicated region fallthrough
CT: control target
= control target key end

     0   :  { %v381_v1 = vmov 0.0   ;;  %vm382_vm0 = vmmov 0   ;;  %vm184_vm1 = vcmask 261120   ;;  %s494_s1 = inlined_call_operand.vmem [shape: bf16[288,128], index: 1, kind: input, shape index: {}]   ;;  %s495_s0 = inlined_call_operand.vmem [shape: bf16[16,288], index: 0, kind: input, shape index: {}]   ;;  %s496_s2 = inlined_call_operand.vmem [shape: f32[1,128], index: 2, kind: input, shape index: {}]   ;;  %s497_s3 = inlined_call_operand.vmem [shape: f32[1,128], index: 3, kind: input, shape index: {}]   ;;  %s498_s4 = inlined_call_operand.vmem [shape: f32[16,128], index: 4, kind: input, shape index: {}]   ;;  %s499_s5 = inlined_call_operand.vmem [shape: f32[16,128], index: 5, kind: output, shape index: {}]  }
   0x1   :  { %v359_v0 = vld [vmem:[%s494_s1 + $0x40] sm:$0xff]   ;;  %349 = vmatprep.subr.bf16.mxu1 %v381_v1  ;;  %353 = vmatprep.mubr.msk.bf16.mxu1 %vm382_vm0, %v381_v1  ;;  %v361_v3 = vld [vmem:[%s494_s1 + $0x48] sm:$0xff]   ;;  %v363_v5 = vld [vmem:[%s494_s1 + $0x50] sm:$0xff]  }
   0x2   :  { %v360_v2 = vld [vmem:[%s494_s1] sm:$0xff]   ;;  %324 = vmatprep.subr.bf16.mxu0 %v359_v0  ;;  %v362_v4 = vld [vmem:[%s494_s1 + $0x8] sm:$0xff]   ;;  %v364_v6 = vld [vmem:[%s494_s1 + $0x10] sm:$0xff]  }
   0x3   :  { %325 = vmatpush3.bf16.msra.mxu0 %v360_v2  ;;  %v365_v7 = vld [vmem:[%s494_s1 + $0x58] sm:$0xff]   ;;  %v367_v9 = vld [vmem:[%s494_s1 + $0x60] sm:$0xff]   ;;  %v369_v12 = vld [vmem:[%s494_s1 + $0x68] sm:$0xff]  }
   0x4   :  { %326 = vmatprep.subr.bf16.mxu0 %v361_v3  ;;  %v366_v8 = vld [vmem:[%s494_s1 + $0x18] sm:$0xff]   ;;  %v373_v10 = vld [vmem:[%s494_s1 + $0x80] sm:$0xff]   ;;  %v376_v13 = vld [vmem:[%s494_s1 + $0x88] sm:$0xff]  }
   0x5   :  { %v368_v11 = vld [vmem:[%s494_s1 + $0x20] sm:$0xff]   ;;  %350 = vmatpush3.bf16.msra.mxu1 %v373_v10  ;;  %v370_v14 = vld [vmem:[%s494_s1 + $0x28] sm:$0xff]   ;;  %v371_v16 = vld [vmem:[%s494_s1 + $0x70] sm:$0xff]  }
   0x6   :  { %351 = vmatprep.subr.bf16.mxu1 %v381_v1  ;;  %v379_v15 = vld [vmem:[%s495_s0 + $0x4] ss:$12 sps:$4 sm:$0xff]   ;;  %v380_v17 = vld [vmem:[%s495_s0 + $0x8] ss:$12 sps:$4 sm:$0xff]   ;;  %v374_v19 = vld [vmem:[%s494_s1 + $0x78] sm:$0xff]  }
   0x7   :  { %327 = vmatpush3.bf16.msra.mxu0 %v362_v4  ;;  %220 = vmatprep.mubr.bf16.mxu0 %v379_v15  ;;  %v372_v18 = vld [vmem:[%s494_s1 + $0x30] sm:$0xff]   ;;  %v375_v20 = vld [vmem:[%s494_s1 + $0x38] sm:$0xff]   ;;  %v377_v21 = vld [vmem:[%s495_s0] ss:$12 sps:$4 sm:$0xff]  }
   0x8   :  { %328 = vmatprep.subr.bf16.mxu0 %v363_v5  ;;  %v322_v30 = vld [vmem:[%s496_s2] ss:$0 sm:$0xff]  ;;  %v289_v40 = vld [vmem:[%s498_s4 + $0x8] sm:$0xff] }
   0x9   :  { %352 = vmatpush3.bf16.msra.mxu1 %v376_v13  ;;  %v323_v34 = vld [vmem:[%s497_s3] ss:$0 sm:$0xff] }
   0xa   :  { %v288_v37 = vld [vmem:[%s498_s4] sm:$0xff] }
   0xb   :  { %329 = vmatpush3.bf16.msra.mxu0 %v364_v6 }
   0xc   :  { %330 = vmatprep.subr.bf16.mxu0 %v365_v7  ;;  %354 = vmatmul.mubr.msk.bf16.vlgmr.msra.gmra.mrb[0].mxu1 %vm184_vm1, %v380_v17 }
   0xf   :  { %331 = vmatpush3.bf16.msra.mxu0 %v366_v8 }
  0x10   :  { %332 = vmatprep.subr.bf16.mxu0 %v367_v9 }
  0x13   :  { %333 = vmatpush3.bf16.msra.mxu0 %v368_v11 }
  0x14   :  { %334 = vmatprep.subr.bf16.mxu0 %v369_v12 }
  0x17   :  { %335 = vmatpush3.bf16.msra.mxu0 %v370_v14 }
  0x18   :  { %336 = vmatprep.subr.bf16.mxu0 %v371_v16 }
  0x1b   :  { %337 = vmatpush3.bf16.msra.mxu0 %v372_v18 }
  0x1c   :  { %338 = vmatprep.subr.bf16.mxu0 %v374_v19 }
  0x1f   :  { %339 = vmatpush3.bf16.msra.mxu0 %v375_v20 }
  0x22   :  { %221 = vmatmul.mubr.bf16.vlgmr.msra.gmra.mrb[0].mxu0 %v377_v21 }
  0xdf   :  { %v263_v22 = vpop.f32.mrb[0].mxu1 }
  0xe0   :  { %v355_v23 = vpop.f32.mrb[1].mxu1 }
  0xe1   :  { %v266_v24 = vpop.f32.mrb[2].mxu1 }
  0xe2   :  { %v356_v25 = vpop.f32.mrb[3].mxu1 }
  0xf5   :  { %v340_v26 = vpop.f32.mrb[0].mxu0 }
  0xf6   :  { %v341_v27 = vpop.f32.mrb[1].mxu0 }
  0xf7   :  { %v342_v28 = vadd.f32 %v341_v27, %v340_v26  ;;  %v343_v29 = vpop.f32.mrb[2].mxu0 }
  0xf8   :  { %v344_v31 = vpop.f32.mrb[3].mxu0 }
  0xf9   :  { %v264_v32 = vadd.f32 %v342_v28, %v263_v22  ;;  %v345_v33 = vadd.f32 %v344_v31, %v343_v29 }
  0xfb   :  { %v277_v35 = vmul.f32 %v322_v30, %v264_v32  ;;  %v267_v36 = vadd.f32 %v345_v33, %v266_v24 }
  0xfd   :  { %v286_v38 = vadd.f32 %v323_v34, %v277_v35  ;;  %v278_v39 = vmul.f32 %v322_v30, %v267_v36 }
  0xff   :  { %v290_v41 = vadd.f32 %v288_v37, %v286_v38  ;;  %v287_v42 = vadd.f32 %v323_v34, %v278_v39 }
 0x101   :  { %v292_v43 = vmax.f32 %v290_v41, 0.0  ;;  %v291_v44 = vadd.f32 %v289_v40, %v287_v42 }
 0x103   :  { %294 = vst [vmem:[%s499_s5] sm:$0xff] %v292_v43  ;;  %v293_v45 = vmax.f32 %v291_v44, 0.0 }
 0x105   :  { %295 = vst [vmem:[%s499_s5 + $0x8] sm:$0xff] %v293_v45 }

// kernel: _forward.115
= control target key start
LH: loop header
LB: loop body
LE: loop exit
PB: predicated region body
PF: predicated region fallthrough
CT: control target
= control target key end

     0   :  { %v374_v1 = vmov 0.0   ;;  %vm375_vm0 = vmmov 0   ;;  %vm181_vm1 = vcmask 261120   ;;  %s476_s1 = inlined_call_operand.vmem [shape: bf16[288,128], index: 1, kind: input, shape index: {}]   ;;  %s477_s0 = inlined_call_operand.vmem [shape: bf16[16,288], index: 0, kind: input, shape index: {}]   ;;  %s478_s2 = inlined_call_operand.vmem [shape: f32[1,128], index: 2, kind: input, shape index: {}]   ;;  %s479_s3 = inlined_call_operand.vmem [shape: f32[1,128], index: 3, kind: input, shape index: {}]   ;;  %s480_s4 = inlined_call_operand.vmem [shape: f32[16,128], index: 4, kind: output, shape index: {}]  }
   0x1   :  { %v352_v0 = vld [vmem:[%s476_s1 + $0x40] sm:$0xff]   ;;  %342 = vmatprep.subr.bf16.mxu1 %v374_v1  ;;  %346 = vmatprep.mubr.msk.bf16.mxu1 %vm375_vm0, %v374_v1  ;;  %v354_v3 = vld [vmem:[%s476_s1 + $0x48] sm:$0xff]   ;;  %v356_v5 = vld [vmem:[%s476_s1 + $0x50] sm:$0xff]  }
   0x2   :  { %v353_v2 = vld [vmem:[%s476_s1] sm:$0xff]   ;;  %317 = vmatprep.subr.bf16.mxu0 %v352_v0  ;;  %v355_v4 = vld [vmem:[%s476_s1 + $0x8] sm:$0xff]   ;;  %v357_v6 = vld [vmem:[%s476_s1 + $0x10] sm:$0xff]  }
   0x3   :  { %318 = vmatpush3.bf16.msra.mxu0 %v353_v2  ;;  %v358_v7 = vld [vmem:[%s476_s1 + $0x58] sm:$0xff]   ;;  %v360_v9 = vld [vmem:[%s476_s1 + $0x60] sm:$0xff]   ;;  %v362_v12 = vld [vmem:[%s476_s1 + $0x68] sm:$0xff]  }
   0x4   :  { %319 = vmatprep.subr.bf16.mxu0 %v354_v3  ;;  %v359_v8 = vld [vmem:[%s476_s1 + $0x18] sm:$0xff]   ;;  %v366_v10 = vld [vmem:[%s476_s1 + $0x80] sm:$0xff]   ;;  %v369_v13 = vld [vmem:[%s476_s1 + $0x88] sm:$0xff]  }
   0x5   :  { %v361_v11 = vld [vmem:[%s476_s1 + $0x20] sm:$0xff]   ;;  %343 = vmatpush3.bf16.msra.mxu1 %v366_v10  ;;  %v363_v14 = vld [vmem:[%s476_s1 + $0x28] sm:$0xff]   ;;  %v364_v16 = vld [vmem:[%s476_s1 + $0x70] sm:$0xff]  }
   0x6   :  { %344 = vmatprep.subr.bf16.mxu1 %v374_v1  ;;  %v372_v15 = vld [vmem:[%s477_s0 + $0x4] ss:$12 sps:$4 sm:$0xff]   ;;  %v373_v17 = vld [vmem:[%s477_s0 + $0x8] ss:$12 sps:$4 sm:$0xff]   ;;  %v367_v19 = vld [vmem:[%s476_s1 + $0x78] sm:$0xff]  }
   0x7   :  { %320 = vmatpush3.bf16.msra.mxu0 %v355_v4  ;;  %217 = vmatprep.mubr.bf16.mxu0 %v372_v15  ;;  %v365_v18 = vld [vmem:[%s476_s1 + $0x30] sm:$0xff]   ;;  %v368_v20 = vld [vmem:[%s476_s1 + $0x38] sm:$0xff]   ;;  %v370_v21 = vld [vmem:[%s477_s0] ss:$12 sps:$4 sm:$0xff]  }
   0x8   :  { %321 = vmatprep.subr.bf16.mxu0 %v356_v5  ;;  %v315_v30 = vld [vmem:[%s478_s2] ss:$0 sm:$0xff] }
   0x9   :  { %345 = vmatpush3.bf16.msra.mxu1 %v369_v13  ;;  %v316_v34 = vld [vmem:[%s479_s3] ss:$0 sm:$0xff] }
   0xb   :  { %322 = vmatpush3.bf16.msra.mxu0 %v357_v6 }
   0xc   :  { %323 = vmatprep.subr.bf16.mxu0 %v358_v7  ;;  %347 = vmatmul.mubr.msk.bf16.vlgmr.msra.gmra.mrb[0].mxu1 %vm181_vm1, %v373_v17 }
   0xf   :  { %324 = vmatpush3.bf16.msra.mxu0 %v359_v8 }
  0x10   :  { %325 = vmatprep.subr.bf16.mxu0 %v360_v9 }
  0x13   :  { %326 = vmatpush3.bf16.msra.mxu0 %v361_v11 }
  0x14   :  { %327 = vmatprep.subr.bf16.mxu0 %v362_v12 }
  0x17   :  { %328 = vmatpush3.bf16.msra.mxu0 %v363_v14 }
  0x18   :  { %329 = vmatprep.subr.bf16.mxu0 %v364_v16 }
  0x1b   :  { %330 = vmatpush3.bf16.msra.mxu0 %v365_v18 }
  0x1c   :  { %331 = vmatprep.subr.bf16.mxu0 %v367_v19 }
  0x1f   :  { %332 = vmatpush3.bf16.msra.mxu0 %v368_v20 }
  0x22   :  { %218 = vmatmul.mubr.bf16.vlgmr.msra.gmra.mrb[0].mxu0 %v370_v21 }
  0xdf   :  { %v260_v22 = vpop.f32.mrb[0].mxu1 }
  0xe0   :  { %v348_v23 = vpop.f32.mrb[1].mxu1 }
  0xe1   :  { %v263_v24 = vpop.f32.mrb[2].mxu1 }
  0xe2   :  { %v349_v25 = vpop.f32.mrb[3].mxu1 }
  0xf5   :  { %v333_v26 = vpop.f32.mrb[0].mxu0 }
  0xf6   :  { %v334_v27 = vpop.f32.mrb[1].mxu0 }
  0xf7   :  { %v335_v28 = vadd.f32 %v334_v27, %v333_v26  ;;  %v336_v29 = vpop.f32.mrb[2].mxu0 }
  0xf8   :  { %v337_v31 = vpop.f32.mrb[3].mxu0 }
  0xf9   :  { %v261_v32 = vadd.f32 %v335_v28, %v260_v22  ;;  %v338_v33 = vadd.f32 %v337_v31, %v336_v29 }
  0xfb   :  { %v274_v35 = vmul.f32 %v315_v30, %v261_v32  ;;  %v264_v36 = vadd.f32 %v338_v33, %v263_v24 }
  0xfd   :  { %v283_v37 = vadd.f32 %v316_v34, %v274_v35  ;;  %v275_v38 = vmul.f32 %v315_v30, %v264_v36 }
  0xff   :  { %v285_v39 = vmax.f32 %v283_v37, 0.0  ;;  %v284_v40 = vadd.f32 %v316_v34, %v275_v38 }
 0x101   :  { %287 = vst [vmem:[%s480_s4] sm:$0xff] %v285_v39  ;;  %v286_v41 = vmax.f32 %v284_v40, 0.0 }
 0x103   :  { %288 = vst [vmem:[%s480_s4 + $0x8] sm:$0xff] %v286_v41 }

// kernel: _forward.118
= control target key start
LH: loop header
LB: loop body
LE: loop exit
PB: predicated region body
PF: predicated region fallthrough
CT: control target
= control target key end

     0   :  { %v132_v0 = vmov 0.0   ;;  %vm133_vm0 = vmmov 0   ;;  %vm41_vm1 = vcmask 261120   ;;  %s180_s1 = inlined_call_operand.vmem [shape: bf16[32,128], index: 1, kind: input, shape index: {}]   ;;  %s181_s0 = inlined_call_operand.vmem [shape: bf16[16,32], index: 0, kind: input, shape index: {}]   ;;  %s182_s2 = inlined_call_operand.vmem [shape: f32[1,128], index: 2, kind: input, shape index: {}]   ;;  %s183_s3 = inlined_call_operand.vmem [shape: f32[1,128], index: 3, kind: input, shape index: {}]   ;;  %s184_s4 = inlined_call_operand.vmem [shape: f32[16,128], index: 4, kind: output, shape index: {}]  }
   0x1   :  { %119 = vmatprep.subr.bf16.mxu0 %v132_v0  ;;  %v129_v1 = vld [vmem:[%s180_s1] sm:$0xff]   ;;  %123 = vmatprep.mubr.msk.bf16.mxu0 %vm133_vm0, %v132_v0  ;;  %v130_v2 = vld [vmem:[%s180_s1 + $0x8] sm:$0xff]  }
   0x2   :  { %120 = vmatpush3.bf16.msra.mxu0 %v129_v1  ;;  %v131_v3 = vld [vmem:[%s181_s0] sm:$0xff]  }
   0x3   :  { %121 = vmatprep.subr.bf16.mxu0 %v132_v0  ;;  %v114_v4 = vld [vmem:[%s182_s2] ss:$0 sm:$0xff] }
   0x4   :  { %v115_v6 = vld [vmem:[%s183_s3] ss:$0 sm:$0xff] }
   0x6   :  { %122 = vmatpush3.bf16.msra.mxu0 %v130_v2 }
   0x9   :  { %124 = vmatmul.mubr.msk.bf16.vlgmr.msra.gmra.mrb[0].mxu0 %vm41_vm1, %v131_v3 }
  0xdc   :  { %v79_v5 = vpop.f32.mrb[0].mxu0 }
  0xdd   :  { %v93_v7 = vmul.f32 %v114_v4, %v79_v5  ;;  %v125_v8 = vpop.f32.mrb[1].mxu0 }
  0xde   :  { %v82_v9 = vpop.f32.mrb[2].mxu0 }
  0xdf   :  { %v102_v10 = vadd.f32 %v115_v6, %v93_v7  ;;  %v94_v11 = vmul.f32 %v114_v4, %v82_v9  ;;  %v126_v12 = vpop.f32.mrb[3].mxu0 }
  0xe1   :  { %104 = vst [vmem:[%s184_s4] sm:$0xff] %v102_v10  ;;  %v103_v13 = vadd.f32 %v115_v6, %v94_v11 }
  0xe3   :  { %105 = vst [vmem:[%s184_s4 + $0x8] sm:$0xff] %v103_v13 }

// kernel: _forward.122
= control target key start
LH: loop header
LB: loop body
LE: loop exit
PB: predicated region body
PF: predicated region fallthrough
CT: control target
= control target key end

     0   :  { %v18_v0 = vlaneseq  ;;  %v37_v3 = vmov 1966171168   ;;  %s57_s0 = inlined_call_operand.vmem [shape: f32[2,1,128], index: 0, kind: input, shape index: {}]   ;;  %s58_s1 = inlined_call_operand.vmem [shape: f32[2,128], index: 1, kind: output, shape index: {}]  }
   0x1   :  { %v8_v1 = vld [vmem:[%s57_s0] sm:$0x1]  ;;  %v9_v2 = vld [vmem:[%s57_s0 + $0x1] sm:$0x1]  ;;  %v16_v4 = vunpack.c.l.s4 %v37_v3 }
   0x2   :  { %v19_v5 = vshrl.u32 %v18_v0, 7  ;;  %v14_v6 = vcombine.low %v8_v1, %v9_v2 }
   0x3   :  { %v17_v7 = vunpack.c.0.s8 %v16_v4 }
   0x5   :  { %v20_v8 = vsub.s32 %v17_v7, %v19_v5 }
   0x7   :  { %v21_v9 = vrot.slane %v14_v6, %v20_v8 }
   0x9   :  { %35 = vst.sshfl [vmem:[%s58_s1] sm:$0x5 pattern:$0x73625140] %v21_v9 }

// kernel: _forward.119
= control target key start
LH: loop header
LB: loop body
LE: loop exit
PB: predicated region body
PF: predicated region fallthrough
CT: control target
= control target key end

     0   :  { %v647_v34 = vmov 0.0   ;;  %vm648_vm0 = vmmov 0   ;;  %vm340_vm1 = vcmask 523264   ;;  %s820_s1 = inlined_call_operand.vmem [shape: bf16[576,128], index: 1, kind: input, shape index: {}]   ;;  %s821_s0 = inlined_call_operand.vmem [shape: bf16[16,576], index: 0, kind: input, shape index: {}]   ;;  %s822_s2 = inlined_call_operand.vmem [shape: f32[1,128], index: 2, kind: input, shape index: {}]   ;;  %s823_s3 = inlined_call_operand.vmem [shape: f32[1,128], index: 3, kind: input, shape index: {}]   ;;  %s824_s4 = inlined_call_operand.vmem [shape: f32[16,128], index: 4, kind: input, shape index: {}]   ;;  %s825_s5 = inlined_call_operand.vmem [shape: f32[16,128], index: 5, kind: output, shape index: {}]  }
   0x1   :  { %v604_v0 = vld [vmem:[%s820_s1 + $0x40] sm:$0xff]   ;;  %v608_v4 = vld [vmem:[%s820_s1 + $0x48] sm:$0xff]   ;;  %v612_v8 = vld [vmem:[%s820_s1 + $0x50] sm:$0xff]  }
   0x2   :  { %v605_v1 = vld [vmem:[%s820_s1 + $0xc0] sm:$0xff]   ;;  %541 = vmatprep.subr.bf16.mxu0 %v604_v0  ;;  %v609_v5 = vld [vmem:[%s820_s1 + $0xc8] sm:$0xff]   ;;  %v613_v9 = vld [vmem:[%s820_s1 + $0xd0] sm:$0xff]  }
   0x3   :  { %v606_v2 = vld [vmem:[%s820_s1] sm:$0xff]   ;;  %563 = vmatprep.subr.bf16.mxu1 %v605_v1  ;;  %v610_v6 = vld [vmem:[%s820_s1 + $0x8] sm:$0xff]   ;;  %v614_v10 = vld [vmem:[%s820_s1 + $0x10] sm:$0xff]  }
   0x4   :  { %v607_v3 = vld [vmem:[%s820_s1 + $0x80] sm:$0xff]   ;;  %542 = vmatpush3.bf16.msra.mxu0 %v606_v2  ;;  %v611_v7 = vld [vmem:[%s820_s1 + $0x88] sm:$0xff]   ;;  %v615_v11 = vld [vmem:[%s820_s1 + $0x90] sm:$0xff]  }
   0x5   :  { %564 = vmatpush3.bf16.msra.mxu1 %v607_v3  ;;  %543 = vmatprep.subr.bf16.mxu0 %v608_v4  ;;  %v616_v12 = vld [vmem:[%s820_s1 + $0x58] sm:$0xff]   ;;  %v620_v16 = vld [vmem:[%s820_s1 + $0x60] sm:$0xff]   ;;  %v624_v20 = vld [vmem:[%s820_s1 + $0x68] sm:$0xff]  }
   0x6   :  { %565 = vmatprep.subr.bf16.mxu1 %v609_v5  ;;  %v617_v13 = vld [vmem:[%s820_s1 + $0xd8] sm:$0xff]   ;;  %v621_v17 = vld [vmem:[%s820_s1 + $0xe0] sm:$0xff]   ;;  %v625_v21 = vld [vmem:[%s820_s1 + $0xe8] sm:$0xff]  }
   0x7   :  { %v618_v14 = vld [vmem:[%s820_s1 + $0x18] sm:$0xff]   ;;  %v622_v18 = vld [vmem:[%s820_s1 + $0x20] sm:$0xff]   ;;  %v626_v22 = vld [vmem:[%s820_s1 + $0x28] sm:$0xff]  }
   0x8   :  { %544 = vmatpush3.bf16.msra.mxu0 %v610_v6  ;;  %v619_v15 = vld [vmem:[%s820_s1 + $0x98] sm:$0xff]   ;;  %v623_v19 = vld [vmem:[%s820_s1 + $0xa0] sm:$0xff]   ;;  %v627_v23 = vld [vmem:[%s820_s1 + $0xa8] sm:$0xff]  }
   0x9   :  { %566 = vmatpush3.bf16.msra.mxu1 %v611_v7  ;;  %545 = vmatprep.subr.bf16.mxu0 %v612_v8  ;;  %v628_v24 = vld [vmem:[%s820_s1 + $0x70] sm:$0xff]   ;;  %v632_v28 = vld [vmem:[%s820_s1 + $0x78] sm:$0xff]   ;;  %v641_v36 = vld [vmem:[%s821_s0 + $0xc] ss:$20 sps:$4 sm:$0xff]  }
   0xa   :  { %567 = vmatprep.subr.bf16.mxu1 %v613_v9  ;;  %v629_v25 = vld [vmem:[%s820_s1 + $0xf0] sm:$0xff]   ;;  %v633_v29 = vld [vmem:[%s820_s1 + $0xf8] sm:$0xff]   ;;  %v642_v37 = vld [vmem:[%s820_s1 + $0x100] sm:$0xff]   ;;  %417 = vmatprep.mubr.bf16.mxu1 %v641_v36 }
   0xb   :  { %v630_v26 = vld [vmem:[%s820_s1 + $0x30] sm:$0xff]   ;;  %v634_v30 = vld [vmem:[%s820_s1 + $0x38] sm:$0xff]   ;;  %v643_v38 = vld [vmem:[%s820_s1 + $0x108] sm:$0xff]  }
   0xc   :  { %546 = vmatpush3.bf16.msra.mxu0 %v614_v10  ;;  %v631_v27 = vld [vmem:[%s820_s1 + $0xb0] sm:$0xff]   ;;  %v635_v31 = vld [vmem:[%s820_s1 + $0xb8] sm:$0xff]   ;;  %v539_v57 = vld [vmem:[%s822_s2] ss:$0 sm:$0xff] }
   0xd   :  { %568 = vmatpush3.bf16.msra.mxu1 %v615_v11  ;;  %547 = vmatprep.subr.bf16.mxu0 %v616_v12  ;;  %v636_v32 = vld [vmem:[%s821_s0] ss:$20 sps:$4 sm:$0xff]   ;;  %v638_v33 = vld [vmem:[%s821_s0 + $0x4] ss:$20 sps:$4 sm:$0xff]   ;;  %v639_v35 = vld [vmem:[%s821_s0 + $0x8] ss:$20 sps:$4 sm:$0xff]  }
   0xe   :  { %569 = vmatprep.subr.bf16.mxu1 %v617_v13  ;;  %376 = vmatprep.mubr.bf16.mxu0 %v638_v33  ;;  %v644_v39 = vld [vmem:[%s820_s1 + $0x110] sm:$0xff]   ;;  %v645_v40 = vld [vmem:[%s820_s1 + $0x118] sm:$0xff]   ;;  %v540_v60 = vld [vmem:[%s823_s3] ss:$0 sm:$0xff] }
   0xf   :  { %v646_v41 = vld [vmem:[%s821_s0 + $0x10] ss:$20 sps:$4 sm:$0xff]   ;;  %v486_v4 = vld [vmem:[%s824_s4 + $0x8] sm:$0xff] }
  0x10   :  { %548 = vmatpush3.bf16.msra.mxu0 %v618_v14  ;;  %v485_v1 = vld [vmem:[%s824_s4] sm:$0xff] }
  0x11   :  { %570 = vmatpush3.bf16.msra.mxu1 %v619_v15  ;;  %549 = vmatprep.subr.bf16.mxu0 %v620_v16 }
  0x12   :  { %571 = vmatprep.subr.bf16.mxu1 %v621_v17 }
  0x14   :  { %550 = vmatpush3.bf16.msra.mxu0 %v622_v18 }
  0x15   :  { %572 = vmatpush3.bf16.msra.mxu1 %v623_v19  ;;  %551 = vmatprep.subr.bf16.mxu0 %v624_v20 }
  0x16   :  { %573 = vmatprep.subr.bf16.mxu1 %v625_v21 }
  0x18   :  { %552 = vmatpush3.bf16.msra.mxu0 %v626_v22 }
  0x19   :  { %574 = vmatpush3.bf16.msra.mxu1 %v627_v23  ;;  %553 = vmatprep.subr.bf16.mxu0 %v628_v24 }
  0x1a   :  { %575 = vmatprep.subr.bf16.mxu1 %v629_v25 }
  0x1c   :  { %554 = vmatpush3.bf16.msra.mxu0 %v630_v26 }
  0x1d   :  { %576 = vmatpush3.bf16.msra.mxu1 %v631_v27  ;;  %555 = vmatprep.subr.bf16.mxu0 %v632_v28 }
  0x1e   :  { %577 = vmatprep.subr.bf16.mxu1 %v633_v29 }
  0x20   :  { %556 = vmatpush3.bf16.msra.mxu0 %v634_v30 }
  0x21   :  { %578 = vmatpush3.bf16.msra.mxu1 %v635_v31  ;;  %590 = vmatprep.subr.bf16.mxu0 %v647_v34 }
  0x23   :  { %377 = vmatmul.mubr.bf16.vlgmr.msra.gmra.mrb[0].mxu0 %v636_v32 }
  0x24   :  { %418 = vmatmul.mubr.bf16.vlgmr.msra.gmra.mrb[0].mxu1 %v639_v35  ;;  %591 = vmatpush3.bf16.msra.mxu0 %v642_v37 }
  0x25   :  { %592 = vmatprep.subr.bf16.mxu0 %v647_v34  ;;  %598 = vmatprep.mubr.msk.bf16.mxu0 %vm648_vm0, %v647_v34 }
  0x28   :  { %593 = vmatpush3.bf16.msra.mxu0 %v643_v38 }
  0x29   :  { %594 = vmatprep.subr.bf16.mxu0 %v647_v34 }
  0x2c   :  { %595 = vmatpush3.bf16.msra.mxu0 %v644_v39 }
  0x2d   :  { %596 = vmatprep.subr.bf16.mxu0 %v647_v34 }
  0x30   :  { %597 = vmatpush3.bf16.msra.mxu0 %v645_v40 }
  0x33   :  { %599 = vmatmul.mubr.msk.bf16.vlgmr.msra.gmra.mrb[4].mxu0 %vm340_vm1, %v646_v41 }
  0xf6   :  { %v557_v42 = vpop.f32.mrb[0].mxu0 }
  0xf7   :  { %v579_v43 = vpop.f32.mrb[0].mxu1  ;;  %v558_v44 = vpop.f32.mrb[1].mxu0 }
  0xf8   :  { %v559_v45 = vadd.f32 %v558_v44, %v557_v42  ;;  %v580_v46 = vpop.f32.mrb[1].mxu1  ;;  %v560_v47 = vpop.f32.mrb[2].mxu0 }
  0xf9   :  { %v581_v48 = vadd.f32 %v580_v46, %v579_v43  ;;  %v582_v49 = vpop.f32.mrb[2].mxu1  ;;  %v561_v50 = vpop.f32.mrb[3].mxu0 }
  0xfa   :  { %v562_v51 = vadd.f32 %v561_v50, %v560_v47  ;;  %v583_v52 = vpop.f32.mrb[3].mxu1 }
  0xfb   :  { %v584_v53 = vadd.f32 %v583_v52, %v582_v49  ;;  %v420_v54 = vadd.f32 %v581_v48, %v559_v45 }
  0xfd   :  { %v423_v55 = vadd.f32 %v584_v53, %v562_v51 }
 0x106   :  { %v460_v56 = vpop.f32.mrb[4].mxu0 }
 0x107   :  { %v461_v58 = vadd.f32 %v460_v56, %v420_v54  ;;  %v600_v59 = vpop.f32.mrb[5].mxu0 }
 0x108   :  { %v463_v61 = vpop.f32.mrb[6].mxu0 }
 0x109   :  { %v474_v62 = vmul.f32 %v539_v57, %v461_v58  ;;  %v464_v63 = vadd.f32 %v463_v61, %v423_v55  ;;  %v601_v0 = vpop.f32.mrb[7].mxu0 }
 0x10b   :  { %v483_v2 = vadd.f32 %v540_v60, %v474_v62  ;;  %v475_v3 = vmul.f32 %v539_v57, %v464_v63 }
 0x10d   :  { %v487_v5 = vadd.f32 %v485_v1, %v483_v2  ;;  %v484_v6 = vadd.f32 %v540_v60, %v475_v3 }
 0x10f   :  { %v489_v7 = vmax.f32 %v487_v5, 0.0  ;;  %v488_v8 = vadd.f32 %v486_v4, %v484_v6 }
 0x111   :  { %491 = vst [vmem:[%s825_s5] sm:$0xff] %v489_v7  ;;  %v490_v9 = vmax.f32 %v488_v8, 0.0 }
 0x113   :  { %492 = vst [vmem:[%s825_s5 + $0x8] sm:$0xff] %v490_v9 }

// kernel: _forward.120
= control target key start
LH: loop header
LB: loop body
LE: loop exit
PB: predicated region body
PF: predicated region fallthrough
CT: control target
= control target key end

     0   :  { %v640_v34 = vmov 0.0   ;;  %vm641_vm0 = vmmov 0   ;;  %vm337_vm1 = vcmask 523264   ;;  %s802_s1 = inlined_call_operand.vmem [shape: bf16[576,128], index: 1, kind: input, shape index: {}]   ;;  %s803_s0 = inlined_call_operand.vmem [shape: bf16[16,576], index: 0, kind: input, shape index: {}]   ;;  %s804_s2 = inlined_call_operand.vmem [shape: f32[1,128], index: 2, kind: input, shape index: {}]   ;;  %s805_s3 = inlined_call_operand.vmem [shape: f32[1,128], index: 3, kind: input, shape index: {}]   ;;  %s806_s4 = inlined_call_operand.vmem [shape: f32[16,128], index: 4, kind: output, shape index: {}]  }
   0x1   :  { %v597_v0 = vld [vmem:[%s802_s1 + $0x40] sm:$0xff]   ;;  %v601_v4 = vld [vmem:[%s802_s1 + $0x48] sm:$0xff]   ;;  %v605_v8 = vld [vmem:[%s802_s1 + $0x50] sm:$0xff]  }
   0x2   :  { %v598_v1 = vld [vmem:[%s802_s1 + $0xc0] sm:$0xff]   ;;  %534 = vmatprep.subr.bf16.mxu0 %v597_v0  ;;  %v602_v5 = vld [vmem:[%s802_s1 + $0xc8] sm:$0xff]   ;;  %v606_v9 = vld [vmem:[%s802_s1 + $0xd0] sm:$0xff]  }
   0x3   :  { %v599_v2 = vld [vmem:[%s802_s1] sm:$0xff]   ;;  %556 = vmatprep.subr.bf16.mxu1 %v598_v1  ;;  %v603_v6 = vld [vmem:[%s802_s1 + $0x8] sm:$0xff]   ;;  %v607_v10 = vld [vmem:[%s802_s1 + $0x10] sm:$0xff]  }
   0x4   :  { %v600_v3 = vld [vmem:[%s802_s1 + $0x80] sm:$0xff]   ;;  %535 = vmatpush3.bf16.msra.mxu0 %v599_v2  ;;  %v604_v7 = vld [vmem:[%s802_s1 + $0x88] sm:$0xff]   ;;  %v608_v11 = vld [vmem:[%s802_s1 + $0x90] sm:$0xff]  }
   0x5   :  { %557 = vmatpush3.bf16.msra.mxu1 %v600_v3  ;;  %536 = vmatprep.subr.bf16.mxu0 %v601_v4  ;;  %v609_v12 = vld [vmem:[%s802_s1 + $0x58] sm:$0xff]   ;;  %v613_v16 = vld [vmem:[%s802_s1 + $0x60] sm:$0xff]   ;;  %v617_v20 = vld [vmem:[%s802_s1 + $0x68] sm:$0xff]  }
   0x6   :  { %558 = vmatprep.subr.bf16.mxu1 %v602_v5  ;;  %v610_v13 = vld [vmem:[%s802_s1 + $0xd8] sm:$0xff]   ;;  %v614_v17 = vld [vmem:[%s802_s1 + $0xe0] sm:$0xff]   ;;  %v618_v21 = vld [vmem:[%s802_s1 + $0xe8] sm:$0xff]  }
   0x7   :  { %v611_v14 = vld [vmem:[%s802_s1 + $0x18] sm:$0xff]   ;;  %v615_v18 = vld [vmem:[%s802_s1 + $0x20] sm:$0xff]   ;;  %v619_v22 = vld [vmem:[%s802_s1 + $0x28] sm:$0xff]  }
   0x8   :  { %537 = vmatpush3.bf16.msra.mxu0 %v603_v6  ;;  %v612_v15 = vld [vmem:[%s802_s1 + $0x98] sm:$0xff]   ;;  %v616_v19 = vld [vmem:[%s802_s1 + $0xa0] sm:$0xff]   ;;  %v620_v23 = vld [vmem:[%s802_s1 + $0xa8] sm:$0xff]  }
   0x9   :  { %559 = vmatpush3.bf16.msra.mxu1 %v604_v7  ;;  %538 = vmatprep.subr.bf16.mxu0 %v605_v8  ;;  %v621_v24 = vld [vmem:[%s802_s1 + $0x70] sm:$0xff]   ;;  %v625_v28 = vld [vmem:[%s802_s1 + $0x78] sm:$0xff]   ;;  %v634_v36 = vld [vmem:[%s803_s0 + $0xc] ss:$20 sps:$4 sm:$0xff]  }
   0xa   :  { %560 = vmatprep.subr.bf16.mxu1 %v606_v9  ;;  %v622_v25 = vld [vmem:[%s802_s1 + $0xf0] sm:$0xff]   ;;  %v626_v29 = vld [vmem:[%s802_s1 + $0xf8] sm:$0xff]   ;;  %v635_v37 = vld [vmem:[%s802_s1 + $0x100] sm:$0xff]   ;;  %414 = vmatprep.mubr.bf16.mxu1 %v634_v36 }
   0xb   :  { %v623_v26 = vld [vmem:[%s802_s1 + $0x30] sm:$0xff]   ;;  %v627_v30 = vld [vmem:[%s802_s1 + $0x38] sm:$0xff]   ;;  %v636_v38 = vld [vmem:[%s802_s1 + $0x108] sm:$0xff]  }
   0xc   :  { %539 = vmatpush3.bf16.msra.mxu0 %v607_v10  ;;  %v624_v27 = vld [vmem:[%s802_s1 + $0xb0] sm:$0xff]   ;;  %v628_v31 = vld [vmem:[%s802_s1 + $0xb8] sm:$0xff]   ;;  %v532_v57 = vld [vmem:[%s804_s2] ss:$0 sm:$0xff] }
   0xd   :  { %561 = vmatpush3.bf16.msra.mxu1 %v608_v11  ;;  %540 = vmatprep.subr.bf16.mxu0 %v609_v12  ;;  %v629_v32 = vld [vmem:[%s803_s0] ss:$20 sps:$4 sm:$0xff]   ;;  %v631_v33 = vld [vmem:[%s803_s0 + $0x4] ss:$20 sps:$4 sm:$0xff]   ;;  %v632_v35 = vld [vmem:[%s803_s0 + $0x8] ss:$20 sps:$4 sm:$0xff]  }
   0xe   :  { %562 = vmatprep.subr.bf16.mxu1 %v610_v13  ;;  %373 = vmatprep.mubr.bf16.mxu0 %v631_v33  ;;  %v637_v39 = vld [vmem:[%s802_s1 + $0x110] sm:$0xff]   ;;  %v638_v40 = vld [vmem:[%s802_s1 + $0x118] sm:$0xff]   ;;  %v533_v60 = vld [vmem:[%s805_s3] ss:$0 sm:$0xff] }
   0xf   :  { %v639_v41 = vld [vmem:[%s803_s0 + $0x10] ss:$20 sps:$4 sm:$0xff]  }
  0x10   :  { %541 = vmatpush3.bf16.msra.mxu0 %v611_v14 }
  0x11   :  { %563 = vmatpush3.bf16.msra.mxu1 %v612_v15  ;;  %542 = vmatprep.subr.bf16.mxu0 %v613_v16 }
  0x12   :  { %564 = vmatprep.subr.bf16.mxu1 %v614_v17 }
  0x14   :  { %543 = vmatpush3.bf16.msra.mxu0 %v615_v18 }
  0x15   :  { %565 = vmatpush3.bf16.msra.mxu1 %v616_v19  ;;  %544 = vmatprep.subr.bf16.mxu0 %v617_v20 }
  0x16   :  { %566 = vmatprep.subr.bf16.mxu1 %v618_v21 }
  0x18   :  { %545 = vmatpush3.bf16.msra.mxu0 %v619_v22 }
  0x19   :  { %567 = vmatpush3.bf16.msra.mxu1 %v620_v23  ;;  %546 = vmatprep.subr.bf16.mxu0 %v621_v24 }
  0x1a   :  { %568 = vmatprep.subr.bf16.mxu1 %v622_v25 }
  0x1c   :  { %547 = vmatpush3.bf16.msra.mxu0 %v623_v26 }
  0x1d   :  { %569 = vmatpush3.bf16.msra.mxu1 %v624_v27  ;;  %548 = vmatprep.subr.bf16.mxu0 %v625_v28 }
  0x1e   :  { %570 = vmatprep.subr.bf16.mxu1 %v626_v29 }
  0x20   :  { %549 = vmatpush3.bf16.msra.mxu0 %v627_v30 }
  0x21   :  { %571 = vmatpush3.bf16.msra.mxu1 %v628_v31  ;;  %583 = vmatprep.subr.bf16.mxu0 %v640_v34 }
  0x23   :  { %374 = vmatmul.mubr.bf16.vlgmr.msra.gmra.mrb[0].mxu0 %v629_v32 }
  0x24   :  { %415 = vmatmul.mubr.bf16.vlgmr.msra.gmra.mrb[0].mxu1 %v632_v35  ;;  %584 = vmatpush3.bf16.msra.mxu0 %v635_v37 }
  0x25   :  { %585 = vmatprep.subr.bf16.mxu0 %v640_v34  ;;  %591 = vmatprep.mubr.msk.bf16.mxu0 %vm641_vm0, %v640_v34 }
  0x28   :  { %586 = vmatpush3.bf16.msra.mxu0 %v636_v38 }
  0x29   :  { %587 = vmatprep.subr.bf16.mxu0 %v640_v34 }
  0x2c   :  { %588 = vmatpush3.bf16.msra.mxu0 %v637_v39 }
  0x2d   :  { %589 = vmatprep.subr.bf16.mxu0 %v640_v34 }
  0x30   :  { %590 = vmatpush3.bf16.msra.mxu0 %v638_v40 }
  0x33   :  { %592 = vmatmul.mubr.msk.bf16.vlgmr.msra.gmra.mrb[4].mxu0 %vm337_vm1, %v639_v41 }
  0xf6   :  { %v550_v42 = vpop.f32.mrb[0].mxu0 }
  0xf7   :  { %v572_v43 = vpop.f32.mrb[0].mxu1  ;;  %v551_v44 = vpop.f32.mrb[1].mxu0 }
  0xf8   :  { %v552_v45 = vadd.f32 %v551_v44, %v550_v42  ;;  %v573_v46 = vpop.f32.mrb[1].mxu1  ;;  %v553_v47 = vpop.f32.mrb[2].mxu0 }
  0xf9   :  { %v574_v48 = vadd.f32 %v573_v46, %v572_v43  ;;  %v575_v49 = vpop.f32.mrb[2].mxu1  ;;  %v554_v50 = vpop.f32.mrb[3].mxu0 }
  0xfa   :  { %v555_v51 = vadd.f32 %v554_v50, %v553_v47  ;;  %v576_v52 = vpop.f32.mrb[3].mxu1 }
  0xfb   :  { %v577_v53 = vadd.f32 %v576_v52, %v575_v49  ;;  %v417_v54 = vadd.f32 %v574_v48, %v552_v45 }
  0xfd   :  { %v420_v55 = vadd.f32 %v577_v53, %v555_v51 }
 0x106   :  { %v457_v56 = vpop.f32.mrb[4].mxu0 }
 0x107   :  { %v458_v58 = vadd.f32 %v457_v56, %v417_v54  ;;  %v593_v59 = vpop.f32.mrb[5].mxu0 }
 0x108   :  { %v460_v61 = vpop.f32.mrb[6].mxu0 }
 0x109   :  { %v471_v62 = vmul.f32 %v532_v57, %v458_v58  ;;  %v461_v63 = vadd.f32 %v460_v61, %v420_v55  ;;  %v594_v0 = vpop.f32.mrb[7].mxu0 }
 0x10b   :  { %v480_v1 = vadd.f32 %v533_v60, %v471_v62  ;;  %v472_v2 = vmul.f32 %v532_v57, %v461_v63 }
 0x10d   :  { %v482_v3 = vmax.f32 %v480_v1, 0.0  ;;  %v481_v4 = vadd.f32 %v533_v60, %v472_v2 }
 0x10f   :  { %484 = vst [vmem:[%s806_s4] sm:$0xff] %v482_v3  ;;  %v483_v5 = vmax.f32 %v481_v4, 0.0 }
 0x111   :  { %485 = vst [vmem:[%s806_s4 + $0x8] sm:$0xff] %v483_v5 }

// kernel: _forward.123
= control target key start
LH: loop header
LB: loop body
LE: loop exit
PB: predicated region body
PF: predicated region fallthrough
CT: control target
= control target key end

     0   :  { %v206_v0 = vmov 0.0   ;;  %vm207_vm0 = vmmov 0   ;;  %s272_s1 = inlined_call_operand.vmem [shape: bf16[128,128], index: 1, kind: input, shape index: {}]   ;;  %s273_s0 = inlined_call_operand.vmem [shape: bf16[16,128], index: 0, kind: input, shape index: {}]   ;;  %s274_s2 = inlined_call_operand.vmem [shape: f32[1,128], index: 2, kind: input, shape index: {}]   ;;  %s275_s3 = inlined_call_operand.vmem [shape: f32[1,128], index: 3, kind: input, shape index: {}]   ;;  %s276_s4 = inlined_call_operand.vmem [shape: f32[16,128], index: 4, kind: output, shape index: {}]  }
   0x1   :  { %175 = vmatprep.subr.bf16.mxu0 %v206_v0  ;;  %v197_v1 = vld [vmem:[%s272_s1] sm:$0xff]   ;;  %191 = vmatprep.mubr.msk.bf16.mxu0 %vm207_vm0, %v206_v0  ;;  %v198_v2 = vld [vmem:[%s272_s1 + $0x8] sm:$0xff]   ;;  %v199_v3 = vld [vmem:[%s272_s1 + $0x10] sm:$0xff]  }
   0x2   :  { %176 = vmatpush3.bf16.msra.mxu0 %v197_v1  ;;  %v200_v4 = vld [vmem:[%s272_s1 + $0x18] sm:$0xff]   ;;  %v201_v5 = vld [vmem:[%s272_s1 + $0x20] sm:$0xff]   ;;  %v202_v6 = vld [vmem:[%s272_s1 + $0x28] sm:$0xff]  }
   0x3   :  { %177 = vmatprep.subr.bf16.mxu0 %v206_v0  ;;  %v203_v7 = vld [vmem:[%s272_s1 + $0x30] sm:$0xff]   ;;  %v204_v8 = vld [vmem:[%s272_s1 + $0x38] sm:$0xff]   ;;  %v205_v9 = vld [vmem:[%s273_s0] sm:$0xff]  }
   0x4   :  { %v164_v10 = vld [vmem:[%s274_s2] ss:$0 sm:$0xff] }
   0x5   :  { %v165_v12 = vld [vmem:[%s275_s3] ss:$0 sm:$0xff] }
   0x6   :  { %178 = vmatpush3.bf16.msra.mxu0 %v198_v2 }
   0x7   :  { %179 = vmatprep.subr.bf16.mxu0 %v206_v0 }
   0xa   :  { %180 = vmatpush3.bf16.msra.mxu0 %v199_v3 }
   0xb   :  { %181 = vmatprep.subr.bf16.mxu0 %v206_v0 }
   0xe   :  { %182 = vmatpush3.bf16.msra.mxu0 %v200_v4 }
   0xf   :  { %183 = vmatprep.subr.bf16.mxu0 %v206_v0 }
  0x12   :  { %184 = vmatpush3.bf16.msra.mxu0 %v201_v5 }
  0x13   :  { %185 = vmatprep.subr.bf16.mxu0 %v206_v0 }
  0x16   :  { %186 = vmatpush3.bf16.msra.mxu0 %v202_v6 }
  0x17   :  { %187 = vmatprep.subr.bf16.mxu0 %v206_v0 }
  0x1a   :  { %188 = vmatpush3.bf16.msra.mxu0 %v203_v7 }
  0x1b   :  { %189 = vmatprep.subr.bf16.mxu0 %v206_v0 }
  0x1e   :  { %190 = vmatpush3.bf16.msra.mxu0 %v204_v8 }
  0x21   :  { %192 = vmatmul.mubr.bf16.vlgmr.msra.gmra.mrb[0].mxu0 %v205_v9 }
  0xf4   :  { %v124_v11 = vpop.f32.mrb[0].mxu0 }
  0xf5   :  { %v138_v13 = vmul.f32 %v164_v10, %v124_v11  ;;  %v193_v14 = vpop.f32.mrb[1].mxu0 }
  0xf6   :  { %v127_v15 = vpop.f32.mrb[2].mxu0 }
  0xf7   :  { %v147_v16 = vadd.f32 %v165_v12, %v138_v13  ;;  %v139_v17 = vmul.f32 %v164_v10, %v127_v15  ;;  %v194_v18 = vpop.f32.mrb[3].mxu0 }
  0xf9   :  { %149 = vst [vmem:[%s276_s4] sm:$0xff] %v147_v16  ;;  %v148_v19 = vadd.f32 %v165_v12, %v139_v17 }
  0xfb   :  { %150 = vst [vmem:[%s276_s4 + $0x8] sm:$0xff] %v148_v19 }

</bundles_post_ra>
